<compile_context>
chip_gen: v7x
topology: tpu7x:2x2x1
jax: 0.10.0
libtpu: 0.0.40
codegen_flags: <defaults>
</compile_context>

<pallas_src>
import functools

import jax
import jax.numpy as jnp
from jax import lax
from jax.experimental import pallas as pl
from jax.experimental.pallas import tpu as pltpu


# -----------------------------------------------------------------------------
# Pallas kernel: merged conv (K*K accumulating MXU dots) + BN shift +
# LeakyReLU(0.1) + residual, one batch element per grid step.
# -----------------------------------------------------------------------------
def mixconv_kernel(x_ref, w_ref, shift_ref, out_ref):
    # x_ref     : (1, Hp, Wp, C1p) bf16  spatially padded image (W lane-aligned)
    # w_ref     : (K*K, C1p, C2p)  bf16  merged weights with BN scale folded in
    # shift_ref : (1, C2p)         f32   beta - running_mean * scale
    # out_ref   : (1, H, W, C2p)   f32
    _, H, W, C2p = out_ref.shape
    _, Hp, Wp, C1p = x_ref.shape
    pad = (Hp - H) // 2            # static
    K = 2 * pad + 1                # static

    # K*K accumulating dots: each tap is a shifted (H, W, C1p) slice of the
    # resident padded block, fed straight to the MXU with f32 accumulation.
    acc = None
    for dy in range(K):
        for dx in range(K):
            tap = x_ref[0, dy:dy + H, dx:dx + W, :].reshape(H * W, C1p)
            part = jnp.dot(tap, w_ref[dy * K + dx],
                           preferred_element_type=jnp.float32)
            acc = part if acc is None else acc + part

    # BatchNorm (inference): scale already folded into weights, add shift.
    y = acc + shift_ref[...]
    # LeakyReLU(0.1)
    y = jnp.where(y >= 0.0, y, 0.1 * y)

    # Residual from the interior of the in-VMEM bf16 block (c1 == c2).
    res = x_ref[0, pad:pad + H, pad:pad + W, :].reshape(H * W, C1p)
    out_ref[...] = (res.astype(jnp.float32) + y).reshape(1, H, W, C2p)


# -----------------------------------------------------------------------------
# Wrapper: parameter plumbing (glue) + pallas_call
# -----------------------------------------------------------------------------
def _round_up(x, m):
    return (x + m - 1) // m * m


def equal_ch_split(c2, groups):
    """Replicates torch.linspace(0, groups-1e-6, c2).floor() bucket counts."""
    i = jnp.floor(jnp.linspace(0.0, groups - 1e-6, c2))
    return [int((i == g).sum()) for g in range(groups)]


def merge_group_weights(weights_torch_layout, k, c1, c2):
    """Merge per-group OIHW conv weights into one (Kmax,Kmax,C1,C2) tensor."""
    kmax = max(k)
    pad = kmax // 2
    w = jnp.zeros((kmax, kmax, c1, c2), dtype=jnp.float32)
    co_off = 0
    for wg, kg in zip(weights_torch_layout, k):
        cg = wg.shape[0]
        off = pad - kg // 2
        # OIHW -> HWIO, centered inside the Kmax x Kmax window.
        wg_hwio = jnp.transpose(wg, (2, 3, 1, 0))
        w = w.at[off:off + kg, off:off + kg, :, co_off:co_off + cg].set(wg_hwio)
        co_off += cg
    return w


@functools.partial(jax.jit, static_argnames=("eps",))
def mixconv2d_forward(x_nchw, w_merged, gamma, beta, run_mean, run_var,
                      eps=1e-5):
    N, C1, H, W = x_nchw.shape
    K = w_merged.shape[0]
    C2 = w_merged.shape[3]
    # The module's residual add requires c1 == c2.
    assert C1 == C2, "MixConv2d residual add requires c1 == c2"
    pad = K // 2

    # Lane-dense channel padding (stripped after the kernel).  NOTE: for tiny
    # channel counts (C=4) this inflates HBM bytes with zeros, but it keeps
    # every vreg/vst full-width; realistic MixConv widths (C >= 128) pad ~0.
    C1p = _round_up(C1, 128)
    C2p = _round_up(C2, 128)
    Hp = H + 2 * pad
    # Align padded W to the bf16 sublane tile so dx-shifted slices are cheap.
    Wp = _round_up(W + 2 * pad, 16)

    # Whole-image-per-step blocks: check the double-buffered working set fits
    # comfortably inside v7x's 64 MiB VMEM (32 MiB scoped).
    vmem_bytes = (2 * Hp * Wp * C1p * 2          # bf16 input block (x2 buf)
                  + 2 * H * W * C2p * 4          # f32 output block (x2 buf)
                  + 2 * K * K * C1p * C2p * 2)   # bf16 weights (x2 buf)
    assert vmem_bytes < 24 * 1024 * 1024, "feature map too large for whole-image blocks"
    # TODO(synk): for large feature maps, add an H-tiled halo path (pl.Element
    # windows or manual double-buffered DMA) instead of whole-image blocks.

    # Single fusible pass: NCHW -> NHWC transpose + bf16 cast + spatial pad +
    # channel pad (one HBM read of x, one bf16 write).
    x_nhwc = jnp.transpose(x_nchw, (0, 2, 3, 1)).astype(jnp.bfloat16)
    x_conv = jnp.pad(x_nhwc, ((0, 0), (pad, pad),
                              (pad, Wp - W - pad), (0, C1p - C1)))

    # Fold BN running stats: scale goes into the conv weights (exact, conv is
    # linear); only the shift is applied in-kernel.
    inv_std = 1.0 / jnp.sqrt(run_var + eps)
    scale = gamma * inv_std                               # (C2,)
    shift = beta - run_mean * scale                       # (C2,)
    w = w_merged * scale[None, None, None, :]             # HWIO, f32
    w = jnp.pad(w, ((0, 0), (0, 0), (0, C1p - C1), (0, C2p - C2)))
    w = w.reshape(K * K, C1p, C2p).astype(jnp.bfloat16)
    shift_p = jnp.pad(shift, (0, C2p - C2)).reshape(1, C2p).astype(jnp.float32)

    # Constant-index inputs (w, shift) could be single-buffered via
    # pipeline_mode=pl.Buffered(1); at these sizes the saving is negligible.
    out_nhwc = pl.pallas_call(
        mixconv_kernel,
        out_shape=jax.ShapeDtypeStruct((N, H, W, C2p), jnp.float32),
        grid_spec=pltpu.PrefetchScalarGridSpec(
            num_scalar_prefetch=0,
            grid=(N,),
            in_specs=[
                pl.BlockSpec((1, Hp, Wp, C1p), lambda n: (n, 0, 0, 0)),
                pl.BlockSpec((K * K, C1p, C2p), lambda n: (0, 0, 0)),
                pl.BlockSpec((1, C2p), lambda n: (0, 0)),
            ],
            out_specs=pl.BlockSpec((1, H, W, C2p), lambda n: (n, 0, 0, 0)),
        ),
        compiler_params=pltpu.CompilerParams(
            dimension_semantics=("parallel",),
            vmem_limit_bytes=32 * 1024 * 1024),
    )(x_conv, w, shift_p)

    # Strip channel padding, back to NCHW.
    return jnp.transpose(out_nhwc[..., :C2], (0, 3, 1, 2)).astype(x_nchw.dtype)


# -----------------------------------------------------------------------------
# Pure-JAX reference (lax.conv, f32) for verification
# -----------------------------------------------------------------------------
def reference_forward(x, group_weights, gamma, beta, run_mean, run_var,
                      eps=1e-5):
    ys = []
    for wg in group_weights:
        dn = lax.conv_dimension_numbers(x.shape, wg.shape,
                                        ("NCHW", "OIHW", "NCHW"))
        ys.append(lax.conv_general_dilated(x, wg, (1, 1), "SAME",
                                           dimension_numbers=dn))
    y = jnp.concatenate(ys, axis=1)
    sc = gamma / jnp.sqrt(run_var + eps)
    sh = beta - run_mean * sc
    y = y * sc[None, :, None, None] + sh[None, :, None, None]
    y = jnp.where(y >= 0.0, y, 0.1 * y)
    return x + y


# -----------------------------------------------------------------------------
# Main
# -----------------------------------------------------------------------------
if __name__ == "__main__":
    key = jax.random.PRNGKey(0)
    k_x, k_w0, k_w1, k_g, k_b, k_m, k_v = jax.random.split(key, 7)

    # Small shapes consistent with the module: residual needs c1 == c2.
    N, C1, H, W = 2, 4, 16, 16
    C2 = C1
    k = (1, 3)
    c_split = equal_ch_split(C2, len(k))  # -> [2, 2]

    # Deterministic "parameters" (torch OIHW layout for conv weights).
    w_groups = [
        jax.random.normal(k_w0, (c_split[0], C1, k[0], k[0]),
                          dtype=jnp.float32) * 0.2,
        jax.random.normal(k_w1, (c_split[1], C1, k[1], k[1]),
                          dtype=jnp.float32) * 0.2,
    ]
    gamma = 1.0 + 0.1 * jax.random.normal(k_g, (C2,), dtype=jnp.float32)
    beta = 0.1 * jax.random.normal(k_b, (C2,), dtype=jnp.float32)
    run_mean = 0.1 * jax.random.normal(k_m, (C2,), dtype=jnp.float32)
    run_var = jax.random.uniform(k_v, (C2,), dtype=jnp.float32,
                                 minval=0.5, maxval=1.5)
    # NOTE: BatchNorm is evaluated in inference mode (running statistics).

    x = jax.random.normal(k_x, (N, C1, H, W), dtype=jnp.float32)

    w_merged = merge_group_weights(w_groups, k, C1, C2)

    out = mixconv2d_forward(x, w_merged, gamma, beta, run_mean, run_var)
    out = jax.block_until_ready(out)

    ref = reference_forward(x, w_groups, gamma, beta, run_mean, run_var)
    ref = jax.block_until_ready(ref)

    assert out.shape == (N, C2, H, W)
    # Conv operands and the residual path are bf16 (f32 accumulation), so
    # compare at bf16 tolerance.
    max_err = float(jnp.max(jnp.abs(out - ref)))
    assert jnp.allclose(out, ref, atol=5e-2, rtol=5e-2), max_err

    print("KERNEL_OK")
</pallas_src>

<mosaic_0001>
module attributes {stable_mosaic.version = 11 : i64} {
  func.func @mixconv_kernel(%arg0: i32, %arg1: memref<1x18x32x128xbf16, #tpu.memory_space<vmem>>, %arg2: memref<9x128x128xbf16, #tpu.memory_space<vmem>>, %arg3: memref<1x128xf32, #tpu.memory_space<vmem>>, %arg4: memref<1x16x16x128xf32, #tpu.memory_space<vmem>>) attributes {dimension_semantics = [#tpu.dimension_semantics<parallel>], iteration_bounds = array<i64: 2>, scalar_prefetch = 0 : i64, scratch_operands = 0 : i64, tpu.core_type = #tpu.core_type<tc>, window_params = [{transform_indices = @transform_0, window_bounds = array<i64: 1, 18, 32, 128>}, {pipeline_mode = #tpu.pipeline_mode<synchronous>, transform_indices = @transform_1, window_bounds = array<i64: 9, 128, 128>}, {pipeline_mode = #tpu.pipeline_mode<synchronous>, transform_indices = @transform_2, window_bounds = array<i64: 1, 128>}, {transform_indices = @transform_3, window_bounds = array<i64: 1, 16, 16, 128>}]} {
    %c0 = arith.constant 0 : index
    %c0_0 = arith.constant 0 : index
    %c0_1 = arith.constant 0 : index
    %c0_2 = arith.constant 0 : index
    %0 = vector.load %arg1[%c0, %c0_0, %c0_1, %c0_2] : memref<1x18x32x128xbf16, #tpu.memory_space<vmem>>, vector<1x16x16x128xbf16>
    %1 = vector.shape_cast %0 : vector<1x16x16x128xbf16> to vector<16x16x128xbf16>
    %2 = vector.shape_cast %1 : vector<16x16x128xbf16> to vector<256x128xbf16>
    %c0_3 = arith.constant 0 : index
    %c0_4 = arith.constant 0 : index
    %c0_5 = arith.constant 0 : index
    %3 = vector.load %arg2[%c0_3, %c0_4, %c0_5] : memref<9x128x128xbf16, #tpu.memory_space<vmem>>, vector<1x128x128xbf16>
    %4 = vector.shape_cast %3 : vector<1x128x128xbf16> to vector<128x128xbf16>
    %cst = arith.constant dense<0.000000e+00> : vector<256x128xf32>
    %5 = tpu.matmul %2, %4, %cst {dimension_numbers = #tpu.dot_dimension_numbers<[1], [0], [0], [1], [0, 0, 1, 1], [], []>} : vector<256x128xbf16>, vector<128x128xbf16>, vector<256x128xf32> -> vector<256x128xf32>
    %c0_6 = arith.constant 0 : index
    %c0_7 = arith.constant 0 : index
    %c1 = arith.constant 1 : index
    %c0_8 = arith.constant 0 : index
    %6 = vector.load %arg1[%c0_6, %c0_7, %c1, %c0_8] : memref<1x18x32x128xbf16, #tpu.memory_space<vmem>>, vector<1x16x16x128xbf16>
    %7 = vector.shape_cast %6 : vector<1x16x16x128xbf16> to vector<16x16x128xbf16>
    %8 = vector.shape_cast %7 : vector<16x16x128xbf16> to vector<256x128xbf16>
    %c1_9 = arith.constant 1 : index
    %c0_10 = arith.constant 0 : index
    %c0_11 = arith.constant 0 : index
    %9 = vector.load %arg2[%c1_9, %c0_10, %c0_11] : memref<9x128x128xbf16, #tpu.memory_space<vmem>>, vector<1x128x128xbf16>
    %10 = vector.shape_cast %9 : vector<1x128x128xbf16> to vector<128x128xbf16>
    %cst_12 = arith.constant dense<0.000000e+00> : vector<256x128xf32>
    %11 = tpu.matmul %8, %10, %cst_12 {dimension_numbers = #tpu.dot_dimension_numbers<[1], [0], [0], [1], [0, 0, 1, 1], [], []>} : vector<256x128xbf16>, vector<128x128xbf16>, vector<256x128xf32> -> vector<256x128xf32>
    %12 = arith.addf %5, %11 : vector<256x128xf32>
    %c0_13 = arith.constant 0 : index
    %c0_14 = arith.constant 0 : index
    %c2 = arith.constant 2 : index
    %c0_15 = arith.constant 0 : index
    %13 = vector.load %arg1[%c0_13, %c0_14, %c2, %c0_15] : memref<1x18x32x128xbf16, #tpu.memory_space<vmem>>, vector<1x16x16x128xbf16>
    %14 = vector.shape_cast %13 : vector<1x16x16x128xbf16> to vector<16x16x128xbf16>
    %15 = vector.shape_cast %14 : vector<16x16x128xbf16> to vector<256x128xbf16>
    %c2_16 = arith.constant 2 : index
    %c0_17 = arith.constant 0 : index
    %c0_18 = arith.constant 0 : index
    %16 = vector.load %arg2[%c2_16, %c0_17, %c0_18] : memref<9x128x128xbf16, #tpu.memory_space<vmem>>, vector<1x128x128xbf16>
    %17 = vector.shape_cast %16 : vector<1x128x128xbf16> to vector<128x128xbf16>
    %cst_19 = arith.constant dense<0.000000e+00> : vector<256x128xf32>
    %18 = tpu.matmul %15, %17, %cst_19 {dimension_numbers = #tpu.dot_dimension_numbers<[1], [0], [0], [1], [0, 0, 1, 1], [], []>} : vector<256x128xbf16>, vector<128x128xbf16>, vector<256x128xf32> -> vector<256x128xf32>
    %19 = arith.addf %12, %18 : vector<256x128xf32>
    %c0_20 = arith.constant 0 : index
    %c1_21 = arith.constant 1 : index
    %c0_22 = arith.constant 0 : index
    %c0_23 = arith.constant 0 : index
    %20 = vector.load %arg1[%c0_20, %c1_21, %c0_22, %c0_23] : memref<1x18x32x128xbf16, #tpu.memory_space<vmem>>, vector<1x16x16x128xbf16>
    %21 = vector.shape_cast %20 : vector<1x16x16x128xbf16> to vector<16x16x128xbf16>
    %22 = vector.shape_cast %21 : vector<16x16x128xbf16> to vector<256x128xbf16>
    %c3 = arith.constant 3 : index
    %c0_24 = arith.constant 0 : index
    %c0_25 = arith.constant 0 : index
    %23 = vector.load %arg2[%c3, %c0_24, %c0_25] : memref<9x128x128xbf16, #tpu.memory_space<vmem>>, vector<1x128x128xbf16>
    %24 = vector.shape_cast %23 : vector<1x128x128xbf16> to vector<128x128xbf16>
    %cst_26 = arith.constant dense<0.000000e+00> : vector<256x128xf32>
    %25 = tpu.matmul %22, %24, %cst_26 {dimension_numbers = #tpu.dot_dimension_numbers<[1], [0], [0], [1], [0, 0, 1, 1], [], []>} : vector<256x128xbf16>, vector<128x128xbf16>, vector<256x128xf32> -> vector<256x128xf32>
    %26 = arith.addf %19, %25 : vector<256x128xf32>
    %c0_27 = arith.constant 0 : index
    %c1_28 = arith.constant 1 : index
    %c1_29 = arith.constant 1 : index
    %c0_30 = arith.constant 0 : index
    %27 = vector.load %arg1[%c0_27, %c1_28, %c1_29, %c0_30] : memref<1x18x32x128xbf16, #tpu.memory_space<vmem>>, vector<1x16x16x128xbf16>
    %28 = vector.shape_cast %27 : vector<1x16x16x128xbf16> to vector<16x16x128xbf16>
    %29 = vector.shape_cast %28 : vector<16x16x128xbf16> to vector<256x128xbf16>
    %c4 = arith.constant 4 : index
    %c0_31 = arith.constant 0 : index
    %c0_32 = arith.constant 0 : index
    %30 = vector.load %arg2[%c4, %c0_31, %c0_32] : memref<9x128x128xbf16, #tpu.memory_space<vmem>>, vector<1x128x128xbf16>
    %31 = vector.shape_cast %30 : vector<1x128x128xbf16> to vector<128x128xbf16>
    %cst_33 = arith.constant dense<0.000000e+00> : vector<256x128xf32>
    %32 = tpu.matmul %29, %31, %cst_33 {dimension_numbers = #tpu.dot_dimension_numbers<[1], [0], [0], [1], [0, 0, 1, 1], [], []>} : vector<256x128xbf16>, vector<128x128xbf16>, vector<256x128xf32> -> vector<256x128xf32>
    %33 = arith.addf %26, %32 : vector<256x128xf32>
    %c0_34 = arith.constant 0 : index
    %c1_35 = arith.constant 1 : index
    %c2_36 = arith.constant 2 : index
    %c0_37 = arith.constant 0 : index
    %34 = vector.load %arg1[%c0_34, %c1_35, %c2_36, %c0_37] : memref<1x18x32x128xbf16, #tpu.memory_space<vmem>>, vector<1x16x16x128xbf16>
    %35 = vector.shape_cast %34 : vector<1x16x16x128xbf16> to vector<16x16x128xbf16>
    %36 = vector.shape_cast %35 : vector<16x16x128xbf16> to vector<256x128xbf16>
    %c5 = arith.constant 5 : index
    %c0_38 = arith.constant 0 : index
    %c0_39 = arith.constant 0 : index
    %37 = vector.load %arg2[%c5, %c0_38, %c0_39] : memref<9x128x128xbf16, #tpu.memory_space<vmem>>, vector<1x128x128xbf16>
    %38 = vector.shape_cast %37 : vector<1x128x128xbf16> to vector<128x128xbf16>
    %cst_40 = arith.constant dense<0.000000e+00> : vector<256x128xf32>
    %39 = tpu.matmul %36, %38, %cst_40 {dimension_numbers = #tpu.dot_dimension_numbers<[1], [0], [0], [1], [0, 0, 1, 1], [], []>} : vector<256x128xbf16>, vector<128x128xbf16>, vector<256x128xf32> -> vector<256x128xf32>
    %40 = arith.addf %33, %39 : vector<256x128xf32>
    %c0_41 = arith.constant 0 : index
    %c2_42 = arith.constant 2 : index
    %c0_43 = arith.constant 0 : index
    %c0_44 = arith.constant 0 : index
    %41 = vector.load %arg1[%c0_41, %c2_42, %c0_43, %c0_44] : memref<1x18x32x128xbf16, #tpu.memory_space<vmem>>, vector<1x16x16x128xbf16>
    %42 = vector.shape_cast %41 : vector<1x16x16x128xbf16> to vector<16x16x128xbf16>
    %43 = vector.shape_cast %42 : vector<16x16x128xbf16> to vector<256x128xbf16>
    %c6 = arith.constant 6 : index
    %c0_45 = arith.constant 0 : index
    %c0_46 = arith.constant 0 : index
    %44 = vector.load %arg2[%c6, %c0_45, %c0_46] : memref<9x128x128xbf16, #tpu.memory_space<vmem>>, vector<1x128x128xbf16>
    %45 = vector.shape_cast %44 : vector<1x128x128xbf16> to vector<128x128xbf16>
    %cst_47 = arith.constant dense<0.000000e+00> : vector<256x128xf32>
    %46 = tpu.matmul %43, %45, %cst_47 {dimension_numbers = #tpu.dot_dimension_numbers<[1], [0], [0], [1], [0, 0, 1, 1], [], []>} : vector<256x128xbf16>, vector<128x128xbf16>, vector<256x128xf32> -> vector<256x128xf32>
    %47 = arith.addf %40, %46 : vector<256x128xf32>
    %c0_48 = arith.constant 0 : index
    %c2_49 = arith.constant 2 : index
    %c1_50 = arith.constant 1 : index
    %c0_51 = arith.constant 0 : index
    %48 = vector.load %arg1[%c0_48, %c2_49, %c1_50, %c0_51] : memref<1x18x32x128xbf16, #tpu.memory_space<vmem>>, vector<1x16x16x128xbf16>
    %49 = vector.shape_cast %48 : vector<1x16x16x128xbf16> to vector<16x16x128xbf16>
    %50 = vector.shape_cast %49 : vector<16x16x128xbf16> to vector<256x128xbf16>
    %c7 = arith.constant 7 : index
    %c0_52 = arith.constant 0 : index
    %c0_53 = arith.constant 0 : index
    %51 = vector.load %arg2[%c7, %c0_52, %c0_53] : memref<9x128x128xbf16, #tpu.memory_space<vmem>>, vector<1x128x128xbf16>
    %52 = vector.shape_cast %51 : vector<1x128x128xbf16> to vector<128x128xbf16>
    %cst_54 = arith.constant dense<0.000000e+00> : vector<256x128xf32>
    %53 = tpu.matmul %50, %52, %cst_54 {dimension_numbers = #tpu.dot_dimension_numbers<[1], [0], [0], [1], [0, 0, 1, 1], [], []>} : vector<256x128xbf16>, vector<128x128xbf16>, vector<256x128xf32> -> vector<256x128xf32>
    %54 = arith.addf %47, %53 : vector<256x128xf32>
    %c0_55 = arith.constant 0 : index
    %c2_56 = arith.constant 2 : index
    %c2_57 = arith.constant 2 : index
    %c0_58 = arith.constant 0 : index
    %55 = vector.load %arg1[%c0_55, %c2_56, %c2_57, %c0_58] : memref<1x18x32x128xbf16, #tpu.memory_space<vmem>>, vector<1x16x16x128xbf16>
    %56 = vector.shape_cast %55 : vector<1x16x16x128xbf16> to vector<16x16x128xbf16>
    %57 = vector.shape_cast %56 : vector<16x16x128xbf16> to vector<256x128xbf16>
    %c8 = arith.constant 8 : index
    %c0_59 = arith.constant 0 : index
    %c0_60 = arith.constant 0 : index
    %58 = vector.load %arg2[%c8, %c0_59, %c0_60] : memref<9x128x128xbf16, #tpu.memory_space<vmem>>, vector<1x128x128xbf16>
    %59 = vector.shape_cast %58 : vector<1x128x128xbf16> to vector<128x128xbf16>
    %cst_61 = arith.constant dense<0.000000e+00> : vector<256x128xf32>
    %60 = tpu.matmul %57, %59, %cst_61 {dimension_numbers = #tpu.dot_dimension_numbers<[1], [0], [0], [1], [0, 0, 1, 1], [], []>} : vector<256x128xbf16>, vector<128x128xbf16>, vector<256x128xf32> -> vector<256x128xf32>
    %61 = arith.addf %54, %60 : vector<256x128xf32>
    %c0_62 = arith.constant 0 : index
    %c0_63 = arith.constant 0 : index
    %62 = vector.load %arg3[%c0_62, %c0_63] : memref<1x128xf32, #tpu.memory_space<vmem>>, vector<1x128xf32>
    %63 = vector.broadcast %62 : vector<1x128xf32> to vector<256x128xf32>
    %64 = arith.addf %61, %63 : vector<256x128xf32>
    %cst_64 = arith.constant 0.000000e+00 : f32
    %65 = vector.broadcast %cst_64 : f32 to vector<256x128xf32>
    %66 = arith.cmpf oge, %64, %65 : vector<256x128xf32>
    %cst_65 = arith.constant 1.000000e-01 : f32
    %67 = vector.broadcast %cst_65 : f32 to vector<256x128xf32>
    %68 = arith.mulf %67, %64 : vector<256x128xf32>
    %69 = arith.select %66, %64, %68 : vector<256x128xi1>, vector<256x128xf32>
    %c0_66 = arith.constant 0 : index
    %c1_67 = arith.constant 1 : index
    %c1_68 = arith.constant 1 : index
    %c0_69 = arith.constant 0 : index
    %70 = vector.load %arg1[%c0_66, %c1_67, %c1_68, %c0_69] : memref<1x18x32x128xbf16, #tpu.memory_space<vmem>>, vector<1x16x16x128xbf16>
    %71 = vector.shape_cast %70 : vector<1x16x16x128xbf16> to vector<16x16x128xbf16>
    %72 = vector.shape_cast %71 : vector<16x16x128xbf16> to vector<256x128xbf16>
    %73 = arith.extf %72 : vector<256x128xbf16> to vector<256x128xf32>
    %74 = arith.addf %73, %69 : vector<256x128xf32>
    %75 = vector.shape_cast %74 : vector<256x128xf32> to vector<1x16x16x128xf32>
    %c0_70 = arith.constant 0 : index
    %c0_71 = arith.constant 0 : index
    %c0_72 = arith.constant 0 : index
    %c0_73 = arith.constant 0 : index
    %76 = vector.load %arg4[%c0_70, %c0_71, %c0_72, %c0_73] : memref<1x16x16x128xf32, #tpu.memory_space<vmem>>, vector<1x16x16x128xf32>
    tpu.vector_store %arg4[%c0_70, %c0_71, %c0_72, %c0_73], %75 {strides = array<i32>} : memref<1x16x16x128xf32, #tpu.memory_space<vmem>>, vector<1x16x16x128xf32>,
    return
  }
  func.func @transform_0(%arg0: i32) -> (i32, i32, i32, i32) {
    %c0_i32 = arith.constant 0 : i32
    %c0_i32_0 = arith.constant 0 : i32
    %c0_i32_1 = arith.constant 0 : i32
    %c0_i32_2 = arith.constant 0 : i32
    return %arg0, %c0_i32, %c0_i32_0, %c0_i32_1 : i32, i32, i32, i32
  }
  func.func @transform_1(%arg0: i32) -> (i32, i32, i32) {
    %c0_i32 = arith.constant 0 : i32
    %c0_i32_0 = arith.constant 0 : i32
    %c0_i32_1 = arith.constant 0 : i32
    %c0_i32_2 = arith.constant 0 : i32
    return %c0_i32, %c0_i32_0, %c0_i32_1 : i32, i32, i32
  }
  func.func @transform_2(%arg0: i32) -> (i32, i32) {
    %c0_i32 = arith.constant 0 : i32
    %c0_i32_0 = arith.constant 0 : i32
    %c0_i32_1 = arith.constant 0 : i32
    return %c0_i32, %c0_i32_0 : i32, i32
  }
  func.func @transform_3(%arg0: i32) -> (i32, i32, i32, i32) {
    %c0_i32 = arith.constant 0 : i32
    %c0_i32_0 = arith.constant 0 : i32
    %c0_i32_1 = arith.constant 0 : i32
    %c0_i32_2 = arith.constant 0 : i32
    return %arg0, %c0_i32, %c0_i32_0, %c0_i32_1 : i32, i32, i32, i32
  }
}

</mosaic_0001>

<bundles_post_ra>
// kernel: mixconv2d_forward.1
= control target key start
LH: loop header
LB: loop body
LE: loop exit
PB: predicated region body
PF: predicated region fallthrough
CT: control target
= control target key end

     0   :  { %s7043_s12 = smov 0   ;;  %s9045_s0 = inlined_call_operand.vmem [shape: bf16[2,18,32,128], index: 0, kind: input, shape index: {}]   ;;  %s9046_s1 = inlined_call_operand.vmem [shape: bf16[9,128,128], index: 1, kind: input, shape index: {}]   ;;  %s9047_s2 = inlined_call_operand.vmem [shape: f32[1,128], index: 2, kind: input, shape index: {}]   ;;  %s9048_s3 = inlined_call_operand.vmem [shape: f32[2,16,16,128], index: 3, kind: output, shape index: {}]  }
   0x1 LB: > { %s5299_s13 = sadd.s32 4294967295, %s7021_s12   ;;  %p5303_p0 = scmp.ge.s32.totalorder %s7021_s12, 1  ;;  %s7021_s12 = sphi %s7043_s12, %s13_s12  }
   0x2   : > { %p137_p1 = scmp.lt.s32.totalorder %s7021_s12, 3 }
   0x4   : > { %p138_p2 = pnand %p5303_p0, %p137_p1 }
   0x6   : > { %141 = sbr.rel (%p138_p2) target bundleno = 594 (0x252), region = 32 }
   0xd   : > { %v6824_v0 = vld [vmem:[%s9046_s1 + $0x40] sm:$0xff]   ;;  %p161_p3 = scmp.lt.s32.totalorder %s5299_s13, 1  ;;  %v6826_v2 = vld [vmem:[%s9046_s1 + $0x48] sm:$0xff]   ;;  %v6828_v4 = vld [vmem:[%s9046_s1 + $0x50] sm:$0xff]   ;;  %vm236_vm0 = vsmask.f32 3328 }
   0xe   : > { %v6825_v1 = vld [vmem:[%s9046_s1 + $0x100] sm:$0xff]   ;;  %6111 = vmatprep.subr.bf16.mxu1 %v6824_v0  ;;  %v6827_v3 = vld [vmem:[%s9046_s1 + $0x108] sm:$0xff]   ;;  %v6829_v5 = vld [vmem:[%s9046_s1 + $0x110] sm:$0xff]   ;;  %vm237_vm1 = vsmask.f32 7440  ;;  %vm1266_vm3 = vcmask 1042432  }
   0xf   : > { %6303 = vmatprep.subr.bf16.mxu0 %v6825_v1  ;;  %6112 = vmatpush3.bf16.msra.mxu1 %v6824_v0  ;;  %s9167_s13 = smov (!%p161_p3, %s5299_s13), 1  ;;  %v6830_v6 = vld [vmem:[%s9046_s1 + $0x58] sm:$0xff]   ;;  %v6832_v8 = vld [vmem:[%s9046_s1 + $0x60] sm:$0xff]   ;;  %v6834_v10 = vld [vmem:[%s9046_s1 + $0x68] sm:$0xff]   ;;  %vm1267_vm4 = vcmask 1046532  }
  0x10   : > { %6304 = vmatpush3.bf16.msra.mxu0 %v6825_v1  ;;  %6113 = vmatprep.subr.bf16.mxu1 %v6826_v2  ;;  %v6831_v7 = vld [vmem:[%s9046_s1 + $0x118] sm:$0xff]   ;;  %s6815_s30 = smul.u32 288, %s9167_s13  ;;  %v6833_v9 = vld [vmem:[%s9046_s1 + $0x120] sm:$0xff]   ;;  %v6835_v11 = vld [vmem:[%s9046_s1 + $0x128] sm:$0xff]   ;;  %s5894_s9 = sshll.u32 %s9167_s13, 8 }
  0x11   : > { %6305 = vmatprep.subr.bf16.mxu0 %v6827_v3  ;;  %v6836_v25 = vld [vmem:[%s9046_s1 + $0x70] sm:$0xff]   ;;  %v6838_v35 = vld [vmem:[%s9046_s1 + $0x78] sm:$0xff]   ;;  %vm7119_vm2 = vmor %vm236_vm0, %vm237_vm1  ;;  %s8944_s13 = scalar_lea.vmem %s9048_s3, %s5894_s9 }
  0x12   : > { %s7087_s10 = scalar_lea.vmem %s9045_s0, %s6815_s30  ;;  %v6837_v29 = vld [vmem:[%s9046_s1 + $0x130] sm:$0xff]   ;;  %v6839_v50 = vld [vmem:[%s9046_s1 + $0x138] sm:$0xff]   ;;  %v6840_v1 = vld [vmem:[%s9046_s1] sm:$0xff]  }
  0x13   : > { %6114 = vmatpush3.bf16.msra.mxu1 %v6826_v2  ;;  %v172_v12 = vld [vmem:[%s7087_s10] sm:$0xf]  ;;  %v173_v13 = vld [vmem:[%s7087_s10 + $0x4] sm:$0xf]  ;;  %v220_v14 = vld [vmem:[%s7087_s10 + $0x8] sm:$0x1] }
  0x14   : > { %6306 = vmatpush3.bf16.msra.mxu0 %v6827_v3  ;;  %6115 = vmatprep.subr.bf16.mxu1 %v6828_v4  ;;  %v240_v15 = vshrl.u32 %v172_v12, 16  ;;  %v243_v16 = vshll.u32 %v172_v12, 16  ;;  %v249_v17 = vshll.u32 %v173_v13, 16  ;;  %v253_v18 = vshrl.u32 %v173_v13, 16  ;;  %v5499_v20 = vld [vmem:[%s7087_s10 + $0x10] sm:$0xf]  ;;  %vm7400_vm5 = vmor %vm1266_vm3, %vm1267_vm4 }
  0x15   : > { %6307 = vmatprep.subr.bf16.mxu0 %v6829_v5  ;;  %v259_v19 = vshll.u32 %v220_v14, 16  ;;  %v7100_v23 = vld [vmem:[%s7087_s10 + $0x14] sm:$0xf]  ;;  %v7103_v24 = vld [vmem:[%s7087_s10 + $0x18] sm:$0x1]  ;;  %v2139_v28 = vshrl.u32 %v5499_v20, 16 }
  0x16   : > { %v242_v21 = vrot.slane %v240_v15, 4  ;;  %v245_v22 = vrot.slane %v243_v16, 5  ;;  %v251_v26 = vrot.slane %v249_v17, 5  ;;  %v255_v27 = vrot.slane %v253_v18, 4  ;;  %v174_v34 = vld [vmem:[%s7087_s10 + $0x10] sm:$0xf] }
  0x17   : > { %6116 = vmatpush3.bf16.msra.mxu1 %v6828_v4  ;;  %v2142_v31 = vshll.u32 %v5499_v20, 16  ;;  %v2148_v32 = vshll.u32 %v7100_v23, 16  ;;  %v2152_v33 = vshrl.u32 %v7100_v23, 16  ;;  %v261_v38 = vrot.slane %v259_v19, 5  ;;  %v175_v41 = vld [vmem:[%s7087_s10 + $0x14] sm:$0xf] }
  0x18   : > { %6308 = vmatpush3.bf16.msra.mxu0 %v6829_v5  ;;  %6117 = vmatprep.subr.bf16.mxu1 %v6830_v6  ;;  %v246_v30 = vor.u32 %v245_v22, %v242_v21  ;;  %v256_v37 = vor.u32 %v255_v27, %v251_v26  ;;  %v2141_v39 = vrot.slane %v2139_v28, 4  ;;  %v2158_v40 = vshll.u32 %v7103_v24, 16  ;;  %v221_v54 = vld [vmem:[%s7087_s10 + $0x18] sm:$0x1]  ;;  %v5502_v60 = vld [vmem:[%s7087_s10 + $0x20] sm:$0xf] }
  0x19   : > { %6309 = vmatprep.subr.bf16.mxu0 %v6831_v7  ;;  %v2144_v43 = vrot.slane %v2142_v31, 5  ;;  %v2150_v44 = vrot.slane %v2148_v32, 5  ;;  %v2154_v45 = vrot.slane %v2152_v33, 4  ;;  %v264_v48 = vshrl.u32 %v174_v34, 16  ;;  %v7138_v2 = vld [vmem:[%s7087_s10 + $0x24] sm:$0xf] }
  0x1a   : > { %v247_v42 = vrot.slane %v246_v30, 4  ;;  %v257_v46 = vrot.slane %v256_v37, 4  ;;  %v2160_v47 = vrot.slane %v2158_v40, 5  ;;  %v267_v49 = vshll.u32 %v174_v34, 16  ;;  %v7143_v3 = vld [vmem:[%s9046_s1 + $0x140] sm:$0xff]  }
  0x1b   : > { %6118 = vmatpush3.bf16.msra.mxu1 %v6830_v6  ;;  %v2145_v52 = vor.u32 %v2144_v43, %v2141_v39  ;;  %v2155_v53 = vor.u32 %v2154_v45, %v2150_v44  ;;  %v273_v55 = vshll.u32 %v175_v41, 16  ;;  %v266_v57 = vrot.slane %v264_v48, 4  ;;  %v176_v18 = vld [vmem:[%s7087_s10 + $0x20] sm:$0xf]  ;;  %v177_v27 = vld [vmem:[%s7087_s10 + $0x24] sm:$0xf] }
  0x1c   : > { %6310 = vmatpush3.bf16.msra.mxu0 %v6831_v7  ;;  %6119 = vmatprep.subr.bf16.mxu1 %v6832_v8  ;;  %v252_v51 = vsel %vm7119_vm2, %v247_v42, %v251_v26  ;;  %v262_v56 = vsel %vm7119_vm2, %v257_v46, %v261_v38  ;;  %v269_v58 = vrot.slane %v267_v49, 5  ;;  %v277_v59 = vshrl.u32 %v175_v41, 16  ;;  %v7146_v7 = vld [vmem:[%s7087_s10 + $0x28] sm:$0x1]  ;;  %v5505_v37 = vld [vmem:[%s7087_s10 + $0x30] sm:$0xf] }
  0x1d   : > { %6311 = vmatprep.subr.bf16.mxu0 %v6833_v9  ;;  %v5323_v61 = vcombine.low %v252_v51, %v262_v56  ;;  %v2146_v62 = vrot.slane %v2145_v52, 4  ;;  %v2156_v63 = vrot.slane %v2155_v53, 4  ;;  %v275_v0 = vrot.slane %v273_v55, 5  ;;  %v222_v30 = vld [vmem:[%s7087_s10 + $0x28] sm:$0x1] }
  0x1e   : > { %v270_v4 = vor.u32 %v269_v58, %v266_v57  ;;  %v279_v5 = vrot.slane %v277_v59, 4  ;;  %v283_v6 = vshll.u32 %v221_v54, 16  ;;  %v2172_v19 = vshll.u32 %v7138_v2, 16  ;;  %v7171_v42 = vld [vmem:[%s7087_s10 + $0x34] sm:$0xf]  ;;  %v6843_v43 = vld [vmem:[%s9046_s1 + $0x8] sm:$0xff]  }
  0x1f   : > { %6120 = vmatpush3.bf16.msra.mxu1 %v6832_v8  ;;  %6127 = vmatprep.mubr.bf16.mxu1 %v5323_v61  ;;  %v7150_v8 = vsel %vm7119_vm2, %v2146_v62, %v2150_v44  ;;  %v2176_v20 = vshrl.u32 %v7138_v2, 16  ;;  %v2182_v21 = vshll.u32 %v7146_v7, 16  ;;  %v288_v31 = vshrl.u32 %v176_v18, 16  ;;  %v6842_v51 = vld [vmem:[%s9046_s1 + $0x148] sm:$0xff]   ;;  %v7184_v54 = vld [vmem:[%s7087_s10 + $0x38] sm:$0x1] }
  0x20   : > { %6312 = vmatpush3.bf16.msra.mxu0 %v6833_v9  ;;  %6121 = vmatprep.subr.bf16.mxu1 %v6834_v10  ;;  %9079 = vst [vmem:[#allocation2_spill] sm:$0xff] %v7150_v8  ;;  %v7154_v9 = vsel %vm7119_vm2, %v2156_v63, %v2160_v47  ;;  %v271_v13 = vrot.slane %v270_v4, 4  ;;  %v280_v14 = vor.u32 %v279_v5, %v275_v0  ;;  %v285_v15 = vrot.slane %v283_v6, 5  ;;  %v6846_v61 = vld [vmem:[%s9046_s1 + $0x10] sm:$0xff]  }
  0x21   : > { %6313 = vmatprep.subr.bf16.mxu0 %v6835_v11  ;;  %9080 = vst [vmem:[#allocation3_spill] sm:$0xff] %v7154_v9  ;;  %v5563_v12 = vcombine.low %v7150_v8, %v7154_v9  ;;  %v2174_v28 = vrot.slane %v2172_v19, 5  ;;  %v2184_v34 = vrot.slane %v2182_v21, 5  ;;  %v290_v40 = vrot.slane %v288_v31, 4  ;;  %v179_v4 = vld [vmem:[%s7087_s10 + $0x34] sm:$0xf] }
  0x22   : > { %v276_v22 = vsel %vm7119_vm2, %v271_v13, %v275_v0  ;;  %v297_v41 = vshll.u32 %v177_v27, 16  ;;  %v301_v45 = vshrl.u32 %v177_v27, 16  ;;  %v307_v46 = vshll.u32 %v222_v30, 16 }
  0x23   : > { %6122 = vmatpush3.bf16.msra.mxu1 %v6834_v10  ;;  %v2163_v10 = vshrl.u32 %v5502_v60, 16  ;;  %6319 = vmatprep.mubr.bf16.mxu0 %v5563_v12  ;;  %v2190_v55 = vshll.u32 %v5505_v37, 16  ;;  %v2196_v58 = vshll.u32 %v7171_v42, 16  ;;  %v2200_v59 = vshrl.u32 %v7171_v42, 16  ;;  %v223_v12 = vld [vmem:[%s7087_s10 + $0x38] sm:$0x1] }
  0x24   : > { %6314 = vmatpush3.bf16.msra.mxu0 %v6835_v11  ;;  %6123 = vmatprep.subr.bf16.mxu1 %v6836_v25  ;;  %v2166_v11 = vshll.u32 %v5502_v60, 16  ;;  %v299_v49 = vrot.slane %v297_v41, 5  ;;  %v303_v53 = vrot.slane %v301_v45, 4  ;;  %v178_v60 = vld [vmem:[%s7087_s10 + $0x30] sm:$0xf]  ;;  %v321_v21 = vshll.u32 %v179_v4, 16 }
  0x25   : > { %6315 = vmatprep.subr.bf16.mxu0 %v6837_v29  ;;  %v2165_v16 = vrot.slane %v2163_v10, 4  ;;  %v2192_v5 = vrot.slane %v2190_v55, 5  ;;  %v2198_v6 = vrot.slane %v2196_v58, 5  ;;  %v2202_v10 = vrot.slane %v2200_v59, 4  ;;  %v7225_v41 = vld [vmem:[%s7087_s10 + $0x48] sm:$0x1] }
  0x26   : > { %v2168_v17 = vrot.slane %v2166_v11, 5  ;;  %v304_v0 = vor.u32 %v303_v53, %v299_v49  ;;  %v2206_v11 = vshll.u32 %v7184_v54, 16  ;;  %v6852_v45 = vld [vmem:[%s9046_s1 + $0x20] sm:$0xff]  }
  0x27   : > { %6124 = vmatpush3.bf16.msra.mxu1 %v6836_v25  ;;  %v281_v25 = vrot.slane %v280_v14, 4  ;;  %v2203_v19 = vor.u32 %v2202_v10, %v2198_v6 }
  0x28   : > { %6316 = vmatpush3.bf16.msra.mxu0 %v6837_v29  ;;  %6125 = vmatprep.subr.bf16.mxu1 %v6838_v35  ;;  %v2169_v26 = vor.u32 %v2168_v17, %v2165_v16  ;;  %v2178_v29 = vrot.slane %v2176_v20, 4  ;;  %v305_v14 = vrot.slane %v304_v0, 4  ;;  %v315_v16 = vshll.u32 %v178_v60, 16  ;;  %v6844_v17 = vld [vmem:[%s9046_s1 + $0x150] sm:$0xff]  }
  0x29   : > { %6317 = vmatprep.subr.bf16.mxu0 %v6839_v50  ;;  %v286_v32 = vsel %vm7119_vm2, %v281_v25, %v285_v15  ;;  %v312_v15 = vshrl.u32 %v178_v60, 16  ;;  %v2208_v20 = vrot.slane %v2206_v11, 5 }
  0x2a   : > { %v2170_v33 = vrot.slane %v2169_v26, 4  ;;  %v5324_v38 = vcombine.low %v276_v22, %v286_v32  ;;  %v2179_v39 = vor.u32 %v2178_v29, %v2174_v28  ;;  %v5508_v22 = vld [vmem:[%s7087_s10 + $0x40] sm:$0xf]  ;;  %v317_v27 = vrot.slane %v315_v16, 5  ;;  %v7211_v29 = vld [vmem:[%s7087_s10 + $0x44] sm:$0xf] }
  0x2b   : > { %6126 = vmatpush3.bf16.msra.mxu1 %v6838_v35  ;;  %v291_v35 = vshll.u32 %v176_v18, 16  ;;  %v314_v26 = vrot.slane %v312_v15, 4  ;;  %v2204_v32 = vrot.slane %v2203_v19, 4  ;;  %v2224_v60 = vshrl.u32 %v7211_v29, 16  ;;  %v6856_v19 = vld [vmem:[%s9046_s1 + $0x30] sm:$0xff]  }
  0x2c   : > { %6318 = vmatpush3.bf16.msra.mxu0 %v6839_v50  ;;  %6159 = vmatprep.subr.bf16.mxu1 %v6840_v1  ;;  %v7178_v47 = vsel %vm7119_vm2, %v2170_v33, %v2174_v28  ;;  %v2180_v48 = vrot.slane %v2179_v39, 4  ;;  %v2187_v50 = vshrl.u32 %v5505_v37, 16  ;;  %v325_v28 = vshrl.u32 %v179_v4, 16 }
  0x2d   : > { %6351 = vmatprep.subr.bf16.mxu0 %v7143_v3  ;;  %v293_v44 = vrot.slane %v291_v35, 5  ;;  %9081 = vst [vmem:[#allocation4_spill] sm:$0xff] %v7178_v47  ;;  %v323_v33 = vrot.slane %v321_v21, 5  ;;  %v331_v37 = vshll.u32 %v223_v12, 16  ;;  %v2226_v10 = vrot.slane %v2224_v60, 4 }
  0x2e   : > { %6128 = vmatmul.mubr.bf16.vlgmr.msra.gmra.mrb[0].mxu1 %v5324_v38  ;;  %v7188_v56 = vsel %vm7119_vm2, %v2180_v48, %v2184_v34  ;;  %v2189_v57 = vrot.slane %v2187_v50, 4  ;;  %v318_v34 = vor.u32 %v317_v27, %v314_v26  ;;  %v327_v35 = vrot.slane %v325_v28, 4  ;;  %v180_v50 = vld [vmem:[%s7087_s10 + $0x40] sm:$0xf]  ;;  %v7256_v26 = vld [vmem:[%s7087_s10 + $0x54] sm:$0xf] }
  0x2f   : > { %6160 = vmatpush3.bf16.msra.mxu1 %v6840_v1  ;;  %v294_v52 = vor.u32 %v293_v44, %v290_v40  ;;  %9082 = vst [vmem:[#allocation5_spill] sm:$0xff] %v7188_v56  ;;  %v5564_v62 = vcombine.low %v7178_v47, %v7188_v56  ;;  %v309_v1 = vrot.slane %v307_v46, 5  ;;  %v2211_v38 = vshrl.u32 %v5508_v22, 16  ;;  %v6848_v27 = vld [vmem:[%s9046_s1 + $0x168] sm:$0xff]   ;;  %v5761_v47 = vld [vmem:[%s7087_s10 + $0xc0] sm:$0xf] }
  0x30   : > { %6161 = vmatprep.subr.bf16.mxu1 %v6843_v43  ;;  %v2193_v18 = vor.u32 %v2192_v5, %v2189_v57  ;;  %v7222_v40 = vsel %vm7119_vm2, %v2204_v32, %v2208_v20  ;;  %v2220_v44 = vshll.u32 %v7211_v29, 16  ;;  %v319_v48 = vrot.slane %v318_v34, 4  ;;  %v181_v57 = vld [vmem:[%s7087_s10 + $0x44] sm:$0xf]  ;;  %v7266_v34 = vld [vmem:[%s7087_s10 + $0x58] sm:$0x1] }
  0x31   : > { %v295_v63 = vrot.slane %v294_v52, 4  ;;  %6320 = vmatmul.mubr.bf16.vlgmr.msra.gmra.mrb[0].mxu0 %v5564_v62  ;;  %v310_v25 = vsel %vm7119_vm2, %v305_v14, %v309_v1  ;;  %9084 = vst [vmem:[#allocation7_spill] sm:$0xff] %v7222_v40  ;;  %v333_v52 = vrot.slane %v331_v37, 5  ;;  %v2213_v53 = vrot.slane %v2211_v38, 4  ;;  %v224_v62 = vld [vmem:[%s7087_s10 + $0x48] sm:$0x1] }
  0x32   : > { %6352 = vmatpush3.bf16.msra.mxu0 %v7143_v3  ;;  %v6849_v3 = vld [vmem:[%s9046_s1 + $0x18] sm:$0xff]   ;;  %v2194_v31 = vrot.slane %v2193_v18, 4  ;;  %v324_v58 = vsel %vm7119_vm2, %v319_v48, %v323_v33  ;;  %v2222_v59 = vrot.slane %v2220_v44, 5  ;;  %v336_v4 = vshrl.u32 %v180_v50, 16  ;;  %v5511_v14 = vld [vmem:[%s7087_s10 + $0x50] sm:$0xf] }
  0x33   : > { %v300_v13 = vsel %vm7119_vm2, %v295_v63, %v299_v49  ;;  %6162 = vmatpush3.bf16.msra.mxu1 %v6843_v43  ;;  %6353 = vmatprep.subr.bf16.mxu0 %v6842_v51  ;;  %v2214_v43 = vshll.u32 %v5508_v22, 16  ;;  %v6845_v49 = vld [vmem:[%s9046_s1 + $0x158] sm:$0xff]   ;;  %v6847_v63 = vld [vmem:[%s9046_s1 + $0x160] sm:$0xff]   ;;  %v339_v5 = vshll.u32 %v180_v50, 16  ;;  %v345_v12 = vshll.u32 %v181_v57, 16 }
  0x34   : > { %6163 = vmatprep.subr.bf16.mxu1 %v6846_v61  ;;  %v5325_v30 = vcombine.low %v300_v13, %v310_v25  ;;  %v7218_v39 = vsel %vm7119_vm2, %v2194_v31, %v2198_v6  ;;  %v6854_v6 = vld [vmem:[%s9046_s1 + $0x28] sm:$0xff]   ;;  %v349_v13 = vshrl.u32 %v181_v57, 16  ;;  %v338_v18 = vrot.slane %v336_v4, 4 }
  0x35   : > { %9083 = vst [vmem:[#allocation6_spill] sm:$0xff] %v7218_v39  ;;  %v5565_v46 = vcombine.low %v7218_v39, %v7222_v40  ;;  %v2216_v55 = vrot.slane %v2214_v43, 5  ;;  %v2227_v21 = vor.u32 %v2226_v10, %v2222_v59  ;;  %v347_v22 = vrot.slane %v345_v12, 5  ;;  %v5736_v39 = vld [vmem:[%s7087_s10 + $0x38] sm:$0x1] }
  0x36   : > { %6354 = vmatpush3.bf16.msra.mxu0 %v6842_v51  ;;  %6131 = vmatprep.mubr.bf16.mxu1 %v5325_v30  ;;  %v328_v51 = vor.u32 %v327_v35, %v323_v33  ;;  %v351_v25 = vrot.slane %v349_v13, 4  ;;  %v2235_v30 = vshrl.u32 %v5511_v14, 16  ;;  %v2238_v35 = vshll.u32 %v5511_v14, 16  ;;  %v7292_v14 = vld [vmem:[%s7087_s10 + $0x64] sm:$0xf] }
  0x37   : > { %6164 = vmatpush3.bf16.msra.mxu1 %v6846_v61  ;;  %6355 = vmatprep.subr.bf16.mxu0 %v6844_v17  ;;  %v2230_v61 = vshll.u32 %v7225_v41, 16  ;;  %v2217_v1 = vor.u32 %v2216_v55, %v2213_v53  ;;  %v2228_v32 = vrot.slane %v2227_v21, 4  ;;  %v2244_v44 = vshll.u32 %v7256_v26, 16 }
  0x38   : > { %6165 = vmatprep.subr.bf16.mxu1 %v6849_v3  ;;  %6323 = vmatprep.mubr.bf16.mxu0 %v5565_v46  ;;  %v329_v0 = vrot.slane %v328_v51, 4  ;;  %v352_v33 = vor.u32 %v351_v25, %v347_v22  ;;  %v2237_v43 = vrot.slane %v2235_v30, 4  ;;  %v2248_v50 = vshrl.u32 %v7256_v26, 16  ;;  %v183_v51 = vld [vmem:[%s7087_s10 + $0x54] sm:$0xf] }
  0x39   : > { %v2232_v11 = vrot.slane %v2230_v61, 5  ;;  %v2218_v16 = vrot.slane %v2217_v1, 4  ;;  %v2246_v55 = vrot.slane %v2244_v44, 5  ;;  %v2254_v60 = vshll.u32 %v7266_v34, 16  ;;  %v225_v61 = vld [vmem:[%s7087_s10 + $0x58] sm:$0x1] }
  0x3a   : > { %6356 = vmatpush3.bf16.msra.mxu0 %v6844_v17  ;;  %v334_v15 = vsel %vm7119_vm2, %v329_v0, %v333_v52  ;;  %v341_v17 = vrot.slane %v339_v5, 5  ;;  %v353_v48 = vrot.slane %v352_v33, 4  ;;  %v6858_v0 = vld [vmem:[%s9046_s1 + $0x38] sm:$0xff]   ;;  %v369_v5 = vshll.u32 %v183_v51, 16  ;;  %v185_v44 = vld [vmem:[%s7087_s10 + $0x64] sm:$0xf] }
  0x3b   : > { %6166 = vmatpush3.bf16.msra.mxu1 %v6849_v3  ;;  %6357 = vmatprep.subr.bf16.mxu0 %v6845_v49  ;;  %v5326_v20 = vcombine.low %v324_v58, %v334_v15  ;;  %v355_v3 = vshll.u32 %v224_v62, 16  ;;  %v7263_v31 = vsel %vm7119_vm2, %v2218_v16, %v2222_v59  ;;  %v7272_v46 = vsel %vm7119_vm2, %v2228_v32, %v2232_v11  ;;  %v6850_v62 = vld [vmem:[%s9046_s1 + $0x170] sm:$0xff]   ;;  %v6862_v15 = vld [vmem:[%s9046_s1 + $0x80] sm:$0xff]   ;;  %v7305_v32 = vld [vmem:[%s7087_s10 + $0x68] sm:$0x1] }
  0x3c   : > { %6167 = vmatprep.subr.bf16.mxu1 %v6852_v45  ;;  %v342_v28 = vor.u32 %v341_v17, %v338_v18  ;;  %9085 = vst [vmem:[#allocation8_spill] sm:$0xff] %v7263_v31  ;;  %9086 = vst [vmem:[#allocation9_spill] sm:$0xff] %v7272_v46  ;;  %v5566_v52 = vcombine.low %v7263_v31, %v7272_v46  ;;  %v2250_v59 = vrot.slane %v2248_v50, 4  ;;  %v2256_v12 = vrot.slane %v2254_v60, 5  ;;  %v5737_v46 = vld [vmem:[%s7087_s10 + $0x40] sm:$0xf] }
  0x3d   : > { %6132 = vmatmul.mubr.bf16.gmra.mrb[4].mxu1 %v5326_v20  ;;  %v357_v38 = vrot.slane %v355_v3, 5  ;;  %v373_v13 = vshrl.u32 %v183_v51, 16  ;;  %v371_v17 = vrot.slane %v369_v5, 5  ;;  %v379_v20 = vshll.u32 %v225_v61, 16 }
  0x3e   : > { %6358 = vmatpush3.bf16.msra.mxu0 %v6845_v49  ;;  %v343_v37 = vrot.slane %v342_v28, 4  ;;  %v2240_v49 = vrot.slane %v2238_v35, 5  ;;  %v2251_v11 = vor.u32 %v2250_v59, %v2246_v55  ;;  %v6851_v28 = vld [vmem:[%s9046_s1 + $0x178] sm:$0xff]   ;;  %v226_v59 = vld [vmem:[%s7087_s10 + $0x68] sm:$0x1] }
  0x3f   : > { %6168 = vmatpush3.bf16.msra.mxu1 %v6852_v45  ;;  %6359 = vmatprep.subr.bf16.mxu0 %v6847_v63  ;;  %v182_v45 = vld [vmem:[%s7087_s10 + $0x50] sm:$0xf]  ;;  %v358_v57 = vsel %vm7119_vm2, %v353_v48, %v357_v38  ;;  %v375_v25 = vrot.slane %v373_v13, 4  ;;  %v381_v30 = vrot.slane %v379_v20, 5 }
  0x40   : > { %6169 = vmatprep.subr.bf16.mxu1 %v6854_v6  ;;  %v348_v53 = vsel %vm7119_vm2, %v343_v37, %v347_v22  ;;  %v2241_v58 = vor.u32 %v2240_v49, %v2237_v43  ;;  %6324 = vmatmul.mubr.bf16.gmra.mrb[4].mxu0 %v5566_v52  ;;  %v360_v1 = vshrl.u32 %v182_v45, 16  ;;  %v363_v4 = vshll.u32 %v182_v45, 16  ;;  %v7317_v45 = vld [vmem:[%s9046_s1 + $0x180] sm:$0xff]  }
  0x41   : > { %v2252_v22 = vrot.slane %v2251_v11, 4  ;;  %v376_v37 = vor.u32 %v375_v25, %v371_v17  ;;  %v2268_v43 = vshll.u32 %v7292_v14, 16 }
  0x42   : > { %6360 = vmatpush3.bf16.msra.mxu0 %v6847_v63  ;;  %v5327_v63 = vcombine.low %v348_v53, %v358_v57  ;;  %v2242_v10 = vrot.slane %v2241_v58, 4  ;;  %v362_v16 = vrot.slane %v360_v1, 4  ;;  %v365_v18 = vrot.slane %v363_v4, 5  ;;  %v5517_v4 = vld [vmem:[%s7087_s10 + $0x70] sm:$0xf] }
  0x43   : > { %6170 = vmatpush3.bf16.msra.mxu1 %v6854_v6  ;;  %6361 = vmatprep.subr.bf16.mxu0 %v6848_v27  ;;  %v5514_v6 = vld [vmem:[%s7087_s10 + $0x60] sm:$0xf]  ;;  %v7310_v35 = vsel %vm7119_vm2, %v2252_v22, %v2256_v12  ;;  %v377_v51 = vrot.slane %v376_v37, 4  ;;  %v2270_v52 = vrot.slane %v2268_v43, 5  ;;  %v2272_v53 = vshrl.u32 %v7292_v14, 16 }
  0x44   : > { %6171 = vmatprep.subr.bf16.mxu1 %v6856_v19  ;;  %6135 = vmatprep.mubr.bf16.mxu1 %v5327_v63  ;;  %v7299_v21 = vsel %vm7119_vm2, %v2242_v10, %v2246_v55  ;;  %v366_v3 = vor.u32 %v365_v18, %v362_v16  ;;  %v2262_v33 = vshll.u32 %v5514_v6, 16  ;;  %9088 = vst [vmem:[#allocation11_spill] sm:$0xff] %v7310_v35  ;;  %v2278_v55 = vshll.u32 %v7305_v32, 16  ;;  %v7330_v18 = vld [vmem:[%s7087_s10 + $0x74] sm:$0xf] }
  0x45   : > { %9087 = vst [vmem:[#allocation10_spill] sm:$0xff] %v7299_v21  ;;  %v5567_v48 = vcombine.low %v7299_v21, %v7310_v35  ;;  %v393_v1 = vshll.u32 %v185_v44, 16  ;;  %v403_v16 = vshll.u32 %v226_v59, 16  ;;  %v7335_v22 = vld [vmem:[%s7087_s10 + $0x78] sm:$0x1]  ;;  %v2283_v25 = vshrl.u32 %v5517_v4, 16 }
  0x46   : > { %6362 = vmatpush3.bf16.msra.mxu0 %v6848_v27  ;;  %v184_v27 = vld [vmem:[%s7087_s10 + $0x60] sm:$0xf]  ;;  %v367_v49 = vrot.slane %v366_v3, 4  ;;  %v2264_v50 = vrot.slane %v2262_v33, 5  ;;  %v2280_v63 = vrot.slane %v2278_v55, 5 }
  0x47   : > { %6172 = vmatpush3.bf16.msra.mxu1 %v6856_v19  ;;  %v2259_v19 = vshrl.u32 %v5514_v6, 16  ;;  %6363 = vmatprep.subr.bf16.mxu0 %v6850_v62  ;;  %v384_v60 = vshrl.u32 %v184_v27, 16  ;;  %v387_v61 = vshll.u32 %v184_v27, 16  ;;  %v395_v13 = vrot.slane %v393_v1, 5  ;;  %v186_v27 = vld [vmem:[%s7087_s10 + $0x70] sm:$0xf] }
  0x48   : > { %6173 = vmatprep.subr.bf16.mxu1 %v6858_v0  ;;  %6327 = vmatprep.mubr.bf16.mxu0 %v5567_v48  ;;  %v372_v57 = vsel %vm7119_vm2, %v367_v49, %v371_v17  ;;  %v2945_v17 = vrot.slane %v7103_v24, 5  ;;  %v405_v33 = vrot.slane %v403_v16, 5  ;;  %v227_v59 = vld [vmem:[%s7087_s10 + $0x78] sm:$0x1]  ;;  %v408_v1 = vshrl.u32 %v186_v27, 16 }
  0x49   : > { %v2261_v38 = vrot.slane %v2259_v19, 4  ;;  %v386_v10 = vrot.slane %v384_v60, 4  ;;  %v389_v11 = vrot.slane %v387_v61, 5  ;;  %v2286_v19 = vshll.u32 %v5517_v4, 16  ;;  %v6970_v35 = vld [vmem:[%s7087_s10 + $0x88] sm:$0x1] }
  0x4a   : > { %6364 = vmatpush3.bf16.msra.mxu0 %v6850_v62  ;;  %v382_v62 = vsel %vm7119_vm2, %v377_v51, %v381_v30  ;;  %v2302_v51 = vshll.u32 %v7335_v22, 16  ;;  %v411_v4 = vshll.u32 %v186_v27, 16  ;;  %v410_v16 = vrot.slane %v408_v1, 4 }
  0x4b   : > { %6174 = vmatpush3.bf16.msra.mxu1 %v6858_v0  ;;  %6365 = vmatprep.subr.bf16.mxu0 %v6851_v28  ;;  %v2265_v58 = vor.u32 %v2264_v50, %v2261_v38  ;;  %v2274_v0 = vrot.slane %v2272_v53, 4  ;;  %v5328_v5 = vcombine.low %v372_v57, %v382_v62  ;;  %v390_v20 = vor.u32 %v389_v11, %v386_v10 }
  0x4c   : > { %6207 = vmatprep.subr.bf16.mxu1 %v6862_v15  ;;  %v397_v15 = vshrl.u32 %v185_v44, 16  ;;  %v2285_v38 = vrot.slane %v2283_v25, 4  ;;  %v2288_v43 = vrot.slane %v2286_v19, 5  ;;  %v2292_v44 = vshll.u32 %v7330_v18, 16  ;;  %v7360_v25 = vld [vmem:[%s7087_s10 + $0x84] sm:$0xf] }
  0x4d   : > { %v2266_v6 = vrot.slane %v2265_v58, 4  ;;  %v2275_v12 = vor.u32 %v2274_v0, %v2270_v52  ;;  %6136 = vmatmul.mubr.bf16.gmra.mrb[8].mxu1 %v5328_v5  ;;  %v391_v37 = vrot.slane %v390_v20, 4  ;;  %v2296_v50 = vshrl.u32 %v7330_v18, 16 }
  0x4e   : > { %6366 = vmatpush3.bf16.msra.mxu0 %v6851_v28  ;;  %v399_v30 = vrot.slane %v397_v15, 4  ;;  %v2949_v53 = vrot.slane %v7138_v2, 5  ;;  %v2289_v58 = vor.u32 %v2288_v43, %v2285_v38  ;;  %v2294_v61 = vrot.slane %v2292_v44, 5 }
  0x4f   : > { %6399 = vmatprep.subr.bf16.mxu0 %v7317_v45  ;;  %v7339_v28 = vsel %vm7119_vm2, %v2266_v6, %v2270_v52  ;;  %v2276_v3 = vrot.slane %v2275_v12, 4  ;;  %v187_v52 = vld [vmem:[%s7087_s10 + $0x74] sm:$0xf]  ;;  %v396_v57 = vsel %vm7119_vm2, %v391_v37, %v395_v13  ;;  %v2298_v62 = vrot.slane %v2296_v50, 4 }
  0x50   : > { %9089 = vst [vmem:[#allocation12_spill] sm:$0xff] %v7339_v28  ;;  %v400_v49 = vor.u32 %v399_v30, %v395_v13  ;;  %v2304_v0 = vrot.slane %v2302_v51, 5  ;;  %v417_v5 = vshll.u32 %v187_v52, 16  ;;  %v421_v11 = vshrl.u32 %v187_v52, 16  ;;  %v5520_v13 = vld [vmem:[%s7087_s10 + $0x80] sm:$0xf] }
  0x51   : > { %v7345_v48 = vsel %vm7119_vm2, %v2276_v3, %v2280_v63  ;;  %v2290_v63 = vrot.slane %v2289_v58, 4  ;;  %v2299_v10 = vor.u32 %v2298_v62, %v2294_v61  ;;  %v427_v12 = vshll.u32 %v227_v59, 16 }
  0x52   : > { %9090 = vst [vmem:[#allocation13_spill] sm:$0xff] %v7345_v48  ;;  %v5568_v55 = vcombine.low %v7339_v28, %v7345_v48  ;;  %v401_v60 = vrot.slane %v400_v49, 4  ;;  %v413_v20 = vrot.slane %v411_v4, 5  ;;  %v419_v30 = vrot.slane %v417_v5, 5  ;;  %v7370_v49 = vld [vmem:[%s7087_s10 + $0x80] sm:$0xf] }
  0x53   : > { %v7364_v19 = vsel %vm7119_vm2, %v2290_v63, %v2294_v61  ;;  %v2300_v3 = vrot.slane %v2299_v10, 4  ;;  %v423_v27 = vrot.slane %v421_v11, 4  ;;  %v429_v38 = vrot.slane %v427_v12, 5  ;;  %v7382_v61 = vld [vmem:[%s7087_s10 + $0x84] sm:$0xf] }
  0x54   : > { %6328 = vmatmul.mubr.bf16.gmra.mrb[8].mxu0 %v5568_v55  ;;  %v406_v6 = vsel %vm7119_vm2, %v401_v60, %v405_v33  ;;  %9091 = vst [vmem:[#allocation14_spill] sm:$0xff] %v7364_v19  ;;  %v7367_v33 = vld [vmem:[%s7087_s10 + $0x88] sm:$0x1]  ;;  %v414_v37 = vor.u32 %v413_v20, %v410_v16  ;;  %v2307_v43 = vshrl.u32 %v5520_v13, 16  ;;  %v2310_v44 = vshll.u32 %v5520_v13, 16 }
  0x55   : > { %v5329_v15 = vcombine.low %v396_v57, %v406_v6  ;;  %v7374_v50 = vsel %vm7119_vm2, %v2300_v3, %v2304_v0  ;;  %v424_v51 = vor.u32 %v423_v27, %v419_v30  ;;  %v2316_v52 = vshll.u32 %v7360_v25, 16  ;;  %v5587_v20 = vld [vmem:[%s7087_s10 + $0x10] sm:$0xe] }
  0x56   : > { %9092 = vst [vmem:[#allocation15_spill] sm:$0xff] %v7374_v50  ;;  %v2320_v55 = vshrl.u32 %v7360_v25, 16  ;;  %v2952_v57 = vrot.slane %v7146_v7, 5  ;;  %v5569_v58 = vcombine.low %v7364_v19, %v7374_v50  ;;  %v415_v59 = vrot.slane %v414_v37, 4  ;;  %v6855_v7 = vld [vmem:[%s9046_s1 + $0x188] sm:$0xff]  }
  0x57   : > { %6139 = vmatprep.mubr.bf16.mxu1 %v5329_v15  ;;  %v2309_v60 = vrot.slane %v2307_v43, 4  ;;  %v425_v62 = vrot.slane %v424_v51, 4  ;;  %v2312_v63 = vrot.slane %v2310_v44, 5  ;;  %v2318_v0 = vrot.slane %v2316_v52, 5  ;;  %v228_v15 = vld [vmem:[%s7087_s10 + $0x88] sm:$0x1] }
  0x58   : > { %v2322_v1 = vrot.slane %v2320_v55, 4  ;;  %6331 = vmatprep.mubr.bf16.mxu0 %v5569_v58  ;;  %v420_v4 = vsel %vm7119_vm2, %v415_v59, %v419_v30  ;;  %v2326_v5 = vshll.u32 %v7367_v33, 16  ;;  %v432_v6 = vshrl.u32 %v7370_v49, 16  ;;  %v7395_v43 = vld [vmem:[%s7087_s10 + $0x90] sm:$0xf] }
  0x59   : > { %v435_v10 = vshll.u32 %v7370_v49, 16  ;;  %v430_v11 = vsel %vm7119_vm2, %v425_v62, %v429_v38  ;;  %v2313_v12 = vor.u32 %v2312_v63, %v2309_v60  ;;  %v441_v16 = vshll.u32 %v7382_v61, 16  ;;  %v1227_v28 = vld [vmem:[%s7087_s10 + $0x90] sm:$0xe] }
  0x5a   : > { %v2323_v13 = vor.u32 %v2322_v1, %v2318_v0  ;;  %v5330_v3 = vcombine.low %v420_v4, %v430_v11  ;;  %v2328_v27 = vrot.slane %v2326_v5, 5  ;;  %v434_v37 = vrot.slane %v432_v6, 4  ;;  %v7414_v5 = vld [vmem:[%s7087_s10 + $0x94] sm:$0xf] }
  0x5b   : > { %v437_v30 = vrot.slane %v435_v10, 5  ;;  %v2314_v44 = vrot.slane %v2313_v12, 4  ;;  %v443_v52 = vrot.slane %v441_v16, 5  ;;  %v445_v55 = vshrl.u32 %v7382_v61, 16  ;;  %v229_v12 = vld [vmem:[%s7087_s10 + $0x98] sm:$0x1] }
  0x5c   : > { %v2324_v51 = vrot.slane %v2323_v13, 4  ;;  %6140 = vmatmul.mubr.bf16.gmra.mrb[12].mxu1 %v5330_v3  ;;  %v451_v58 = vshll.u32 %v228_v15, 16  ;;  %v5603_v60 = vrot.slane %v5587_v20, 9  ;;  %v2942_v62 = vrot.slane %v7100_v23, 5  ;;  %v5588_v20 = vld [vmem:[%s7087_s10 + $0x20] sm:$0xe] }
  0x5d   : > { %v438_v38 = vor.u32 %v437_v30, %v434_v37  ;;  %v7407_v63 = vsel %vm7119_vm2, %v2314_v44, %v2318_v0  ;;  %v447_v4 = vrot.slane %v445_v55, 4  ;;  %v456_v6 = vshrl.u32 %v7395_v43, 16 }
  0x5e   : > { %9095 = vst [vmem:[#allocation16_spill] sm:$0xff] %v7407_v63  ;;  %v7411_v1 = vsel %vm7119_vm2, %v2324_v51, %v2328_v27  ;;  %v2951_v10 = vrot.slane %v2949_v53, 4  ;;  %v453_v13 = vrot.slane %v451_v58, 5  ;;  %v2943_v15 = vsel %vm7400_vm5, %v5603_v60, %v2942_v62  ;;  %v7435_v58 = vld [vmem:[%s7087_s10 + $0xa0] sm:$0xf] }
  0x5f   : > { %9096 = vst [vmem:[#allocation17_spill] sm:$0xff] %v7411_v1  ;;  %v5570_v11 = vcombine.low %v7407_v63, %v7411_v1  ;;  %v439_v23 = vrot.slane %v438_v38, 4  ;;  %v448_v0 = vor.u32 %v447_v4, %v443_v52  ;;  %v2944_v16 = vrot.slane %v2942_v62, 4 }
  0x60   : > { %v458_v27 = vrot.slane %v456_v6, 4  ;;  %v459_v37 = vshll.u32 %v7395_v43, 16  ;;  %v465_v30 = vshll.u32 %v7414_v5, 16  ;;  %v469_v55 = vshrl.u32 %v7414_v5, 16  ;;  %v7438_v6 = vld [vmem:[%s7087_s10 + $0xa4] sm:$0xf] }
  0x61   : > { %6332 = vmatmul.mubr.bf16.gmra.mrb[12].mxu0 %v5570_v11  ;;  %v444_v3 = vsel %vm7119_vm2, %v439_v23, %v443_v52  ;;  %v449_v44 = vrot.slane %v448_v0, 4  ;;  %v2946_v51 = vsel %vm7400_vm5, %v2944_v16, %v2945_v17  ;;  %v475_v38 = vshll.u32 %v229_v12, 16  ;;  %v230_v12 = vld [vmem:[%s7087_s10 + $0xa8] sm:$0x1] }
  0x62   : > { %v5635_v60 = vcombine.low %v2943_v15, %v2946_v51  ;;  %v461_v52 = vrot.slane %v459_v37, 5  ;;  %v467_v62 = vrot.slane %v465_v30, 5  ;;  %v5604_v4 = vrot.slane %v5588_v20, 9 }
  0x63   : > { %v454_v11 = vsel %vm7119_vm2, %v449_v44, %v453_v13  ;;  %v471_v23 = vrot.slane %v469_v55, 4  ;;  %v477_v24 = vrot.slane %v475_v38, 5  ;;  %v2953_v17 = vsel %vm7400_vm5, %v2951_v10, %v2952_v57  ;;  %v5589_v13 = vld [vmem:[%s7087_s10 + $0x30] sm:$0xe] }
  0x64   : > { %v5331_v0 = vcombine.low %v444_v3, %v454_v11  ;;  %6367 = vmatprep.mubr.bf16.mxu0 %v5635_v60  ;;  %v462_v15 = vor.u32 %v461_v52, %v458_v27  ;;  %v2950_v16 = vsel %vm7400_vm5, %v5604_v4, %v2949_v53  ;;  %v480_v20 = vshrl.u32 %v7435_v58, 16  ;;  %v7460_v44 = vld [vmem:[%s7087_s10 + $0xb0] sm:$0xf]  ;;  %v7463_v52 = vld [vmem:[%s7087_s10 + $0xb4] sm:$0xf] }
  0x65   : > { %v472_v37 = vor.u32 %v471_v23, %v467_v62  ;;  %v5636_v57 = vcombine.low %v2950_v16, %v2953_v17  ;;  %v483_v10 = vshll.u32 %v7435_v58, 16  ;;  %v489_v3 = vshll.u32 %v7438_v6, 16 }
  0x66   : > { %6143 = vmatprep.mubr.bf16.mxu1 %v5331_v0  ;;  %v463_v2 = vrot.slane %v462_v15, 4  ;;  %v482_v27 = vrot.slane %v480_v20, 4  ;;  %v493_v53 = vshrl.u32 %v7438_v6, 16  ;;  %v499_v30 = vshll.u32 %v230_v12, 16  ;;  %v231_v0 = vld [vmem:[%s7087_s10 + $0xb8] sm:$0x1] }
  0x67   : > { %v473_v51 = vrot.slane %v472_v37, 4  ;;  %v485_v55 = vrot.slane %v483_v10, 5  ;;  %v491_v38 = vrot.slane %v489_v3, 5  ;;  %v5605_v60 = vrot.slane %v5589_v13, 9  ;;  %v5590_v10 = vld [vmem:[%s7087_s10 + $0x40] sm:$0xe] }
  0x68   : > { %v468_v4 = vsel %vm7119_vm2, %v463_v2, %v467_v62  ;;  %v495_v11 = vrot.slane %v493_v53, 4  ;;  %v501_v23 = vrot.slane %v499_v30, 5  ;;  %v2956_v17 = vrot.slane %v7171_v42, 5  ;;  %v6857_v42 = vld [vmem:[%s9046_s1 + $0x190] sm:$0xff]   ;;  %v7483_v2 = vld [vmem:[%s7087_s10 + $0xc0] sm:$0xf] }
  0x69   : > { %6368 = vmatmul.mubr.bf16.vlgmr.msra.gmra.mrb[0].mxu0 %v5636_v57  ;;  %v478_v12 = vsel %vm7119_vm2, %v473_v51, %v477_v24  ;;  %v486_v15 = vor.u32 %v485_v55, %v482_v27  ;;  %v2959_v16 = vrot.slane %v7184_v54, 5  ;;  %v504_v20 = vshrl.u32 %v7460_v44, 16 }
  0x6a   : > { %6400 = vmatpush3.bf16.msra.mxu0 %v7317_v45  ;;  %v5332_v13 = vcombine.low %v468_v4, %v478_v12  ;;  %v496_v37 = vor.u32 %v495_v11, %v491_v38  ;;  %v2957_v62 = vsel %vm7400_vm5, %v5605_v60, %v2956_v17  ;;  %v2958_v57 = vrot.slane %v2956_v17, 4  ;;  %v7491_v17 = vld [vmem:[%s7087_s10 + $0xc4] sm:$0xf] }
  0x6b   : > { %6401 = vmatprep.subr.bf16.mxu0 %v6855_v7  ;;  %v487_v24 = vrot.slane %v486_v15, 4  ;;  %v506_v45 = vrot.slane %v504_v20, 4  ;;  %v507_v3 = vshll.u32 %v7460_v44, 16  ;;  %v513_v54 = vshll.u32 %v7463_v52, 16 }
  0x6c   : > { %6144 = vmatmul.mubr.bf16.gmra.mrb[16].mxu1 %v5332_v13  ;;  %v497_v27 = vrot.slane %v496_v37, 4  ;;  %v2960_v53 = vsel %vm7400_vm5, %v2958_v57, %v2959_v16  ;;  %v517_v30 = vshrl.u32 %v7463_v52, 16  ;;  %v523_v51 = vshll.u32 %v231_v0, 16  ;;  %v6859_v0 = vld [vmem:[%s9046_s1 + $0x198] sm:$0xff]  }
  0x6d   : > { %v492_v55 = vsel %vm7119_vm2, %v487_v24, %v491_v38  ;;  %v5637_v60 = vcombine.low %v2957_v62, %v2960_v53  ;;  %v509_v4 = vrot.slane %v507_v3, 5  ;;  %v515_v11 = vrot.slane %v513_v54, 5  ;;  %v232_v62 = vld [vmem:[%s7087_s10 + $0xc8] sm:$0x1] }
  0x6e   : > { %6402 = vmatpush3.bf16.msra.mxu0 %v6855_v7  ;;  %v502_v12 = vsel %vm7119_vm2, %v497_v27, %v501_v23  ;;  %v519_v15 = vrot.slane %v517_v30, 4  ;;  %v525_v20 = vrot.slane %v523_v51, 5  ;;  %v5606_v13 = vrot.slane %v5590_v10, 9 }
  0x6f   : > { %6403 = vmatprep.subr.bf16.mxu0 %v6857_v42  ;;  %v5333_v38 = vcombine.low %v492_v55, %v502_v12  ;;  %6371 = vmatprep.mubr.bf16.mxu0 %v5637_v60  ;;  %v510_v16 = vor.u32 %v509_v4, %v506_v45  ;;  %v2963_v37 = vrot.slane %v7211_v29, 5  ;;  %v2966_v7 = vrot.slane %v7225_v41, 5  ;;  %v5591_v29 = vld [vmem:[%s7087_s10 + $0x50] sm:$0xe]  ;;  %v6863_v55 = vld [vmem:[%s9046_s1 + $0x1a0] sm:$0xff]  }
  0x70   : > { %v520_v57 = vor.u32 %v519_v15, %v515_v11  ;;  %v528_v23 = vshrl.u32 %v7483_v2, 16  ;;  %v531_v24 = vshll.u32 %v7483_v2, 16  ;;  %v537_v10 = vshll.u32 %v7491_v17, 16 }
  0x71   : > { %6147 = vmatprep.mubr.bf16.mxu1 %v5333_v38  ;;  %v511_v3 = vrot.slane %v510_v16, 4  ;;  %v2964_v54 = vsel %vm7400_vm5, %v5606_v13, %v2963_v37  ;;  %v2965_v27 = vrot.slane %v2963_v37, 4  ;;  %v541_v45 = vshrl.u32 %v7491_v17, 16 }
  0x72   : > { %6404 = vmatpush3.bf16.msra.mxu0 %v6857_v42  ;;  %v521_v41 = vrot.slane %v520_v57, 4  ;;  %v530_v53 = vrot.slane %v528_v23, 4  ;;  %v533_v30 = vrot.slane %v531_v24, 5  ;;  %v539_v51 = vrot.slane %v537_v10, 5  ;;  %v7516_v42 = vld [vmem:[%s7087_s10 + $0xd0] sm:$0xf] }
  0x73   : > { %6405 = vmatprep.subr.bf16.mxu0 %v6859_v0  ;;  %v516_v60 = vsel %vm7119_vm2, %v511_v3, %v515_v11  ;;  %v2967_v4 = vsel %vm7400_vm5, %v2965_v27, %v2966_v7  ;;  %v543_v12 = vrot.slane %v541_v45, 4  ;;  %v547_v15 = vshll.u32 %v232_v62, 16  ;;  %v7521_v57 = vld [vmem:[%s7087_s10 + $0xd4] sm:$0xf]  ;;  %v233_v3 = vld [vmem:[%s7087_s10 + $0xd8] sm:$0x1] }
  0x74   : > { %v526_v13 = vsel %vm7119_vm2, %v521_v41, %v525_v20  ;;  %v5638_v38 = vcombine.low %v2964_v54, %v2967_v4  ;;  %v534_v16 = vor.u32 %v533_v30, %v530_v53  ;;  %v5607_v37 = vrot.slane %v5591_v29, 9  ;;  %v6867_v7 = vld [vmem:[%s9046_s1 + $0x1a8] sm:$0xff]  }
  0x75   : > { %v5334_v23 = vcombine.low %v516_v60, %v526_v13  ;;  %v544_v24 = vor.u32 %v543_v12, %v539_v51  ;;  %v549_v10 = vrot.slane %v547_v15, 5  ;;  %v2970_v11 = vrot.slane %v7256_v26, 5  ;;  %v5592_v60 = vld [vmem:[%s7087_s10 + $0x60] sm:$0xe] }
  0x76   : > { %6406 = vmatpush3.bf16.msra.mxu0 %v6859_v0  ;;  %v535_v62 = vrot.slane %v534_v16, 4  ;;  %v2973_v20 = vrot.slane %v7266_v34, 5  ;;  %v552_v54 = vshrl.u32 %v7516_v42, 16  ;;  %v555_v27 = vshll.u32 %v7516_v42, 16  ;;  %v7546_v16 = vld [vmem:[%s7087_s10 + $0xe4] sm:$0xf] }
  0x77   : > { %6372 = vmatmul.mubr.bf16.gmra.mrb[4].mxu0 %v5638_v38  ;;  %6407 = vmatprep.subr.bf16.mxu0 %v6863_v55  ;;  %v545_v26 = vrot.slane %v544_v24, 4  ;;  %v2971_v0 = vsel %vm7400_vm5, %v5607_v37, %v2970_v11  ;;  %v2972_v45 = vrot.slane %v2970_v11, 4  ;;  %v561_v29 = vshll.u32 %v7521_v57, 16  ;;  %v7543_v38 = vld [vmem:[%s7087_s10 + $0xe0] sm:$0xf] }
  0x78   : > { %6148 = vmatmul.mubr.bf16.gmra.mrb[20].mxu1 %v5334_v23  ;;  %v540_v41 = vsel %vm7119_vm2, %v535_v62, %v539_v51  ;;  %v554_v53 = vrot.slane %v552_v54, 4  ;;  %v557_v34 = vrot.slane %v555_v27, 5  ;;  %v565_v30 = vshrl.u32 %v7521_v57, 16  ;;  %v234_v54 = vld [vmem:[%s7087_s10 + $0xe8] sm:$0x1] }
  0x79   : > { %v550_v4 = vsel %vm7119_vm2, %v545_v26, %v549_v10  ;;  %v2974_v12 = vsel %vm7400_vm5, %v2972_v45, %v2973_v20  ;;  %v563_v15 = vrot.slane %v561_v29, 5  ;;  %v571_v13 = vshll.u32 %v233_v3, 16  ;;  %v6871_v10 = vld [vmem:[%s9046_s1 + $0x1b0] sm:$0xff]  }
  0x7a   : > { %6408 = vmatpush3.bf16.msra.mxu0 %v6863_v55  ;;  %v5335_v51 = vcombine.low %v540_v41, %v550_v4  ;;  %v5639_v37 = vcombine.low %v2971_v0, %v2974_v12  ;;  %v558_v23 = vor.u32 %v557_v34, %v554_v53  ;;  %v567_v24 = vrot.slane %v565_v30, 4  ;;  %v5593_v45 = vld [vmem:[%s7087_s10 + $0x70] sm:$0xe]  ;;  %v6875_v12 = vld [vmem:[%s9046_s1 + $0x1b8] sm:$0xff]  }
  0x7b   : > { %6409 = vmatprep.subr.bf16.mxu0 %v6867_v7  ;;  %v573_v11 = vrot.slane %v571_v13, 5  ;;  %v5608_v62 = vrot.slane %v5592_v60, 9  ;;  %v2977_v3 = vrot.slane %v7292_v14, 5  ;;  %v2980_v20 = vrot.slane %v7305_v32, 5  ;;  %v7562_v34 = vld [vmem:[%s7087_s10 + $0xf0] sm:$0xf] }
  0x7c   : > { %6151 = vmatprep.mubr.bf16.mxu1 %v5335_v51  ;;  %6375 = vmatprep.mubr.bf16.mxu0 %v5639_v37  ;;  %v559_v55 = vrot.slane %v558_v23, 4  ;;  %v568_v27 = vor.u32 %v567_v24, %v563_v15  ;;  %v576_v26 = vshrl.u32 %v7543_v38, 16  ;;  %v579_v0 = vshll.u32 %v7543_v38, 16 }
  0x7d   : > { %v2978_v29 = vsel %vm7400_vm5, %v5608_v62, %v2977_v3  ;;  %v2979_v41 = vrot.slane %v2977_v3, 4  ;;  %v585_v53 = vshll.u32 %v7546_v16, 16  ;;  %v589_v14 = vshrl.u32 %v7546_v16, 16  ;;  %v7574_v3 = vld [vmem:[%s7087_s10 + $0xf4] sm:$0xf] }
  0x7e   : > { %6410 = vmatpush3.bf16.msra.mxu0 %v6867_v7  ;;  %v564_v32 = vsel %vm7119_vm2, %v559_v55, %v563_v15  ;;  %v569_v30 = vrot.slane %v568_v27, 4  ;;  %v578_v60 = vrot.slane %v576_v26, 4  ;;  %v581_v4 = vrot.slane %v579_v0, 5  ;;  %v7579_v55 = vld [vmem:[%s9046_s1 + $0x1c0] sm:$0xff]   ;;  %v235_v0 = vld [vmem:[%s7087_s10 + $0xf8] sm:$0x1] }
  0x7f   : > { %6411 = vmatprep.subr.bf16.mxu0 %v6871_v10  ;;  %v2981_v13 = vsel %vm7400_vm5, %v2979_v41, %v2980_v20  ;;  %v587_v51 = vrot.slane %v585_v53, 5  ;;  %v591_v37 = vrot.slane %v589_v14, 4  ;;  %v595_v23 = vshll.u32 %v234_v54, 16  ;;  %v5594_v53 = vld [vmem:[%s7087_s10 + $0x80] sm:$0xe] }
  0x80   : > { %v574_v7 = vsel %vm7119_vm2, %v569_v30, %v573_v11  ;;  %v5640_v24 = vcombine.low %v2978_v29, %v2981_v13  ;;  %v582_v15 = vor.u32 %v581_v4, %v578_v60  ;;  %v5609_v62 = vrot.slane %v5593_v45, 9  ;;  %v5595_v60 = vld [vmem:[%s7087_s10 + $0x90] sm:$0xe] }
  0x81   : > { %v5336_v27 = vcombine.low %v564_v32, %v574_v7  ;;  %v592_v26 = vor.u32 %v591_v37, %v587_v51  ;;  %v597_v20 = vrot.slane %v595_v23, 5  ;;  %v2984_v54 = vrot.slane %v7330_v18, 5  ;;  %v5525_v23 = vld [vmem:[%s7087_s10 + $0x98] sm:$0x1] }
  0x82   : > { %6412 = vmatpush3.bf16.msra.mxu0 %v6871_v10  ;;  %v583_v11 = vrot.slane %v582_v15, 4  ;;  %v2987_v45 = vrot.slane %v7335_v22, 5  ;;  %v600_v29 = vshrl.u32 %v7562_v34, 16  ;;  %v603_v41 = vshll.u32 %v7562_v34, 16  ;;  %v5524_v10 = vld [vmem:[%s7087_s10 + $0x94] sm:$0xf] }
  0x83   : > { %6376 = vmatmul.mubr.bf16.gmra.mrb[8].mxu0 %v5640_v24  ;;  %6413 = vmatprep.subr.bf16.mxu0 %v6875_v12  ;;  %v593_v14 = vrot.slane %v592_v26, 4  ;;  %v2985_v32 = vsel %vm7400_vm5, %v5609_v62, %v2984_v54  ;;  %v2986_v18 = vrot.slane %v2984_v54, 4  ;;  %v609_v30 = vshll.u32 %v7574_v3, 16 }
  0x84   : > { %6152 = vmatmul.mubr.bf16.gmra.mrb[24].mxu1 %v5336_v27  ;;  %v588_v22 = vsel %vm7119_vm2, %v583_v11, %v587_v51  ;;  %v602_v4 = vrot.slane %v600_v29, 4  ;;  %v605_v13 = vrot.slane %v603_v41, 5  ;;  %v613_v37 = vshrl.u32 %v7574_v3, 16  ;;  %v5596_v41 = vld [vmem:[%s7087_s10 + $0xa0] sm:$0xe] }
  0x85   : > { %v598_v7 = vsel %vm7119_vm2, %v593_v14, %v597_v20  ;;  %v2988_v24 = vsel %vm7400_vm5, %v2986_v18, %v2987_v45  ;;  %v611_v15 = vrot.slane %v609_v30, 5  ;;  %v619_v62 = vshll.u32 %v235_v0, 16 }
  0x86   : > { %6414 = vmatpush3.bf16.msra.mxu0 %v6875_v12  ;;  %v5337_v27 = vcombine.low %v588_v22, %v598_v7  ;;  %v5641_v26 = vcombine.low %v2985_v32, %v2988_v24  ;;  %v606_v54 = vor.u32 %v605_v13, %v602_v4  ;;  %v615_v50 = vrot.slane %v613_v37, 4  ;;  %v6944_v13 = vld [vmem:[%s7087_s10] sm:$0xf]  ;;  %v7621_v37 = vld [vmem:[%s7087_s10 + $0x4] sm:$0xf] }
  0x87   : > { %6447 = vmatprep.subr.bf16.mxu0 %v7579_v55  ;;  %v621_v51 = vrot.slane %v619_v62, 5  ;;  %v5610_v11 = vrot.slane %v5594_v53, 9  ;;  %v2991_v29 = vrot.slane %v7360_v25, 5  ;;  %v2994_v20 = vrot.slane %v7367_v33, 5  ;;  %v7607_v25 = vld [vmem:[%s7087_s10 + $0xa4] sm:$0xf] }
  0x88   : > { %6155 = vmatprep.mubr.bf16.mxu1 %v5337_v27  ;;  %6379 = vmatprep.mubr.bf16.mxu0 %v5641_v26  ;;  %v607_v12 = vrot.slane %v606_v54, 4  ;;  %v616_v0 = vor.u32 %v615_v50, %v611_v15  ;;  %v5611_v45 = vrot.slane %v5595_v60, 9  ;;  %v2998_v14 = vrot.slane %v5524_v10, 5  ;;  %v7610_v33 = vld [vmem:[%s7087_s10 + $0xa8] sm:$0x1] }
  0x89   : > { %v2992_v32 = vsel %vm7400_vm5, %v5610_v11, %v2991_v29  ;;  %v2993_v53 = vrot.slane %v2991_v29, 4  ;;  %v3001_v18 = vrot.slane %v5525_v23, 5  ;;  %v5530_v60 = vld [vmem:[%s7087_s10 + $0xb4] sm:$0xf]  ;;  %v5347_v23 = vcombine.low %v6944_v13, %v7621_v37  ;;  %v5531_v7 = vld [vmem:[%s7087_s10 + $0xb8] sm:$0x1] }
  0x8a   : > { %v612_v30 = vsel %vm7119_vm2, %v607_v12, %v611_v15  ;;  %v617_v22 = vrot.slane %v616_v0, 4  ;;  %v2999_v50 = vsel %vm7400_vm5, %v5611_v45, %v2998_v14  ;;  %v3000_v10 = vrot.slane %v2998_v14, 4  ;;  %v5597_v24 = vld [vmem:[%s7087_s10 + $0xb0] sm:$0xe]  ;;  %v5533_v54 = vld [vmem:[%s7087_s10 + $0xc4] sm:$0xf] }
  0x8b   : > { %v2995_v4 = vsel %vm7400_vm5, %v2993_v53, %v2994_v20  ;;  %v5612_v26 = vrot.slane %v5596_v41, 9  ;;  %v5534_v20 = vld [vmem:[%s7087_s10 + $0xc8] sm:$0x1]  ;;  %v5598_v12 = vld [vmem:[%s7087_s10 + $0xc0] sm:$0xe]  ;;  %v3005_v0 = vrot.slane %v7607_v25, 5 }
  0x8c   : > { %v622_v15 = vsel %vm7119_vm2, %v617_v22, %v621_v51  ;;  %v5642_v62 = vcombine.low %v2992_v32, %v2995_v4  ;;  %v3002_v27 = vsel %vm7400_vm5, %v3000_v10, %v3001_v18  ;;  %v3008_v45 = vrot.slane %v7610_v33, 5  ;;  %v5599_v51 = vld [vmem:[%s7087_s10 + $0xd0] sm:$0xe]  ;;  %v5536_v53 = vld [vmem:[%s7087_s10 + $0xd4] sm:$0xf] }
  0x8d   : > { %v5338_v11 = vcombine.low %v612_v30, %v622_v15  ;;  %v5643_v29 = vcombine.low %v2999_v50, %v3002_v27  ;;  %v5613_v14 = vrot.slane %v5597_v24, 9  ;;  %v3012_v32 = vrot.slane %v5530_v60, 5  ;;  %v5537_v18 = vld [vmem:[%s7087_s10 + $0xd8] sm:$0x1]  ;;  %v5539_v13 = vld [vmem:[%s7087_s10 + $0xe4] sm:$0xf] }
  0x8e   : > { %6380 = vmatmul.mubr.bf16.gmra.mrb[12].mxu0 %v5642_v62  ;;  %v3015_v41 = vrot.slane %v5531_v7, 5  ;;  %v3006_v30 = vsel %vm7400_vm5, %v5612_v26, %v3005_v0  ;;  %v3007_v22 = vrot.slane %v3005_v0, 4  ;;  %v3019_v4 = vrot.slane %v5533_v54, 5  ;;  %v6946_v15 = vld [vmem:[%s7087_s10 + $0x10] sm:$0xf]  ;;  %v6866_v54 = vld [vmem:[%s9046_s1 + $0x88] sm:$0xff]  }
  0x8f   : > { %6156 = vmatmul.mubr.bf16.gmra.mrb[28].mxu1 %v5338_v11  ;;  %6383 = vmatprep.mubr.bf16.mxu0 %v5643_v29  ;;  %v3013_v50 = vsel %vm7400_vm5, %v5613_v14, %v3012_v32  ;;  %v3014_v10 = vrot.slane %v3012_v32, 4  ;;  %v7645_v62 = vld [vmem:[%s7087_s10 + $0x14] sm:$0xf]  ;;  %v5614_v7 = vrot.slane %v5598_v12, 9  ;;  %v3022_v24 = vrot.slane %v5534_v20, 5 }
  0x90   : > { %6175 = vmatprep.mubr.bf16.mxu1 %v5347_v23  ;;  %v5348_v60 = vcombine.low %v6946_v15, %v7645_v62  ;;  %v3009_v23 = vsel %vm7400_vm5, %v3007_v22, %v3008_v45  ;;  %v3021_v11 = vrot.slane %v3019_v4, 4  ;;  %v5615_v29 = vrot.slane %v5599_v51, 9  ;;  %v6948_v0 = vld [vmem:[%s7087_s10 + $0x20] sm:$0xf]  ;;  %v7657_v14 = vld [vmem:[%s7087_s10 + $0x24] sm:$0xf] }
  0x91   : > { %v5644_v27 = vcombine.low %v3006_v30, %v3009_v23  ;;  %v3016_v26 = vsel %vm7400_vm5, %v3014_v10, %v3015_v41  ;;  %v5349_v32 = vcombine.low %v6948_v0, %v7657_v14  ;;  %v3026_v45 = vrot.slane %v5536_v53, 5  ;;  %v5600_v20 = vld [vmem:[%s7087_s10 + $0xe0] sm:$0xe]  ;;  %v5542_v30 = vld [vmem:[%s7087_s10 + $0xf4] sm:$0xf] }
  0x92   : > { %v5645_v15 = vcombine.low %v3013_v50, %v3016_v26  ;;  %v3029_v12 = vrot.slane %v5537_v18, 5  ;;  %v3033_v22 = vrot.slane %v5539_v13, 5  ;;  %v3020_v51 = vsel %vm7400_vm5, %v5614_v7, %v3019_v4  ;;  %v5540_v23 = vld [vmem:[%s7087_s10 + $0xe8] sm:$0x1]  ;;  %v6950_v53 = vld [vmem:[%s9046_s1 + $0x80] sm:$0xff]  }
  0x93   : > { %v3028_v41 = vrot.slane %v3026_v45, 4  ;;  %v3023_v10 = vsel %vm7400_vm5, %v3021_v11, %v3022_v24  ;;  %v3027_v18 = vsel %vm7400_vm5, %v5615_v29, %v3026_v45  ;;  %v5543_v4 = vld [vmem:[%s7087_s10 + $0xf8] sm:$0x1]  ;;  %v3040_v13 = vrot.slane %v5542_v30, 5  ;;  %v5601_v24 = vld [vmem:[%s7087_s10 + $0xf0] sm:$0xe] }
  0x94   : > { %v5616_v7 = vrot.slane %v5600_v20, 9  ;;  %v3035_v26 = vrot.slane %v3033_v22, 4  ;;  %v3036_v11 = vrot.slane %v5540_v23, 5  ;;  %v5545_v0 = vld [vmem:[%s7087_s10 + $0x104] sm:$0xf]  ;;  %v1330_v21 = vrot.slane %v6970_v35, 5 }
  0x95   : > { %v3030_v50 = vsel %vm7400_vm5, %v3028_v41, %v3029_v12  ;;  %v7682_v29 = vld [vmem:[%s7087_s10 + $0x34] sm:$0xf]  ;;  %v6953_v12 = vld [vmem:[%s7087_s10 + $0x40] sm:$0xf]  ;;  %v7687_v30 = vld [vmem:[%s7087_s10 + $0x44] sm:$0xf] }
  0x96   : > { %6384 = vmatmul.mubr.bf16.gmra.mrb[16].mxu0 %v5644_v27  ;;  %v5646_v27 = vcombine.low %v3020_v51, %v3023_v10  ;;  %v5647_v45 = vcombine.low %v3027_v18, %v3030_v50  ;;  %v5351_v41 = vcombine.low %v6953_v12, %v7687_v30  ;;  %v3042_v20 = vrot.slane %v3040_v13, 4  ;;  %v6874_v10 = vld [vmem:[%s9046_s1 + $0x98] sm:$0xff]   ;;  %v5602_v18 = vld [vmem:[%s7087_s10 + $0x100] sm:$0xe]  ;;  %v7713_v12 = vld [vmem:[%s7087_s10 + $0x64] sm:$0xf] }
  0x97   : > { %6176 = vmatmul.mubr.bf16.vlgmr.msra.gmra.mrb[0].mxu1 %v5348_v60  ;;  %6387 = vmatprep.mubr.bf16.mxu0 %v5645_v15  ;;  %v6870_v60 = vld [vmem:[%s9046_s1 + $0x90] sm:$0xff]   ;;  %v3043_v51 = vrot.slane %v5543_v4, 5  ;;  %v3037_v23 = vsel %vm7400_vm5, %v3035_v26, %v3036_v11  ;;  %v3047_v50 = vrot.slane %v5545_v0, 5  ;;  %v5618_v26 = vrot.slane %v5602_v18, 9 }
  0x98   : > { %6208 = vmatpush3.bf16.msra.mxu1 %v6950_v53  ;;  %6179 = vmatprep.mubr.bf16.mxu1 %v5349_v32  ;;  %v6951_v32 = vld [vmem:[%s7087_s10 + $0x30] sm:$0xf]  ;;  %v5617_v53 = vrot.slane %v5601_v24, 9  ;;  %v7708_v0 = vld [vmem:[%s7087_s10 + $0x54] sm:$0xf] }
  0x99   : > { %6209 = vmatprep.subr.bf16.mxu1 %v6866_v54  ;;  %v5350_v15 = vcombine.low %v6951_v32, %v7682_v29  ;;  %v3044_v24 = vsel %vm7400_vm5, %v3042_v20, %v3043_v51  ;;  %v6955_v11 = vld [vmem:[%s7087_s10 + $0x50] sm:$0xf]  ;;  %v3048_v20 = vsel %vm7400_vm5, %v5618_v26, %v3047_v50  ;;  %v6897_v26 = vld [vmem:[%s9046_s1 + $0xb8] sm:$0xff]  }
  0x9a   : > { %v3041_v4 = vsel %vm7400_vm5, %v5617_v53, %v3040_v13  ;;  %v5352_v32 = vcombine.low %v6955_v11, %v7708_v0  ;;  %v6957_v13 = vld [vmem:[%s7087_s10 + $0x60] sm:$0xf]  ;;  %v6885_v53 = vld [vmem:[%s9046_s1 + $0xa8] sm:$0xff]   ;;  %v2374_v11 = vshll.u32 %v7610_v33, 16  ;;  %v1278_v33 = vrot.slane %v7645_v62, 5 }
  0x9b   : > { %v5357_v62 = vcombine.low %v7435_v58, %v7438_v6 }
  0x9c   : > { %6210 = vmatpush3.bf16.msra.mxu1 %v6866_v54  ;;  %v3034_v54 = vsel %vm7400_vm5, %v5616_v7, %v3033_v22  ;;  %v6879_v22 = vld [vmem:[%s9046_s1 + $0xa0] sm:$0xff]  }
  0x9d   : > { %6211 = vmatprep.subr.bf16.mxu1 %v6870_v60  ;;  %v5648_v7 = vcombine.low %v3034_v54, %v3037_v23  ;;  %v2368_v54 = vshrl.u32 %v7607_v25, 16  ;;  %v6891_v23 = vld [vmem:[%s9046_s1 + $0xb0] sm:$0xff]  }
  0x9e   : > { %6388 = vmatmul.mubr.bf16.gmra.mrb[20].mxu0 %v5646_v27  ;;  %v5546_v27 = vld [vmem:[%s7087_s10 + $0x108] sm:$0x1] }
  0x9f   : > { %6180 = vmatmul.mubr.bf16.gmra.mrb[4].mxu1 %v5350_v15  ;;  %6391 = vmatprep.mubr.bf16.mxu0 %v5647_v45  ;;  %v3049_v15 = vrot.slane %v3047_v50, 4  ;;  %v3050_v45 = vrot.slane %v5546_v27, 5  ;;  %v6877_v27 = vld [vmem:[%s7087_s10 + $0x20] sm:$0xff]  }
  0xa0   : > { %6183 = vmatprep.mubr.bf16.mxu1 %v5351_v41  ;;  %6212 = vmatpush3.bf16.msra.mxu1 %v6870_v60  ;;  %v5649_v60 = vcombine.low %v3041_v4, %v3044_v24  ;;  %v5353_v41 = vcombine.low %v6957_v13, %v7713_v12  ;;  %v6959_v4 = vld [vmem:[%s7087_s10 + $0x70] sm:$0xf]  ;;  %v7730_v24 = vld [vmem:[%s7087_s10 + $0x74] sm:$0xf] }
  0xa1   : > { %6213 = vmatprep.subr.bf16.mxu1 %v6874_v10  ;;  %v3051_v51 = vsel %vm7400_vm5, %v3049_v15, %v3050_v45  ;;  %v5354_v50 = vcombine.low %v6959_v4, %v7730_v24  ;;  %v1219_v15 = vld [vmem:[%s7087_s10 + $0x10] sm:$0xe]  ;;  %v6961_v45 = vld [vmem:[%s7087_s10 + $0x8] sm:$0x1] }
  0xa2   : > { %v5650_v18 = vcombine.low %v3048_v20, %v3051_v51  ;;  %v1274_v13 = vrot.slane %v6961_v45, 5  ;;  %v6880_v20 = vld [vmem:[%s7087_s10 + $0x30] sm:$0xff]   ;;  %v7755_v51 = vrot.slane %v2374_v11, 5  ;;  %v5372_v4 = vrot.slane %v1219_v15, 9 }
  0xa3   : > { %v5358_v11 = vcombine.low %v7460_v44, %v7463_v52  ;;  %v1222_v52 = vld [vmem:[%s7087_s10 + $0x40] sm:$0xe] }
  0xa4   : > { %6214 = vmatpush3.bf16.msra.mxu1 %v6874_v10  ;;  %v2364_v10 = vshll.u32 %v7607_v25, 16  ;;  %v2370_v25 = vrot.slane %v2368_v54, 4  ;;  %9098 = vst [vmem:[#allocation19_spill] sm:$0xff] %v7755_v51  ;;  %v6883_v54 = vld [vmem:[%s7087_s10 + $0x40] sm:$0xff]   ;;  %v7794_v15 = vsel %vm7400_vm5, %v5372_v4, %v1278_v33 }
  0xa5   : > { %6215 = vmatprep.subr.bf16.mxu1 %v6879_v22 }
  0xa6   : > { %6392 = vmatmul.mubr.bf16.gmra.mrb[24].mxu0 %v5648_v7  ;;  %v7736_v7 = vrot.slane %v2364_v10, 5  ;;  %v5356_v10 = vcombine.low %v7395_v43, %v7414_v5  ;;  %v1280_v5 = vrot.slane %v1278_v33, 4 }
  0xa7   : > { %6184 = vmatmul.mubr.bf16.gmra.mrb[8].mxu1 %v5352_v32  ;;  %6395 = vmatprep.mubr.bf16.mxu0 %v5649_v60  ;;  %v1271_v60 = vrot.slane %v7621_v37, 5 }
  0xa8   : > { %6187 = vmatprep.mubr.bf16.mxu1 %v5353_v41  ;;  %6216 = vmatpush3.bf16.msra.mxu1 %v6879_v22  ;;  %v5355_v22 = vcombine.low %v7370_v49, %v7382_v61  ;;  %9097 = vst [vmem:[#allocation18_spill] sm:$0xff] %v7736_v7  ;;  %v1218_v49 = vld [vmem:[%s7087_s10] sm:$0xe]  ;;  %v2371_v32 = vor.u32 %v2370_v25, %v7736_v7  ;;  %v6962_v41 = vld [vmem:[%s7087_s10 + $0x18] sm:$0x1]  ;;  %v1292_v25 = vrot.slane %v7682_v29, 5 }
  0xa9   : > { %6217 = vmatprep.subr.bf16.mxu1 %v6885_v53  ;;  %v7746_v61 = vld [vmem:[%s9046_s1 + $0xc0] sm:$0xff]   ;;  %v5371_v37 = vrot.slane %v1218_v49, 9  ;;  %v1273_v43 = vrot.slane %v1271_v60, 4  ;;  %v6963_v49 = vld [vmem:[%s7087_s10 + $0x28] sm:$0x1] }
  0xaa   : > { %v1288_v44 = vrot.slane %v6963_v49, 5  ;;  %v1294_v33 = vrot.slane %v1292_v25, 4 }
  0xac   : > { %6218 = vmatpush3.bf16.msra.mxu1 %v6885_v53  ;;  %v1281_v53 = vrot.slane %v6962_v41, 5 }
  0xad   : > { %6219 = vmatprep.subr.bf16.mxu1 %v6891_v23 }
  0xae   : > { %6396 = vmatmul.mubr.bf16.gmra.mrb[28].mxu0 %v5650_v18  ;;  %v1220_v18 = vld [vmem:[%s7087_s10 + $0x20] sm:$0xe] }
  0xaf   : > { %6188 = vmatmul.mubr.bf16.gmra.mrb[12].mxu1 %v5354_v50  ;;  %6415 = vmatprep.mubr.bf16.mxu0 %v6877_v27  ;;  %v1285_v50 = vrot.slane %v7657_v14, 5  ;;  %v1221_v27 = vld [vmem:[%s7087_s10 + $0x30] sm:$0xe]  ;;  %v5373_v6 = vrot.slane %v1220_v18, 9  ;;  %v1299_v14 = vrot.slane %v7687_v30, 5 }
  0xb0   : > { %6191 = vmatprep.mubr.bf16.mxu1 %v5355_v22  ;;  %6220 = vmatpush3.bf16.msra.mxu1 %v6891_v23  ;;  %v6887_v23 = vld [vmem:[%s9046_s1 + $0x1c8] sm:$0xff]   ;;  %v7768_v22 = vrot.slane %v2371_v32, 4  ;;  %v1306_v32 = vrot.slane %v7708_v0, 5  ;;  %v6893_v30 = vld [vmem:[%s9046_s1 + $0x1d0] sm:$0xff]   ;;  %v5374_v41 = vrot.slane %v1221_v27, 9  ;;  %v5375_v27 = vrot.slane %v1222_v52, 9 }
  0xb1   : > { %6221 = vmatprep.subr.bf16.mxu1 %v6897_v26  ;;  %v1287_v45 = vrot.slane %v1285_v50, 4  ;;  %v6886_v0 = vld [vmem:[%s7087_s10 + $0x50] sm:$0xff]   ;;  %v7812_v4 = vsel %vm7400_vm5, %v5373_v6, %v1285_v50  ;;  %v1301_v49 = vrot.slane %v1299_v14, 4  ;;  %v1224_v52 = vld [vmem:[%s7087_s10 + $0x60] sm:$0xe]  ;;  %v9055_v50 = vrot.slane %v7730_v24, 5 }
  0xb2   : > { %9099 = vst [vmem:[#allocation20_spill] sm:$0xff] %v7768_v22  ;;  %v1308_v29 = vrot.slane %v1306_v32, 4  ;;  %v8244_v22 = vld [vmem:[%s7087_s10 + $0xb4] sm:$0xf] }
  0xb3   : > { %v7824_v6 = vsel %vm7400_vm5, %v1287_v45, %v1288_v44  ;;  %v7845_v45 = vsel %vm7400_vm5, %v5375_v27, %v1299_v14  ;;  %v6967_v14 = vld [vmem:[%s7087_s10 + $0x68] sm:$0x1]  ;;  %v5377_v27 = vrot.slane %v1224_v52, 9  ;;  %9123 = vst [vmem:[#allocation29_spill] sm:$0xff] %v8244_v22 }
  0xb4   : > { %6222 = vmatpush3.bf16.msra.mxu1 %v6897_v26  ;;  %v6966_v26 = vld [vmem:[%s7087_s10 + $0x58] sm:$0x1] }
  0xb5   : > { %6255 = vmatprep.subr.bf16.mxu1 %v7746_v61  ;;  %v1309_v58 = vrot.slane %v6966_v26, 5  ;;  %v6899_v26 = vld [vmem:[%s9046_s1 + $0x1d8] sm:$0xff]  }
  0xb6   : > { %6416 = vmatmul.mubr.bf16.vlgmr.msra.gmra.mrb[0].mxu0 %v6880_v20  ;;  %v1223_v20 = vld [vmem:[%s7087_s10 + $0x50] sm:$0xe] }
  0xb7   : > { %6192 = vmatmul.mubr.bf16.gmra.mrb[16].mxu1 %v5356_v10  ;;  %6448 = vmatpush3.bf16.msra.mxu0 %v7579_v55  ;;  %v7790_v55 = vsel %vm7400_vm5, %v5371_v37, %v1271_v60  ;;  %v6889_v10 = vld [vmem:[%s7087_s10 + $0x60] sm:$0xff]   ;;  %v7805_v60 = vsel %vm7400_vm5, %v1280_v5, %v1281_v53  ;;  %v6964_v37 = vld [vmem:[%s7087_s10 + $0x38] sm:$0x1]  ;;  %v5376_v5 = vrot.slane %v1223_v20, 9  ;;  %v7836_v20 = vsel %vm7400_vm5, %v5374_v41, %v1292_v25 }
  0xb8   : > { %6195 = vmatprep.mubr.bf16.mxu1 %v5357_v62  ;;  %6419 = vmatprep.mubr.bf16.mxu0 %v6883_v54  ;;  %v7801_v54 = vsel %vm7400_vm5, %v1273_v43, %v1274_v13  ;;  %v1295_v18 = vrot.slane %v6964_v37, 5  ;;  %v5731_v13 = vld [vmem:[%s7087_s10 + $0x20] sm:$0xf]  ;;  %v6965_v43 = vld [vmem:[%s7087_s10 + $0x48] sm:$0x1] }
  0xb9   : > { %6449 = vmatprep.subr.bf16.mxu0 %v6887_v23  ;;  %v1302_v53 = vrot.slane %v6965_v43, 5  ;;  %v5732_v37 = vld [vmem:[%s7087_s10 + $0x24] sm:$0xf]  ;;  %v7829_v43 = vld [vmem:[%s7087_s10 + $0x70] sm:$0xe]  ;;  %v3810_v62 = vshrl.u32 %v5731_v13, 16  ;;  %v7853_v41 = vsel %vm7400_vm5, %v5376_v5, %v1306_v32 }
  0xba   : > { %v3813_v44 = vshll.u32 %v5731_v13, 16  ;;  %v3819_v1 = vshll.u32 %v5732_v37, 16  ;;  %v3823_v19 = vshrl.u32 %v5732_v37, 16  ;;  %v5378_v32 = vrot.slane %v7829_v43, 9  ;;  %v7867_v13 = vld [vmem:[%s7087_s10 + $0x84] sm:$0xf] }
  0xbb   : > { %6450 = vmatpush3.bf16.msra.mxu0 %v6887_v23  ;;  %v1313_v23 = vrot.slane %v7713_v12, 5  ;;  %v7841_v12 = vsel %vm7400_vm5, %v1294_v33, %v1295_v18  ;;  %v7849_v25 = vsel %vm7400_vm5, %v1301_v49, %v1302_v53  ;;  %v1316_v33 = vrot.slane %v6967_v14, 5  ;;  %v5734_v18 = vld [vmem:[%s7087_s10 + $0x30] sm:$0xf]  ;;  %v6895_v53 = vld [vmem:[%s7087_s10 + $0x80] sm:$0xff]  }
  0xbc   : > { %6451 = vmatprep.subr.bf16.mxu0 %v6893_v30  ;;  %v6903_v5 = vld [vmem:[%s9046_s1 + $0x1e0] sm:$0xff]   ;;  %v3812_v37 = vrot.slane %v3810_v62, 4  ;;  %v3815_v52 = vrot.slane %v3813_v44, 5  ;;  %v5733_v43 = vld [vmem:[%s7087_s10 + $0x28] sm:$0x1]  ;;  %v7879_v14 = vrot.slane %v3819_v1, 5 }
  0xbd   : > { %v1315_v49 = vrot.slane %v1313_v23, 4  ;;  %v3837_v63 = vshll.u32 %v5734_v18, 16  ;;  %v6907_v1 = vld [vmem:[%s9046_s1 + $0x1e8] sm:$0xff]   ;;  %v1226_v44 = vld [vmem:[%s7087_s10 + $0x80] sm:$0xe] }
  0xbe   : > { %6420 = vmatmul.mubr.bf16.gmra.mrb[4].mxu0 %v6886_v0  ;;  %v7857_v0 = vsel %vm7400_vm5, %v1308_v29, %v1309_v58  ;;  %v5735_v29 = vld [vmem:[%s7087_s10 + $0x34] sm:$0xf]  ;;  %v3834_v58 = vshrl.u32 %v5734_v18, 16  ;;  %v9101_v18 = vrot.slane %v7867_v13, 5 }
  0xbf   : > { %6196 = vmatmul.mubr.bf16.gmra.mrb[20].mxu1 %v5358_v11  ;;  %6423 = vmatprep.mubr.bf16.mxu0 %v6889_v10  ;;  %v9100_v11 = vcombine.low %v7483_v2, %v7491_v17  ;;  %v6892_v10 = vld [vmem:[%s7087_s10 + $0x70] sm:$0xff]   ;;  %v1322_v2 = vrot.slane %v9055_v50, 4  ;;  %v6969_v17 = vld [vmem:[%s7087_s10 + $0x78] sm:$0x1]  ;;  %v3843_v50 = vshll.u32 %v5735_v29, 16 }
  0xc0   : > { %6452 = vmatpush3.bf16.msra.mxu0 %v6893_v30  ;;  %v1323_v30 = vrot.slane %v6969_v17, 5  ;;  %v3847_v17 = vshrl.u32 %v5735_v29, 16  ;;  %v1329_v48 = vrot.slane %v9101_v18, 4  ;;  %v7902_v29 = vsel %vm7400_vm5, %v1315_v49, %v1316_v33  ;;  %v6971_v62 = vld [vmem:[%s7087_s10 + $0x94] sm:$0xf] }
  0xc1   : > { %6199 = vmatprep.mubr.bf16.mxu1 %v9100_v11  ;;  %6453 = vmatprep.subr.bf16.mxu0 %v6899_v26  ;;  %v3825_v11 = vrot.slane %v3823_v19, 4  ;;  %v3829_v19 = vshll.u32 %v5733_v43, 16  ;;  %v1334_v40 = vrot.slane %v6971_v62, 5  ;;  %v3816_v18 = vor.u32 %v3815_v52, %v3812_v37  ;;  %v1228_v37 = vld [vmem:[%s7087_s10 + $0xa0] sm:$0xe] }
  0xc2   : > { %v7909_v31 = vrot.slane %v3834_v58, 4  ;;  %v9102_v33 = vcombine.low %v7516_v42, %v7521_v57  ;;  %v7924_v49 = vsel %vm7400_vm5, %v1322_v2, %v1323_v30  ;;  %v7926_v58 = vrot.slane %v3843_v50, 5  ;;  %v6898_v2 = vld [vmem:[%s7087_s10 + $0x90] sm:$0xff]  }
  0xc3   : > { %v3826_v35 = vor.u32 %v3825_v11, %v7879_v14  ;;  %v9104_v42 = vcombine.low %v7543_v38, %v7546_v16  ;;  %v5379_v57 = vrot.slane %v1226_v44, 9  ;;  %v3858_v52 = vshrl.u32 %v5737_v46, 16  ;;  %v6911_v50 = vld [vmem:[%s9046_s1 + $0x1f0] sm:$0xff]   ;;  %v6973_v16 = vld [vmem:[%s7087_s10 + $0x98] sm:$0x1] }
  0xc4   : > { %6454 = vmatpush3.bf16.msra.mxu0 %v6899_v26  ;;  %v7898_v26 = vsel %vm7400_vm5, %v5377_v27, %v1313_v23  ;;  %v7911_v23 = vrot.slane %v3837_v63, 5  ;;  %v9103_v27 = vrot.slane %v7730_v24, 5  ;;  %v3849_v63 = vrot.slane %v3847_v17, 4  ;;  %v6972_v24 = vld [vmem:[%s7087_s10 + $0xa4] sm:$0xf] }
  0xc5   : > { %6455 = vmatprep.subr.bf16.mxu0 %v6903_v5  ;;  %v3861_v43 = vshll.u32 %v5737_v46, 16  ;;  %v3831_v30 = vrot.slane %v3829_v19, 5  ;;  %v5380_v11 = vrot.slane %v1227_v28, 9  ;;  %v1336_v38 = vrot.slane %v1334_v40, 4  ;;  %v6974_v28 = vld [vmem:[%s7087_s10 + $0xa8] sm:$0x1] }
  0xc6   : > { %6424 = vmatmul.mubr.bf16.gmra.mrb[8].mxu0 %v6892_v10  ;;  %v7920_v10 = vsel %vm7400_vm5, %v5378_v32, %v9103_v27  ;;  %v5738_v32 = vld [vmem:[%s7087_s10 + $0x44] sm:$0xf]  ;;  %v3817_v17 = vrot.slane %v3816_v18, 4  ;;  %v3827_v62 = vrot.slane %v3826_v35, 4  ;;  %v3853_v44 = vshll.u32 %v5736_v39, 16  ;;  %v6915_v39 = vld [vmem:[%s9046_s1 + $0x1f8] sm:$0xff]  }
  0xc7   : > { %6200 = vmatmul.mubr.bf16.gmra.mrb[24].mxu1 %v9102_v33  ;;  %6427 = vmatprep.mubr.bf16.mxu0 %v6895_v53  ;;  %v1341_v53 = vrot.slane %v6972_v24, 5  ;;  %v5381_v33 = vrot.slane %v1228_v37, 9  ;;  %v5740_v27 = vld [vmem:[%s7087_s10 + $0x50] sm:$0xf]  ;;  %v3840_v46 = vor.u32 %v7911_v23, %v7909_v31  ;;  %v3850_v24 = vor.u32 %v3849_v63, %v7926_v58 }
  0xc8   : > { %6203 = vmatprep.mubr.bf16.mxu1 %v9104_v42  ;;  %6456 = vmatpush3.bf16.msra.mxu0 %v6903_v5  ;;  %v1337_v5 = vrot.slane %v6973_v16, 5  ;;  %v6900_v42 = vld [vmem:[%s7087_s10 + $0xa0] sm:$0xff]   ;;  %v3867_v9 = vshll.u32 %v5738_v32, 16  ;;  %v3871_v56 = vshrl.u32 %v5738_v32, 16  ;;  %v1344_v8 = vrot.slane %v6974_v28, 5 }
  0xc9   : > { %6457 = vmatprep.subr.bf16.mxu0 %v6907_v1  ;;  %v1343_v19 = vrot.slane %v1341_v53, 4  ;;  %v3860_v16 = vrot.slane %v3858_v52, 4  ;;  %v3863_v18 = vrot.slane %v3861_v43, 5  ;;  %v9105_v35 = vrot.slane %v7867_v13, 5  ;;  %v5742_v28 = vld [vmem:[%s7087_s10 + $0x58] sm:$0x1] }
  0xca   : > { %v3882_v23 = vshrl.u32 %v5740_v27, 16  ;;  %v3885_v63 = vshll.u32 %v5740_v27, 16  ;;  %v3822_v37 = vsel %vm7119_vm2, %v3817_v17, %v7879_v14  ;;  %v7963_v32 = vsel %vm7400_vm5, %v5380_v11, %v1334_v40  ;;  %v7981_v40 = vld [vmem:[%s9046_s1 + $0x200] sm:$0xff]  }
  0xcb   : > { %v7952_v31 = vsel %vm7400_vm5, %v5379_v57, %v9105_v35  ;;  %v7967_v13 = vsel %vm7400_vm5, %v1336_v38, %v1337_v5  ;;  %v7969_v57 = vrot.slane %v3853_v44, 5  ;;  %v9106_v52 = vcombine.low %v7562_v34, %v7574_v3  ;;  %v1229_v34 = vld [vmem:[%s7087_s10 + $0xb0] sm:$0xe] }
  0xcc   : > { %6458 = vmatpush3.bf16.msra.mxu0 %v6907_v1  ;;  %v7956_v1 = vsel %vm7400_vm5, %v1329_v48, %v1330_v21  ;;  %v5739_v21 = vld [vmem:[%s7087_s10 + $0x48] sm:$0x1]  ;;  %v5741_v48 = vld [vmem:[%s7087_s10 + $0x54] sm:$0xf]  ;;  %v3832_v14 = vsel %vm7119_vm2, %v3827_v62, %v3831_v30  ;;  %v7985_v43 = vsel %vm7400_vm5, %v5381_v33, %v1341_v53  ;;  %v3873_v11 = vrot.slane %v3871_v56, 4 }
  0xcd   : > { %6459 = vmatprep.subr.bf16.mxu0 %v6911_v50  ;;  %v9107_v3 = vcombine.low %v7790_v55, %v7801_v54  ;;  %v3841_v30 = vrot.slane %v3840_v46, 4  ;;  %v3851_v38 = vrot.slane %v3850_v24, 4  ;;  %v7995_v5 = vsel %vm7400_vm5, %v1343_v19, %v1344_v8  ;;  %v6902_v44 = vld [vmem:[%s7087_s10 + $0xb0] sm:$0xff]   ;;  %v6904_v55 = vld [vmem:[%s7087_s10 + $0xc0] sm:$0xff]  }
  0xce   : > { %6428 = vmatmul.mubr.bf16.gmra.mrb[12].mxu0 %v6898_v2  ;;  %v7987_v2 = vrot.slane %v3867_v9, 5  ;;  %v3864_v17 = vor.u32 %v3863_v18, %v3860_v16  ;;  %v3884_v53 = vrot.slane %v3882_v23, 4  ;;  %v3887_v9 = vrot.slane %v3885_v63, 5  ;;  %v6975_v24 = vld [vmem:[%s7087_s10 + $0xb4] sm:$0xf] }
  0xcf   : > { %6204 = vmatmul.mubr.bf16.gmra.mrb[28].mxu1 %v9106_v52  ;;  %6431 = vmatprep.mubr.bf16.mxu0 %v6900_v42  ;;  %v3891_v56 = vshll.u32 %v5741_v48, 16  ;;  %v3895_v62 = vshrl.u32 %v5741_v48, 16  ;;  %v8007_v27 = vcombine.low %v3822_v37, %v3832_v14  ;;  %v3877_v46 = vshll.u32 %v5739_v21, 16  ;;  %v5743_v16 = vld [vmem:[%s7087_s10 + $0x60] sm:$0xf]  ;;  %v6905_v48 = vld [vmem:[%s9046_s1 + $0xc8] sm:$0xff]  }
  0xd0   : > { %6223 = vmatprep.mubr.bf16.mxu1 %v9107_v3  ;;  %6460 = vmatpush3.bf16.msra.mxu0 %v6911_v50  ;;  %v3874_v42 = vor.u32 %v3873_v11, %v7987_v2  ;;  %v1348_v19 = vrot.slane %v6975_v24, 5  ;;  %v8014_v18 = vld [vmem:[%s7087_s10 + $0x64] sm:$0xf]  ;;  %v3846_v35 = vsel %vm7119_vm2, %v3841_v30, %v7926_v58  ;;  %v3856_v23 = vsel %vm7119_vm2, %v3851_v38, %v7969_v57  ;;  %v1230_v21 = vld [vmem:[%s7087_s10 + $0xc0] sm:$0xe]  ;;  %v6909_v38 = vld [vmem:[%s9046_s1 + $0xd0] sm:$0xff]  }
  0xd1   : > { %6461 = vmatprep.subr.bf16.mxu0 %v6915_v39  ;;  %v5382_v37 = vrot.slane %v1229_v34, 9  ;;  %v3888_v52 = vor.u32 %v3887_v9, %v3884_v53  ;;  %v8031_v58 = vrot.slane %v3891_v56, 5  ;;  %v3897_v14 = vrot.slane %v3895_v62, 4  ;;  %v6976_v56 = vld [vmem:[%s7087_s10 + $0xb8] sm:$0x1] }
  0xd2   : > { %v3906_v57 = vshrl.u32 %v5743_v16, 16  ;;  %v3909_v11 = vshll.u32 %v5743_v16, 16  ;;  %v3915_v34 = vshll.u32 %v8014_v18, 16  ;;  %v3919_v3 = vshrl.u32 %v8014_v18, 16  ;;  %v5746_v16 = vld [vmem:[%s7087_s10 + $0x70] sm:$0xf] }
  0xd3   : > { %v9108_v30 = vcombine.low %v7794_v15, %v7805_v60  ;;  %v8043_v53 = vrot.slane %v3877_v46, 5  ;;  %v1350_v9 = vrot.slane %v1348_v19, 4  ;;  %v1351_v62 = vrot.slane %v6976_v56, 5  ;;  %v6906_v60 = vld [vmem:[%s7087_s10 + $0xd0] sm:$0xff]  }
  0xd4   : > { %6462 = vmatpush3.bf16.msra.mxu0 %v6915_v39  ;;  %v8029_v39 = vrot.slane %v3864_v17, 4  ;;  %v8041_v17 = vrot.slane %v3874_v42, 4  ;;  %v9109_v15 = vcombine.low %v7812_v4, %v7824_v6  ;;  %v8058_v42 = vsel %vm7400_vm5, %v5382_v37, %v1348_v19  ;;  %v6977_v6 = vld [vmem:[%s7087_s10 + $0xc4] sm:$0xf]  ;;  %v8071_v19 = vld [vmem:[%s7087_s10 + $0x74] sm:$0xf] }
  0xd5   : > { %6495 = vmatprep.subr.bf16.mxu0 %v7981_v40  ;;  %v3901_v46 = vshll.u32 %v5742_v28, 16  ;;  %v5383_v24 = vrot.slane %v1230_v21, 9  ;;  %v8066_v56 = vrot.slane %v3888_v52, 4  ;;  %v3898_v4 = vor.u32 %v3897_v14, %v8031_v58  ;;  %9110 = vst [vmem:[#allocation21_spill] sm:$0xff] %v8071_v19  ;;  %v6979_v50 = vld [vmem:[%s7087_s10 + $0xd4] sm:$0xf] }
  0xd6   : > { %6432 = vmatmul.mubr.bf16.gmra.mrb[16].mxu0 %v6902_v44  ;;  %v8047_v44 = vld [vmem:[%s7087_s10 + $0x68] sm:$0x1]  ;;  %v3908_v28 = vrot.slane %v3906_v57, 4  ;;  %v8073_v37 = vrot.slane %v3915_v34, 5  ;;  %v3921_v21 = vrot.slane %v3919_v3, 4  ;;  %v3930_v52 = vshrl.u32 %v5746_v16, 16 }
  0xd7   : > { %6224 = vmatmul.mubr.bf16.vlgmr.msra.gmra.mrb[0].mxu1 %v9108_v30  ;;  %6435 = vmatprep.mubr.bf16.mxu0 %v6904_v55  ;;  %v8054_v55 = vcombine.low %v3846_v35, %v3856_v23  ;;  %v6908_v30 = vld [vmem:[%s7087_s10 + $0xe0] sm:$0xff]   ;;  %v1355_v35 = vrot.slane %v6977_v6, 5  ;;  %v3911_v23 = vrot.slane %v3909_v11, 5  ;;  %v3933_v14 = vshll.u32 %v5746_v16, 16  ;;  %v6978_v57 = vld [vmem:[%s7087_s10 + $0xc8] sm:$0x1] }
  0xd8   : > { %6256 = vmatpush3.bf16.msra.mxu1 %v7746_v61  ;;  %6227 = vmatprep.mubr.bf16.mxu1 %v9109_v15  ;;  %v3870_v61 = vsel %vm7119_vm2, %v8029_v39, %v7987_v2  ;;  %v6913_v15 = vld [vmem:[%s9046_s1 + $0xd8] sm:$0xff]   ;;  %v8080_v2 = vsel %vm7400_vm5, %v1350_v9, %v1351_v62  ;;  %v3925_v39 = vshll.u32 %v8047_v44, 16  ;;  %v3903_v6 = vrot.slane %v3901_v46, 5  ;;  %v8085_v34 = vld [vmem:[%s7087_s10 + $0xd0] sm:$0xe] }
  0xd9   : > { %6257 = vmatprep.subr.bf16.mxu1 %v6905_v48  ;;  %v1358_v11 = vrot.slane %v6978_v57, 5  ;;  %v3939_v3 = vshll.u32 %v8071_v19, 16  ;;  %v3943_v63 = vshrl.u32 %v8071_v19, 16  ;;  %v3880_v9 = vsel %vm7119_vm2, %v8041_v17, %v8043_v53  ;;  %v5749_v16 = vld [vmem:[%s7087_s10 + $0x80] sm:$0xf] }
  0xda   : > { %v3899_v62 = vrot.slane %v3898_v4, 4  ;;  %v1357_v46 = vrot.slane %v1355_v35, 4  ;;  %v3894_v57 = vsel %vm7119_vm2, %v8066_v56, %v8031_v58  ;;  %v3912_v33 = vor.u32 %v3911_v23, %v3908_v28  ;;  %v8105_v53 = vld [vmem:[%s7087_s10 + $0x84] sm:$0xf]  ;;  %v6910_v28 = vld [vmem:[%s7087_s10 + $0xf0] sm:$0xff]  }
  0xdb   : > { %v3922_v8 = vor.u32 %v3921_v21, %v8073_v37  ;;  %v1362_v17 = vrot.slane %v6979_v50, 5  ;;  %9111 = vst [vmem:[#allocation22_spill] sm:$0xff] %v8105_v53  ;;  %v8113_v4 = vrot.slane %v3925_v39, 5  ;;  %v5384_v58 = vrot.slane %v8085_v34, 9 }
  0xdc   : > { %6258 = vmatpush3.bf16.msra.mxu1 %v6905_v48  ;;  %v8095_v48 = vsel %vm7400_vm5, %v5383_v24, %v1355_v35  ;;  %v9112_v24 = vcombine.low %v7836_v20, %v7841_v12  ;;  %v3932_v56 = vrot.slane %v3930_v52, 4  ;;  %v3935_v35 = vrot.slane %v3933_v14, 5  ;;  %v8121_v20 = vld [vmem:[%s7087_s10 + $0x78] sm:$0x1] }
  0xdd   : > { %6259 = vmatprep.subr.bf16.mxu1 %v6909_v38  ;;  %v9113_v50 = vcombine.low %v7845_v45, %v7849_v25  ;;  %9114 = vst [vmem:[#allocation23_spill] sm:$0xff] %v8121_v20  ;;  %v8123_v12 = vrot.slane %v3939_v3, 5  ;;  %v3954_v23 = vshrl.u32 %v5749_v16, 16  ;;  %v3957_v21 = vshll.u32 %v5749_v16, 16  ;;  %v6912_v16 = vld [vmem:[%s7087_s10 + $0x100] sm:$0xff]  }
  0xde   : > { %6436 = vmatmul.mubr.bf16.gmra.mrb[20].mxu0 %v6906_v60  ;;  %v6916_v60 = vld [vmem:[%s9046_s1 + $0xe0] sm:$0xff]   ;;  %v3904_v39 = vsel %vm7119_vm2, %v3899_v62, %v3903_v6  ;;  %v8129_v52 = vsel %vm7400_vm5, %v1357_v46, %v1358_v11  ;;  %v3963_v45 = vshll.u32 %v8105_v53, 16  ;;  %v3967_v25 = vshrl.u32 %v8105_v53, 16 }
  0xdf   : > { %6228 = vmatmul.mubr.bf16.gmra.mrb[4].mxu1 %v9112_v24  ;;  %6439 = vmatprep.mubr.bf16.mxu0 %v6908_v30  ;;  %v3945_v30 = vrot.slane %v3943_v63, 4  ;;  %v3923_v14 = vrot.slane %v3922_v8, 4  ;;  %v1364_v34 = vrot.slane %v1362_v17, 4  ;;  %v6980_v63 = vld [vmem:[%s7087_s10 + $0xd8] sm:$0x1]  ;;  %v8135_v24 = vcombine.low %v3870_v61, %v3880_v9  ;;  %v6918_v61 = vld [vmem:[%s9046_s1 + $0xe8] sm:$0xff]  }
  0xe0   : > { %6231 = vmatprep.mubr.bf16.mxu1 %v9113_v50  ;;  %6260 = vmatpush3.bf16.msra.mxu1 %v6909_v38  ;;  %v3913_v38 = vrot.slane %v3912_v33, 4  ;;  %v1365_v3 = vrot.slane %v6980_v63, 5  ;;  %v3936_v11 = vor.u32 %v3935_v35, %v3932_v56  ;;  %v3949_v62 = vshll.u32 %v8121_v20, 16  ;;  %v1232_v33 = vld [vmem:[%s7087_s10 + $0xe0] sm:$0xe] }
  0xe1   : > { %6261 = vmatprep.subr.bf16.mxu1 %v6913_v15  ;;  %v8140_v46 = vcombine.low %v3894_v57, %v3904_v39  ;;  %v3946_v50 = vor.u32 %v3945_v30, %v8123_v12  ;;  %v8145_v8 = vld [vmem:[%s7087_s10 + $0x88] sm:$0x1]  ;;  %v3956_v63 = vrot.slane %v3954_v23, 4  ;;  %v3959_v54 = vrot.slane %v3957_v21, 5 }
  0xe2   : > { %9115 = vst [vmem:[#allocation24_spill] sm:$0xff] %v8145_v8  ;;  %v8153_v56 = vrot.slane %v3963_v45, 5  ;;  %v3969_v35 = vrot.slane %v3967_v25, 4  ;;  %v3918_v30 = vsel %vm7119_vm2, %v3913_v38, %v8073_v37  ;;  %v3928_v23 = vsel %vm7119_vm2, %v3923_v14, %v8113_v4  ;;  %v5752_v45 = vld [vmem:[%s7087_s10 + $0x90] sm:$0xf] }
  0xe3   : > { %v8163_v21 = vsel %vm7400_vm5, %v5384_v58, %v1362_v17  ;;  %v8167_v39 = vsel %vm7400_vm5, %v1364_v34, %v1365_v3  ;;  %v9117_v37 = vcombine.low %v7853_v41, %v7857_v0  ;;  %v8176_v4 = vrot.slane %v3936_v11, 4  ;;  %v8182_v38 = vld [vmem:[%s7087_s10 + $0xf0] sm:$0xe]  ;;  %v8191_v0 = vld [vmem:[%s7087_s10 + $0xe8] sm:$0x1] }
  0xe4   : > { %6262 = vmatpush3.bf16.msra.mxu1 %v6913_v15  ;;  %v6981_v15 = vld [vmem:[%s7087_s10 + $0xe4] sm:$0xf]  ;;  %v8178_v25 = vrot.slane %v3949_v62, 5  ;;  %v5385_v17 = vrot.slane %v1232_v33, 9  ;;  %v3973_v58 = vshll.u32 %v8145_v8, 16  ;;  %v9118_v14 = vcombine.low %v7898_v26, %v7902_v29  ;;  %v6914_v34 = vld [vmem:[%s7087_s10 + $0x110] sm:$0xff]  }
  0xe5   : > { %6263 = vmatprep.subr.bf16.mxu1 %v6916_v60  ;;  %v1369_v57 = vrot.slane %v6981_v15, 5  ;;  %v8188_v41 = vrot.slane %v3946_v50, 4  ;;  %v8195_v11 = vld [vmem:[%s7087_s10 + $0xf4] sm:$0xf]  ;;  %v5755_v33 = vld [vmem:[%s7087_s10 + $0xa0] sm:$0xf]  ;;  %v9125_v19 = vcombine.low %v7920_v10, %v7924_v49 }
  0xe6   : > { %6440 = vmatmul.mubr.bf16.gmra.mrb[24].mxu0 %v6910_v28  ;;  %v8171_v28 = vld [vmem:[%s7087_s10 + $0x94] sm:$0xf]  ;;  %v3978_v50 = vshrl.u32 %v5752_v45, 16  ;;  %v3981_v15 = vshll.u32 %v5752_v45, 16  ;;  %v5758_v3 = vld [vmem:[%s7087_s10 + $0xb0] sm:$0xf] }
  0xe7   : > { %9116 = vst [vmem:[#allocation25_spill] sm:$0xff] %v8171_v28  ;;  %6232 = vmatmul.mubr.bf16.gmra.mrb[8].mxu1 %v9117_v37  ;;  %6443 = vmatprep.mubr.bf16.mxu0 %v6912_v16  ;;  %v3960_v16 = vor.u32 %v3959_v54, %v3956_v63  ;;  %v6920_v26 = vld [vmem:[%s9046_s1 + $0xf0] sm:$0xff]   ;;  %v1371_v29 = vrot.slane %v1369_v57, 4  ;;  %v8204_v37 = vld [vmem:[%s7087_s10 + $0xa4] sm:$0xf]  ;;  %v8206_v54 = vcombine.low %v3918_v30, %v3928_v23  ;;  %v3987_v9 = vshll.u32 %v8171_v28, 16 }
  0xe8   : > { %6235 = vmatprep.mubr.bf16.mxu1 %v9118_v14  ;;  %6264 = vmatpush3.bf16.msra.mxu1 %v6916_v60  ;;  %v3970_v60 = vor.u32 %v3969_v35, %v8153_v56  ;;  %9119 = vst [vmem:[#allocation26_spill] sm:$0xff] %v8204_v37  ;;  %v8211_v14 = vld [vmem:[%s7087_s10 + $0x98] sm:$0x1]  ;;  %v3991_v6 = vshrl.u32 %v8171_v28, 16  ;;  %v8222_v30 = vsel %vm7400_vm5, %v5385_v17, %v1369_v57  ;;  %v8224_v23 = vrot.slane %v3973_v58, 5 }
  0xe9   : > { %6265 = vmatprep.subr.bf16.mxu1 %v6918_v61  ;;  %9120 = vst [vmem:[#allocation27_spill] sm:$0xff] %v8211_v14  ;;  %v6922_v45 = vld [vmem:[%s9046_s1 + $0xf8] sm:$0xff]   ;;  %v4002_v63 = vshrl.u32 %v5755_v33, 16  ;;  %v8229_v62 = vrot.slane %v3960_v16, 4  ;;  %v9121_v7 = vrot.slane %v8195_v11, 5  ;;  %v3983_v16 = vrot.slane %v3981_v15, 5 }
  0xea   : > { %v8237_v57 = vld [vmem:[%s7087_s10 + $0xf8] sm:$0x1]  ;;  %v8241_v58 = vld [vmem:[%s7087_s10 + $0xa8] sm:$0x1]  ;;  %v8246_v51 = vrot.slane %v3970_v60, 4  ;;  %v4005_v28 = vshll.u32 %v5755_v33, 16 }
  0xeb   : > { %v8234_v35 = vrot.slane %v9121_v7, 4  ;;  %9122 = vst [vmem:[#allocation28_spill] sm:$0xff] %v8241_v58  ;;  %v8249_v8 = vrot.slane %v3987_v9, 5  ;;  %v3993_v7 = vrot.slane %v3991_v6, 4  ;;  %v4011_v53 = vshll.u32 %v8204_v37, 16 }
  0xec   : > { %6266 = vmatpush3.bf16.msra.mxu1 %v6918_v61  ;;  %v3980_v61 = vrot.slane %v3978_v50, 4  ;;  %v4015_v20 = vshrl.u32 %v8204_v37, 16  ;;  %v8254_v17 = vld [vmem:[%s7087_s10 + $0xc4] sm:$0xf]  ;;  %v3997_v60 = vshll.u32 %v8211_v14, 16  ;;  %v8261_v33 = vrot.slane %v4002_v63, 4 }
  0xed   : > { %6267 = vmatprep.subr.bf16.mxu1 %v6920_v26  ;;  %9124 = vst [vmem:[#allocation30_spill] sm:$0xff] %v8254_v17  ;;  %v4029_v9 = vshll.u32 %v5758_v3, 16  ;;  %v9126_v6 = vcombine.low %v7952_v31, %v7956_v1  ;;  %v4035_v50 = vshll.u32 %v8244_v22, 16  ;;  %v4039_v15 = vshrl.u32 %v8244_v22, 16  ;;  %v8289_v37 = vld [vmem:[%s7087_s10 + $0xb8] sm:$0x1] }
  0xee   : > { %6444 = vmatmul.mubr.bf16.gmra.mrb[28].mxu0 %v6914_v34  ;;  %v4026_v34 = vshrl.u32 %v5758_v3, 16  ;;  %v4050_v10 = vshrl.u32 %v5761_v47, 16  ;;  %v4053_v49 = vshll.u32 %v5761_v47, 16  ;;  %v4059_v3 = vshll.u32 %v8254_v17, 16  ;;  %v5764_v47 = vld [vmem:[%s7087_s10 + $0xd0] sm:$0xf] }
  0xef   : > { %6236 = vmatmul.mubr.bf16.gmra.mrb[12].mxu1 %v9125_v19  ;;  %6463 = vmatprep.mubr.bf16.mxu0 %v8007_v27  ;;  %v4007_v27 = vrot.slane %v4005_v28, 5  ;;  %v4021_v19 = vshll.u32 %v8241_v58, 16  ;;  %v4063_v31 = vshrl.u32 %v8254_v17, 16  ;;  %v3952_v1 = vsel %vm7119_vm2, %v8188_v41, %v8178_v25  ;;  %v6919_v28 = vld [vmem:[%s9046_s1 + $0x208] sm:$0xff]  }
  0xf0   : > { %6239 = vmatprep.mubr.bf16.mxu1 %v9126_v6  ;;  %6268 = vmatpush3.bf16.msra.mxu1 %v6920_v26  ;;  %v3984_v26 = vor.u32 %v3983_v16, %v3980_v61  ;;  %v8275_v63 = vrot.slane %v4011_v53, 5  ;;  %v4017_v6 = vrot.slane %v4015_v20, 4  ;;  %v9127_v22 = vrot.slane %v8191_v0, 5  ;;  %v8292_v53 = vld [vmem:[%s7087_s10 + $0xc8] sm:$0x1] }
  0xf1   : > { %6269 = vmatprep.subr.bf16.mxu1 %v6922_v45  ;;  %v3994_v17 = vor.u32 %v3993_v7, %v8249_v8  ;;  %v4028_v25 = vrot.slane %v4026_v34, 4  ;;  %v4031_v41 = vrot.slane %v4029_v9, 5  ;;  %v8295_v20 = vld [vmem:[%s7087_s10 + $0xd4] sm:$0xf]  ;;  %v8297_v61 = vrot.slane %v4035_v50, 5 }
  0xf2   : > { %v8285_v58 = vsel %vm7400_vm5, %v1371_v29, %v9127_v22  ;;  %v4041_v16 = vrot.slane %v4039_v15, 4  ;;  %v4052_v14 = vrot.slane %v4050_v10, 4  ;;  %v4055_v0 = vrot.slane %v4053_v49, 5  ;;  %v8302_v22 = vld [vmem:[%s9046_s1 + $0x100] sm:$0xff]  }
  0xf3   : > { %v8305_v29 = vrot.slane %v4059_v3, 5  ;;  %v4065_v7 = vrot.slane %v4063_v31, 4  ;;  %v4074_v34 = vshrl.u32 %v5764_v47, 16  ;;  %v4077_v9 = vshll.u32 %v5764_v47, 16 }
  0xf4   : > { %6270 = vmatpush3.bf16.msra.mxu1 %v6922_v45  ;;  %v8308_v45 = vrot.slane %v3984_v26, 4  ;;  %v8310_v50 = vrot.slane %v3997_v60, 5  ;;  %v4008_v15 = vor.u32 %v4007_v27, %v8261_v33  ;;  %v4018_v10 = vor.u32 %v4017_v6, %v8275_v63 }
  0xf5   : > { %6543 = vmatprep.subr.bf16.mxu1 %v8302_v22  ;;  %v9128_v49 = vcombine.low %v7963_v32, %v7967_v13  ;;  %v8318_v3 = vrot.slane %v3994_v17, 4  ;;  %v8320_v31 = vrot.slane %v4021_v19, 5  ;;  %v4087_v26 = vshrl.u32 %v8295_v20, 16  ;;  %v6921_v32 = vld [vmem:[%s9046_s1 + $0x210] sm:$0xff]  }
  0xf6   : > { %6464 = vmatmul.mubr.bf16.vlgmr.msra.gmra.mrb[0].mxu0 %v8054_v55  ;;  %v4083_v55 = vshll.u32 %v8295_v20, 16  ;;  %v9129_v60 = vcombine.low %v7985_v43, %v7995_v5  ;;  %v4032_v13 = vor.u32 %v4031_v41, %v4028_v25  ;;  %v4045_v17 = vshll.u32 %v8289_v37, 16 }
  0xf7   : > { %6240 = vmatmul.mubr.bf16.gmra.mrb[16].mxu1 %v9128_v49  ;;  %6496 = vmatpush3.bf16.msra.mxu0 %v7981_v40  ;;  %v4042_v40 = vor.u32 %v4041_v16, %v8297_v61  ;;  %v4069_v33 = vshll.u32 %v8292_v53, 16  ;;  %v4056_v27 = vor.u32 %v4055_v0, %v4052_v14  ;;  %v4066_v43 = vor.u32 %v4065_v7, %v8305_v29  ;;  %v8351_v0 = vld [vmem:[%s7087_s10 + $0xd8] sm:$0x1]  ;;  %v5767_v7 = vld [vmem:[%s7087_s10 + $0xe0] sm:$0xf] }
  0xf8   : > { %6243 = vmatprep.mubr.bf16.mxu1 %v9129_v60  ;;  %6467 = vmatprep.mubr.bf16.mxu0 %v8135_v24  ;;  %v4076_v5 = vrot.slane %v4074_v34, 4  ;;  %v4079_v19 = vrot.slane %v4077_v9, 5  ;;  %v9130_v24 = vsel %vm7119_vm2, %v8176_v4, %v8123_v12  ;;  %v9131_v47 = vrot.slane %v8195_v11, 5 }
  0xf9   : > { %6497 = vmatprep.subr.bf16.mxu0 %v6919_v28  ;;  %v8340_v6 = vcombine.low %v9130_v24, %v3952_v1  ;;  %v9132_v25 = vrot.slane %v8182_v38, 9  ;;  %v4009_v14 = vrot.slane %v4008_v15, 4  ;;  %v4019_v16 = vrot.slane %v4018_v10, 4 }
  0xfa   : > { %v3966_v12 = vsel %vm7119_vm2, %v8229_v62, %v8153_v56  ;;  %v9133_v4 = vrot.slane %v8237_v57, 5  ;;  %v8365_v11 = vrot.slane %v4083_v55, 5  ;;  %v4089_v1 = vrot.slane %v4087_v26, 4  ;;  %v8372_v62 = vld [vmem:[%s7087_s10 + $0xe4] sm:$0xf] }
  0xfb   : > { %v8348_v41 = vsel %vm7400_vm5, %v9132_v25, %v9131_v47  ;;  %6498 = vmatpush3.bf16.msra.mxu0 %v6919_v28  ;;  %v3976_v28 = vsel %vm7119_vm2, %v8246_v51, %v8224_v23  ;;  %v4033_v34 = vrot.slane %v4032_v13, 4  ;;  %v4043_v9 = vrot.slane %v4042_v40, 4  ;;  %v8388_v26 = vld [vmem:[%s7087_s10 + $0xe8] sm:$0x1]  ;;  %v5824_v25 = vld [vmem:[%s7087_s10 + $0x70] sm:$0xe] }
  0xfc   : > { %v8363_v38 = vsel %vm7400_vm5, %v8234_v35, %v9133_v4  ;;  %6499 = vmatprep.subr.bf16.mxu0 %v6921_v32  ;;  %v4047_v56 = vrot.slane %v4045_v17, 5  ;;  %v6923_v35 = vld [vmem:[%s9046_s1 + $0x218] sm:$0xff]   ;;  %v4057_v57 = vrot.slane %v4056_v27, 4  ;;  %v4067_v15 = vrot.slane %v4066_v43, 4  ;;  %v8431_v43 = vld [vmem:[%s7087_s10 + $0xf0] sm:$0xf] }
  0xfd   : > { %v4071_v10 = vrot.slane %v4069_v33, 5  ;;  %v4080_v49 = vor.u32 %v4079_v19, %v4076_v5  ;;  %v3990_v51 = vsel %vm7119_vm2, %v8308_v45, %v8249_v8  ;;  %v4000_v23 = vsel %vm7119_vm2, %v8318_v3, %v8310_v50 }
  0xfe   : > { %6468 = vmatmul.mubr.bf16.gmra.mrb[4].mxu0 %v8140_v46  ;;  %v4093_v55 = vshll.u32 %v8351_v0, 16  ;;  %v4098_v60 = vshrl.u32 %v5767_v7, 16  ;;  %v9134_v13 = vcombine.low %v8058_v42, %v8080_v2  ;;  %v4014_v46 = vsel %vm7119_vm2, %v4009_v14, %v8275_v63 }
  0xff   : > { %6471 = vmatprep.mubr.bf16.mxu0 %v8206_v54  ;;  %v4024_v8 = vsel %vm7119_vm2, %v4019_v16, %v8320_v31  ;;  %v4090_v45 = vor.u32 %v4089_v1, %v8365_v11  ;;  %v4101_v50 = vshll.u32 %v5767_v7, 16  ;;  %v9135_v3 = vcombine.low %v8095_v48, %v8129_v52  ;;  %6500 = vmatpush3.bf16.msra.mxu0 %v6921_v32  ;;  %v6926_v54 = vld [vmem:[%s9046_s1 + $0x220] sm:$0xff]  }
 0x100   : > { %6244 = vmatmul.mubr.bf16.gmra.mrb[20].mxu1 %v9134_v13  ;;  %v4038_v42 = vsel %vm7119_vm2, %v4033_v34, %v8297_v61  ;;  %v4048_v2 = vsel %vm7119_vm2, %v4043_v9, %v4047_v56  ;;  %v4107_v63 = vshll.u32 %v8372_v62, 16  ;;  %v4111_v31 = vshrl.u32 %v8372_v62, 16  ;;  %6501 = vmatprep.subr.bf16.mxu0 %v6923_v35  ;;  %v5825_v34 = vld [vmem:[%s7087_s10 + $0x80] sm:$0xe]  ;;  %v8483_v13 = vld [vmem:[%s7087_s10 + $0xf4] sm:$0xf] }
 0x101   : > { %6247 = vmatprep.mubr.bf16.mxu1 %v9135_v3  ;;  %v4062_v48 = vsel %vm7119_vm2, %v4057_v57, %v8305_v29  ;;  %v4072_v52 = vsel %vm7119_vm2, %v4067_v15, %v4071_v10  ;;  %v8419_v61 = vrot.slane %v4080_v49, 4  ;;  %v4117_v32 = vshll.u32 %v8388_v26, 16  ;;  %v5823_v29 = vld [vmem:[%s7087_s10 + $0x60] sm:$0xe]  ;;  %v9137_v49 = vld [vmem:[#allocation21_spill] sm:$0xff] }
 0x102   : > { %v5417_v40 = vcombine.low %v8222_v30, %v8285_v58  ;;  %v5418_v17 = vcombine.low %v8348_v41, %v8363_v38  ;;  %v8426_v33 = vrot.slane %v4093_v55, 5  ;;  %v8428_v27 = vrot.slane %v4098_v60, 4  ;;  %v9144_v38 = vld [vmem:[#allocation28_spill] sm:$0xff] }
 0x103   : > { %v5801_v5 = vcombine.low %v3966_v12, %v3976_v28  ;;  %v8434_v19 = vcombine.low %v3990_v51, %v4000_v23  ;;  %v8436_v24 = vrot.slane %v4090_v45, 4  ;;  %v8438_v47 = vrot.slane %v4101_v50, 5  ;;  %6502 = vmatpush3.bf16.msra.mxu0 %v6923_v35  ;;  %v6929_v12 = vld [vmem:[%s9046_s1 + $0x228] sm:$0xff]   ;;  %v5826_v23 = vld [vmem:[%s7087_s10 + $0x90] sm:$0xe]  ;;  %v9139_v50 = vld [vmem:[#allocation22_spill] sm:$0xff] }
 0x104   : > { %v8441_v30 = vcombine.low %v4014_v46, %v4024_v8  ;;  %v8443_v58 = vcombine.low %v4038_v42, %v4048_v2  ;;  %v8445_v14 = vcombine.low %v4062_v48, %v4072_v52  ;;  %v8447_v16 = vrot.slane %v4107_v63, 5  ;;  %6503 = vmatprep.subr.bf16.mxu0 %v6926_v54  ;;  %v6932_v46 = vld [vmem:[%s9046_s1 + $0x230] sm:$0xff]   ;;  %v9141_v48 = vld [vmem:[#allocation25_spill] sm:$0xff] }
 0x105   : > { %v4086_v7 = vsel %vm7119_vm2, %v8419_v61, %v8365_v11  ;;  %v8456_v4 = vrot.slane %v4111_v31, 4  ;;  %v8458_v1 = vrot.slane %v4117_v32, 5  ;;  %v5839_v28 = vrot.slane %v5823_v29, 9  ;;  %v9140_v42 = vld [vmem:[#allocation24_spill] sm:$0xff]  ;;  %v9142_v32 = vld [vmem:[#allocation27_spill] sm:$0xff]  ;;  %v9147_v61 = vld [vmem:[#allocation29_spill] sm:$0xff] }
 0x106   : > { %6472 = vmatmul.mubr.bf16.gmra.mrb[8].mxu0 %v8340_v6  ;;  %v4122_v9 = vshrl.u32 %v8431_v43, 16  ;;  %v4609_v56 = vrot.slane %v8014_v18, 5  ;;  %v4612_v35 = vrot.slane %v8047_v44, 5  ;;  %v5840_v57 = vrot.slane %v5824_v25, 9  ;;  %v9138_v18 = vld [vmem:[#allocation23_spill] sm:$0xff] }
 0x107   : > { %v9136_v15 = vcombine.low %v8163_v21, %v8167_v39  ;;  %6475 = vmatprep.mubr.bf16.mxu0 %v5801_v5  ;;  %v4096_v10 = vsel %vm7119_vm2, %v8436_v24, %v8426_v33  ;;  %v4104_v6 = vor.u32 %v8438_v47, %v8428_v27  ;;  %v4616_v51 = vrot.slane %v9137_v49, 5  ;;  %6504 = vmatpush3.bf16.msra.mxu0 %v6926_v54  ;;  %v5773_v54 = vld [vmem:[%s7087_s10 + $0x100] sm:$0xf]  ;;  %v6924_v47 = vld [vmem:[%s7087_s10 + $0x10] sm:$0xff]   ;;  %v6935_v49 = vld [vmem:[%s9046_s1 + $0x238] sm:$0xff]  }
 0x108   : > { %v4619_v44 = vrot.slane %v9138_v18, 5  ;;  %v4125_v21 = vshll.u32 %v8431_v43, 16  ;;  %v8480_v39 = vsel %vm7400_vm5, %v5839_v28, %v4609_v56  ;;  %v4611_v55 = vrot.slane %v4609_v56, 4  ;;  %6505 = vmatprep.subr.bf16.mxu0 %v6929_v12  ;;  %v8514_v28 = vld [vmem:[%s7087_s10 + $0x104] sm:$0xf] }
 0x109   : > { %6248 = vmatmul.mubr.bf16.gmra.mrb[24].mxu1 %v9136_v15  ;;  %v5841_v60 = vrot.slane %v5825_v34, 9  ;;  %v8490_v8 = vsel %vm7400_vm5, %v5840_v57, %v4616_v51  ;;  %v4618_v45 = vrot.slane %v4616_v51, 4  ;;  %v4623_v3 = vrot.slane %v9139_v50, 5  ;;  %v5827_v18 = vld [vmem:[%s7087_s10 + $0xa0] sm:$0xe] }
 0x10a   : > { %6251 = vmatprep.mubr.bf16.mxu1 %v5417_v40  ;;  %v4626_v2 = vrot.slane %v9140_v42, 5  ;;  %v8497_v63 = vsel %vm7400_vm5, %v4611_v55, %v4612_v35  ;;  %v5842_v31 = vrot.slane %v5826_v23, 9  ;;  %v4630_v52 = vrot.slane %v9141_v48, 5  ;;  %v8588_v33 = vld [vmem:[%s7087_s10 + $0x114] sm:$0xf] }
 0x10b   : > { %v4633_v40 = vrot.slane %v9142_v32, 5  ;;  %v5871_v27 = vcombine.low %v8480_v39, %v8497_v63  ;;  %v8505_v43 = vsel %vm7400_vm5, %v4618_v45, %v4619_v44  ;;  %v8509_v29 = vsel %vm7400_vm5, %v5841_v60, %v4623_v3  ;;  %6506 = vmatpush3.bf16.msra.mxu0 %v6929_v12  ;;  %v8547_v45 = vld [vmem:[%s7087_s10 + $0xf8] sm:$0x1]  ;;  %v9145_v32 = vld [vmem:[#allocation19_spill] sm:$0xff] }
 0x10c   : > { %v4625_v5 = vrot.slane %v4623_v3, 4  ;;  %v4131_v25 = vshll.u32 %v8483_v13, 16  ;;  %v5872_v34 = vcombine.low %v8490_v8, %v8505_v43  ;;  %v8520_v56 = vsel %vm7400_vm5, %v5842_v31, %v4630_v52  ;;  %6507 = vmatprep.subr.bf16.mxu0 %v6932_v46  ;;  %v7006_v8 = vld [vmem:[%s7087_s10 + $0xb8] sm:$0x1] }
 0x10d   : > { %v4632_v35 = vrot.slane %v4630_v52, 4  ;;  %v4114_v57 = vor.u32 %v8456_v4, %v8447_v16  ;;  %v4135_v15 = vshrl.u32 %v8483_v13, 16  ;;  %v4146_v12 = vshrl.u32 %v5773_v54, 16 }
 0x10e   : > { %v8530_v51 = vsel %vm7400_vm5, %v4625_v5, %v4626_v2  ;;  %6476 = vmatmul.mubr.bf16.gmra.mrb[12].mxu0 %v8434_v19  ;;  %v8534_v44 = vrot.slane %v4122_v9, 4  ;;  %v4149_v23 = vshll.u32 %v5773_v54, 16  ;;  %v4105_v60 = vrot.slane %v4104_v6, 4  ;;  %v9143_v2 = vld [vmem:[#allocation26_spill] sm:$0xff] }
 0x10f   : > { %v5873_v4 = vcombine.low %v8509_v29, %v8530_v51  ;;  %v8540_v55 = vsel %vm7400_vm5, %v4632_v35, %v4633_v40  ;;  %6479 = vmatprep.mubr.bf16.mxu0 %v8441_v30  ;;  %v4127_v19 = vrot.slane %v4125_v21, 5  ;;  %v4155_v9 = vshll.u32 %v8514_v28, 16  ;;  %6508 = vmatpush3.bf16.msra.mxu0 %v6932_v46  ;;  %v5828_v30 = vld [vmem:[%s7087_s10 + $0xb0] sm:$0xe] }
 0x110   : > { %v5874_v50 = vcombine.low %v8520_v56, %v8540_v55  ;;  %v4159_v3 = vshrl.u32 %v8514_v28, 16  ;;  %v5843_v42 = vrot.slane %v5827_v18, 9  ;;  %v4637_v41 = vrot.slane %v9143_v2, 5  ;;  %6509 = vmatprep.subr.bf16.mxu0 %v6935_v49  ;;  %v9146_v40 = vld [vmem:[#allocation20_spill] sm:$0xff] }
 0x111   : > { %6252 = vmatmul.mubr.bf16.gmra.mrb[28].mxu1 %v5418_v17  ;;  %v4640_v17 = vrot.slane %v9144_v38, 5  ;;  %v4115_v6 = vrot.slane %v4114_v57, 4  ;;  %v8556_v21 = vrot.slane %v4131_v25, 5  ;;  %v4137_v54 = vrot.slane %v4135_v15, 4  ;;  %v5776_v15 = vld [vmem:[%s7087_s10 + $0x110] sm:$0xf] }
 0x112   : > { %6271 = vmatprep.mubr.bf16.mxu1 %v6924_v47  ;;  %v4148_v31 = vrot.slane %v4146_v12, 4  ;;  %v4151_v48 = vrot.slane %v4149_v23, 5  ;;  %v8560_v46 = vsel %vm7400_vm5, %v5843_v42, %v4637_v41  ;;  %v4639_v52 = vrot.slane %v4637_v41, 4  ;;  %v6925_v47 = vld [vmem:[%s7087_s10 + $0x20] sm:$0xff]   ;;  %v6927_v18 = vld [vmem:[%s7087_s10 + $0x30] sm:$0xff]  }
 0x113   : > { %v8566_v5 = vsel %vm7119_vm2, %v9146_v40, %v9145_v32  ;;  %v5806_v25 = vcombine.low %v4086_v7, %v4096_v10  ;;  %v4110_v35 = vsel %vm7119_vm2, %v4105_v60, %v8447_v16  ;;  %v4141_v57 = vshll.u32 %v8547_v45, 16  ;;  %6510 = vmatpush3.bf16.msra.mxu0 %v6935_v49  ;;  %v8600_v10 = vld [vmem:[%s7087_s10 + $0x108] sm:$0x1]  ;;  %v5829_v49 = vld [vmem:[%s7087_s10 + $0xc0] sm:$0xe] }
 0x114   : > { %v5844_v12 = vrot.slane %v5828_v30, 9  ;;  %v8585_v23 = vrot.slane %v4155_v9, 5  ;;  %v4161_v42 = vrot.slane %v4159_v3, 4  ;;  %v8592_v11 = vsel %vm7400_vm5, %v4639_v52, %v4640_v17 }
 0x115   : > { %v4644_v24 = vrot.slane %v9147_v61, 5  ;;  %v4120_v16 = vsel %vm7119_vm2, %v4115_v6, %v8458_v1  ;;  %v4128_v7 = vor.u32 %v4127_v19, %v8534_v44  ;;  %v5875_v60 = vcombine.low %v8560_v46, %v8592_v11  ;;  %v6930_v61 = vld [vmem:[%s7087_s10 + $0x50] sm:$0xff]  }
 0x116   : > { %v4647_v9 = vrot.slane %v8289_v37, 5  ;;  %6480 = vmatmul.mubr.bf16.gmra.mrb[16].mxu0 %v8443_v58  ;;  %v4138_v3 = vor.u32 %v4137_v54, %v8556_v21  ;;  %v4152_v2 = vor.u32 %v4151_v48, %v4148_v31  ;;  %v4170_v41 = vshrl.u32 %v5776_v15, 16  ;;  %v9148_v48 = vld [vmem:[#allocation30_spill] sm:$0xff]  ;;  %v7010_v46 = vld [vmem:[%s7087_s10 + $0xf4] sm:$0xf] }
 0x117   : > { %v4173_v38 = vshll.u32 %v5776_v15, 16  ;;  %6483 = vmatprep.mubr.bf16.mxu0 %v8445_v14  ;;  %v4179_v1 = vshll.u32 %v8588_v33, 16  ;;  %v4183_v44 = vshrl.u32 %v8588_v33, 16  ;;  %v8613_v19 = vsel %vm7400_vm5, %v5844_v12, %v4644_v24  ;;  %v6986_v14 = vld [vmem:[%s9046_s1 + $0x108] sm:$0xff]   ;;  %v6928_v15 = vld [vmem:[%s7087_s10 + $0x40] sm:$0xff]  }
 0x118   : > { %v4646_v37 = vrot.slane %v4644_v24, 4  ;;  %v4143_v58 = vrot.slane %v4141_v57, 5  ;;  %v4162_v17 = vor.u32 %v4161_v42, %v8585_v23  ;;  %v4165_v30 = vshll.u32 %v8600_v10, 16 }
 0x119   : > { %6272 = vmatmul.mubr.bf16.vlgmr.msra.gmra.mrb[0].mxu1 %v6925_v47  ;;  %v5845_v6 = vrot.slane %v5829_v49, 9  ;;  %v5807_v54 = vcombine.low %v4110_v35, %v4120_v16  ;;  %v4129_v31 = vrot.slane %v4128_v7, 4  ;;  %v4651_v52 = vrot.slane %v9148_v48, 5  ;;  %v8633_v7 = vld [vmem:[%s7087_s10 + $0x118] sm:$0x1] }
 0x11a   : > { %6551 = vmatpush3.bf16.msra.mxu1 %v8302_v22  ;;  %6275 = vmatprep.mubr.bf16.mxu1 %v6927_v18  ;;  %v8623_v22 = vsel %vm7400_vm5, %v4646_v37, %v4647_v9  ;;  %v4139_v32 = vrot.slane %v4138_v3, 4  ;;  %v4153_v40 = vrot.slane %v4152_v2, 4  ;;  %v4172_v47 = vrot.slane %v4170_v41, 4  ;;  %v6987_v3 = vld [vmem:[%s9046_s1 + $0x110] sm:$0xff]   ;;  %v5819_v37 = vld [vmem:[%s7087_s10 + $0x20] sm:$0xe] }
 0x11b   : > { %6544 = vmatprep.subr.bf16.mxu1 %v6986_v14  ;;  %v5876_v57 = vcombine.low %v8613_v19, %v8623_v22  ;;  %v4175_v12 = vrot.slane %v4173_v38, 5  ;;  %v8629_v18 = vrot.slane %v4179_v1, 5  ;;  %v4185_v35 = vrot.slane %v4183_v44, 4  ;;  %v5830_v1 = vld [vmem:[%s7087_s10 + $0xd0] sm:$0xe] }
 0x11c   : > { %v4653_v42 = vrot.slane %v4651_v52, 4  ;;  %v4163_v24 = vrot.slane %v4162_v17, 4  ;;  %v4167_v16 = vrot.slane %v4165_v30, 5  ;;  %v8637_v9 = vsel %vm7400_vm5, %v5845_v6, %v4651_v52  ;;  %v6988_v30 = vld [vmem:[%s7087_s10 + $0x24] sm:$0xf] }
 0x11d   : > { %v4654_v49 = vrot.slane %v8292_v53, 5  ;;  %v4134_v2 = vsel %vm7119_vm2, %v4129_v31, %v8556_v21  ;;  %v4144_v41 = vsel %vm7119_vm2, %v4139_v32, %v4143_v58  ;;  %v4176_v53 = vor.u32 %v4175_v12, %v4172_v47  ;;  %v6931_v32 = vld [vmem:[%s7087_s10 + $0x60] sm:$0xff]  }
 0x11e   : > { %6552 = vmatpush3.bf16.msra.mxu1 %v6986_v14  ;;  %6484 = vmatmul.mubr.bf16.gmra.mrb[20].mxu0 %v5806_v25  ;;  %v4186_v44 = vor.u32 %v4185_v35, %v8629_v18  ;;  %v4189_v25 = vshll.u32 %v8633_v7, 16  ;;  %v4158_v58 = vsel %vm7119_vm2, %v4153_v40, %v8585_v23  ;;  %v4168_v17 = vsel %vm7119_vm2, %v4163_v24, %v4167_v16  ;;  %v6989_v14 = vld [vmem:[%s9046_s1 + $0x118] sm:$0xff]   ;;  %v6933_v35 = vld [vmem:[%s7087_s10 + $0x70] sm:$0xff]  }
 0x11f   : > { %6545 = vmatprep.subr.bf16.mxu1 %v6987_v3  ;;  %v8650_v38 = vsel %vm7400_vm5, %v4653_v42, %v4654_v49  ;;  %6487 = vmatprep.mubr.bf16.mxu0 %v5807_v54  ;;  %v4581_v6 = vrot.slane %v6988_v30, 5  ;;  %v5846_v54 = vrot.slane %v5830_v1, 9  ;;  %v5808_v31 = vcombine.low %v4134_v2, %v4144_v41  ;;  %v6992_v2 = vld [vmem:[%s7087_s10 + $0x34] sm:$0xf]  ;;  %v6993_v30 = vld [vmem:[%s7087_s10 + $0x44] sm:$0xf] }
 0x120   : > { %v5877_v21 = vcombine.low %v8637_v9, %v8650_v38  ;;  %v5835_v48 = vrot.slane %v5819_v37, 9  ;;  %v4658_v52 = vrot.slane %v8295_v20, 5  ;;  %v4661_v23 = vrot.slane %v8351_v0, 5  ;;  %v6991_v20 = vld [vmem:[%s9046_s1 + $0x120] sm:$0xff]  }
 0x121   : > { %6276 = vmatmul.mubr.bf16.gmra.mrb[4].mxu1 %v6928_v15  ;;  %v5809_v40 = vcombine.low %v4158_v58, %v4168_v17  ;;  %v4177_v47 = vrot.slane %v4176_v53, 4  ;;  %v4187_v15 = vrot.slane %v4186_v44, 4  ;;  %v4191_v12 = vrot.slane %v4189_v25, 5  ;;  %v5820_v17 = vld [vmem:[%s7087_s10 + $0x30] sm:$0xe] }
 0x122   : > { %6279 = vmatprep.mubr.bf16.mxu1 %v6930_v61  ;;  %6553 = vmatpush3.bf16.msra.mxu1 %v6987_v3  ;;  %v4583_v42 = vrot.slane %v4581_v6, 4  ;;  %v6990_v61 = vld [vmem:[%s7087_s10 + $0x28] sm:$0x1]  ;;  %v8674_v16 = vsel %vm7400_vm5, %v5846_v54, %v4658_v52  ;;  %v4660_v49 = vrot.slane %v4658_v52, 4  ;;  %v5831_v3 = vld [vmem:[%s7087_s10 + $0xe0] sm:$0xe]  ;;  %v4582_v0 = vsel %vm7400_vm5, %v5835_v48, %v4581_v6 }
 0x123   : > { %6546 = vmatprep.subr.bf16.mxu1 %v6989_v14  ;;  %v4584_v24 = vrot.slane %v6990_v61, 5  ;;  %v4588_v41 = vrot.slane %v6992_v2, 5  ;;  %v4182_v53 = vsel %vm7119_vm2, %v4177_v47, %v8629_v18  ;;  %v4192_v44 = vsel %vm7119_vm2, %v4187_v15, %v4191_v12  ;;  %v5821_v54 = vld [vmem:[%s7087_s10 + $0x40] sm:$0xe]  ;;  %v5832_v12 = vld [vmem:[%s7087_s10 + $0xf0] sm:$0xe] }
 0x124   : > { %v8685_v1 = vsel %vm7400_vm5, %v4660_v49, %v4661_v23  ;;  %v5847_v37 = vrot.slane %v5831_v3, 9  ;;  %v4595_v6 = vrot.slane %v6993_v30, 5  ;;  %v4665_v18 = vrot.slane %v8372_v62, 5  ;;  %v5822_v2 = vld [vmem:[%s7087_s10 + $0x50] sm:$0xe] }
 0x125   : > { %v5878_v25 = vcombine.low %v8674_v16, %v8685_v1  ;;  %v4585_v58 = vsel %vm7400_vm5, %v4583_v42, %v4584_v24  ;;  %v5810_v48 = vcombine.low %v4182_v53, %v4192_v44  ;;  %v5836_v47 = vrot.slane %v5820_v17, 9  ;;  %v6996_v24 = vld [vmem:[%s7087_s10 + $0x48] sm:$0x1]  ;;  %v6998_v53 = vld [vmem:[%s7087_s10 + $0x54] sm:$0xf] }
 0x126   : > { %6554 = vmatpush3.bf16.msra.mxu1 %v6989_v14  ;;  %6488 = vmatmul.mubr.bf16.gmra.mrb[24].mxu0 %v5808_v31  ;;  %v4668_v14 = vrot.slane %v8388_v26, 5  ;;  %v6994_v31 = vld [vmem:[%s9046_s1 + $0x128] sm:$0xff]   ;;  %v8706_v52 = vsel %vm7400_vm5, %v5847_v37, %v4665_v18  ;;  %v4667_v23 = vrot.slane %v4665_v18, 4  ;;  %v4590_v62 = vrot.slane %v4588_v41, 4  ;;  %v6995_v26 = vld [vmem:[%s7087_s10 + $0x38] sm:$0x1] }
 0x127   : > { %6547 = vmatprep.subr.bf16.mxu1 %v6991_v20  ;;  %6491 = vmatprep.mubr.bf16.mxu0 %v5809_v40  ;;  %v5867_v40 = vcombine.low %v4582_v0, %v4585_v58  ;;  %v4591_v15 = vrot.slane %v6995_v26, 5  ;;  %v5837_v42 = vrot.slane %v5821_v54, 9  ;;  %v4597_v61 = vrot.slane %v4595_v6, 4  ;;  %v7014_v16 = vld [vmem:[%s7087_s10 + $0x108] sm:$0x1] }
 0x128   : > { %v4598_v49 = vrot.slane %v6996_v24, 5  ;;  %v8715_v3 = vsel %vm7400_vm5, %v4667_v23, %v4668_v14  ;;  %v4602_v44 = vrot.slane %v6998_v53, 5  ;;  %v5848_v37 = vrot.slane %v5832_v12, 9  ;;  %v6938_v12 = vld [vmem:[%s7087_s10 + $0xb0] sm:$0xff]  }
 0x129   : > { %6280 = vmatmul.mubr.bf16.gmra.mrb[8].mxu1 %v6931_v32  ;;  %v6934_v32 = vld [vmem:[%s7087_s10 + $0x80] sm:$0xff]   ;;  %v5879_v0 = vcombine.low %v8706_v52, %v8715_v3  ;;  %v4672_v58 = vrot.slane %v8483_v13, 5  ;;  %v4589_v17 = vsel %vm7400_vm5, %v5836_v47, %v4588_v41  ;;  %v4592_v30 = vsel %vm7400_vm5, %v4590_v62, %v4591_v15 }
 0x12a   : > { %6283 = vmatprep.mubr.bf16.mxu1 %v6933_v35  ;;  %6555 = vmatpush3.bf16.msra.mxu1 %v6991_v20  ;;  %v6936_v35 = vld [vmem:[%s7087_s10 + $0x90] sm:$0xff]   ;;  %v4675_v18 = vrot.slane %v8547_v45, 5  ;;  %v4596_v14 = vsel %vm7400_vm5, %v5837_v42, %v4595_v6  ;;  %v4599_v54 = vsel %vm7400_vm5, %v4597_v61, %v4598_v49  ;;  %v6999_v45 = vld [vmem:[%s9046_s1 + $0x138] sm:$0xff]   ;;  %v5868_v23 = vcombine.low %v4589_v17, %v4592_v30  ;;  %v6937_v62 = vld [vmem:[%s7087_s10 + $0xa0] sm:$0xff]  }
 0x12b   : > { %6548 = vmatprep.subr.bf16.mxu1 %v6994_v31  ;;  %v6997_v20 = vld [vmem:[%s9046_s1 + $0x130] sm:$0xff]   ;;  %v8736_v13 = vsel %vm7400_vm5, %v5848_v37, %v4672_v58  ;;  %v4674_v41 = vrot.slane %v4672_v58, 4  ;;  %v4604_v6 = vrot.slane %v4602_v44, 4  ;;  %v5869_v26 = vcombine.low %v4596_v14, %v4599_v54 }
 0x12c   : > { %v4679_v61 = vrot.slane %v8514_v28, 5  ;;  %v4682_v24 = vrot.slane %v8600_v10, 5  ;;  %v7001_v10 = vld [vmem:[%s7087_s10 + $0x94] sm:$0xf]  ;;  %v2398_v43 = vshll.u32 %v7006_v8, 16  ;;  %v2484_v11 = vshll.u32 %v7010_v46, 16 }
 0x12d   : > { %v8745_v47 = vsel %vm7400_vm5, %v4674_v41, %v4675_v18  ;;  %v2340_v17 = vshll.u32 %v7001_v10, 16  ;;  %v2344_v30 = vshrl.u32 %v7001_v10, 16  ;;  %v6941_v10 = vld [vmem:[%s7087_s10 + $0xe0] sm:$0xff]   ;;  %v2518_v1 = vshll.u32 %v7014_v16, 16  ;;  %v9152_v16 = vld [vmem:[#allocation5_spill] sm:$0xff] }
 0x12e   : > { %6556 = vmatpush3.bf16.msra.mxu1 %v6994_v31  ;;  %6492 = vmatmul.mubr.bf16.gmra.mrb[28].mxu0 %v5810_v48  ;;  %v5838_v31 = vrot.slane %v5822_v2, 9  ;;  %v5833_v48 = vld [vmem:[%s7087_s10 + $0x100] sm:$0xe]  ;;  %v5880_v15 = vcombine.low %v8736_v13, %v8745_v47  ;;  %v4681_v37 = vrot.slane %v4679_v61, 4  ;;  %v7009_v8 = vld [vmem:[%s7087_s10 + $0xe4] sm:$0xf] }
 0x12f   : > { %6549 = vmatprep.subr.bf16.mxu1 %v6997_v20  ;;  %6511 = vmatprep.mubr.bf16.mxu0 %v5867_v40  ;;  %v5849_v42 = vrot.slane %v5833_v48, 9  ;;  %v5526_v2 = vld [vmem:[%s7087_s10 + $0xa0] sm:$0xf] }
 0x130   : > { %v4603_v49 = vsel %vm7400_vm5, %v5838_v31, %v4602_v44  ;;  %v8766_v44 = vsel %vm7400_vm5, %v4681_v37, %v4682_v24  ;;  %v2355_v18 = vshrl.u32 %v5526_v2, 16  ;;  %v2358_v14 = vshll.u32 %v5526_v2, 16  ;;  %v6939_v31 = vld [vmem:[%s7087_s10 + $0xc0] sm:$0xff]  }
 0x131   : > { %6284 = vmatmul.mubr.bf16.gmra.mrb[12].mxu1 %v6934_v32  ;;  %v7000_v32 = vld [vmem:[%s7087_s10 + $0x58] sm:$0x1]  ;;  %v8761_v53 = vsel %vm7400_vm5, %v5849_v42, %v4679_v61 }
 0x132   : > { %6287 = vmatprep.mubr.bf16.mxu1 %v6936_v35  ;;  %6557 = vmatpush3.bf16.msra.mxu1 %v6997_v20  ;;  %v4605_v40 = vrot.slane %v7000_v32, 5  ;;  %v5523_v35 = vld [vmem:[%s7087_s10 + $0x90] sm:$0xf]  ;;  %v5881_v54 = vcombine.low %v8761_v53, %v8766_v44 }
 0x133   : > { %6550 = vmatprep.subr.bf16.mxu1 %v6999_v45  ;;  %v2331_v58 = vshrl.u32 %v5523_v35, 16  ;;  %v2334_v28 = vshll.u32 %v5523_v35, 16  ;;  %v6940_v32 = vld [vmem:[%s7087_s10 + $0xd0] sm:$0xff]  }
 0x134   : > { %v4606_v20 = vsel %vm7400_vm5, %v4604_v6, %v4605_v40  ;;  %v2346_v6 = vrot.slane %v2344_v30, 4  ;;  %v5529_v40 = vld [vmem:[%s7087_s10 + $0xb0] sm:$0xf] }
 0x135   : > { %v5870_v41 = vcombine.low %v4603_v49, %v4606_v20  ;;  %v2336_v48 = vrot.slane %v2334_v28, 5  ;;  %v2379_v24 = vshrl.u32 %v5529_v40, 16  ;;  %v2382_v49 = vshll.u32 %v5529_v40, 16  ;;  %v7003_v20 = vld [vmem:[%s7087_s10 + $0xb4] sm:$0xf] }
 0x136   : > { %6558 = vmatpush3.bf16.msra.mxu1 %v6999_v45  ;;  %6512 = vmatmul.mubr.bf16.vlgmr.msra.gmra.mrb[0].mxu0 %v5868_v23  ;;  %v2333_v45 = vrot.slane %v2331_v58, 4  ;;  %v2342_v23 = vrot.slane %v2340_v17, 5  ;;  %v2388_v2 = vshll.u32 %v7003_v20, 16  ;;  %v2392_v37 = vshrl.u32 %v7003_v20, 16  ;;  %v5532_v28 = vld [vmem:[%s7087_s10 + $0xc0] sm:$0xf] }
 0x137   : > { %6515 = vmatprep.mubr.bf16.mxu0 %v5869_v26  ;;  %v2360_v26 = vrot.slane %v2358_v14, 5  ;;  %v2381_v39 = vrot.slane %v2379_v24, 4  ;;  %v2384_v63 = vrot.slane %v2382_v49, 5  ;;  %v6942_v14 = vld [vmem:[%s7087_s10 + $0xf0] sm:$0xff]  }
 0x138   : > { %v2337_v42 = vor.u32 %v2336_v48, %v2333_v45  ;;  %v2347_v61 = vor.u32 %v2346_v6, %v2342_v23  ;;  %v2403_v45 = vshrl.u32 %v5532_v28, 16  ;;  %v2406_v48 = vshll.u32 %v5532_v28, 16 }
 0x139   : > { %6288 = vmatmul.mubr.bf16.gmra.mrb[16].mxu1 %v6937_v62  ;;  %v2357_v62 = vrot.slane %v2355_v18, 4 }
 0x13a   : > { %6291 = vmatprep.mubr.bf16.mxu1 %v6938_v12  ;;  %v7002_v12 = vld [vmem:[%s7087_s10 + $0x98] sm:$0x1]  ;;  %v2338_v30 = vrot.slane %v2337_v42, 4  ;;  %v2348_v18 = vrot.slane %v2347_v61, 4 }
 0x13b   : > { %v2350_v35 = vshll.u32 %v7002_v12, 16  ;;  %v2361_v58 = vor.u32 %v2360_v26, %v2357_v62 }
 0x13c   : > { %v8792_v24 = vsel %vm7119_vm2, %v2338_v30, %v2342_v23  ;;  %v6943_v30 = vld [vmem:[%s7087_s10 + $0x100] sm:$0xff]  }
 0x13d   : > { %v2352_v17 = vrot.slane %v2350_v35, 5  ;;  %v2362_v6 = vrot.slane %v2361_v58, 4  ;;  %v7005_v35 = vld [vmem:[%s7087_s10 + $0xd4] sm:$0xf]  ;;  %v9149_v58 = vld [vmem:[#allocation18_spill] sm:$0xff] }
 0x13e   : > { %6516 = vmatmul.mubr.bf16.gmra.mrb[4].mxu0 %v5870_v41  ;;  %v2390_v41 = vrot.slane %v2388_v2, 5  ;;  %v2436_v42 = vshll.u32 %v7005_v35, 16  ;;  %v2440_v61 = vshrl.u32 %v7005_v35, 16  ;;  %v2405_v2 = vrot.slane %v2403_v45, 4  ;;  %v5541_v35 = vld [vmem:[%s7087_s10 + $0xf0] sm:$0xf] }
 0x13f   : > { %6519 = vmatprep.mubr.bf16.mxu0 %v5871_v27  ;;  %v5535_v27 = vld [vmem:[%s7087_s10 + $0xd0] sm:$0xf]  ;;  %v8796_v49 = vsel %vm7119_vm2, %v2348_v18, %v2352_v17  ;;  %v8802_v29 = vsel %vm7119_vm2, %v2362_v6, %v9149_v58 }
 0x140   : > { %v2427_v62 = vshrl.u32 %v5535_v27, 16  ;;  %v2430_v26 = vshll.u32 %v5535_v27, 16  ;;  %v2442_v17 = vrot.slane %v2440_v61, 4  ;;  %v5571_v18 = vcombine.low %v8792_v24, %v8796_v49 }
 0x141   : > { %6292 = vmatmul.mubr.bf16.gmra.mrb[20].mxu1 %v6939_v31  ;;  %v2394_v31 = vrot.slane %v2392_v37, 4  ;;  %v2408_v37 = vrot.slane %v2406_v48, 5  ;;  %v5538_v48 = vld [vmem:[%s7087_s10 + $0xe0] sm:$0xf]  ;;  %v5572_v6 = vcombine.low %v8802_v29, %v8566_v5 }
 0x142   : > { %6295 = vmatprep.mubr.bf16.mxu1 %v6940_v32  ;;  %v7004_v32 = vld [vmem:[%s7087_s10 + $0xc4] sm:$0xf]  ;;  %v2429_v23 = vrot.slane %v2427_v62, 4  ;;  %v2432_v28 = vrot.slane %v2430_v26, 5  ;;  %v7008_v62 = vld [vmem:[%s7087_s10 + $0xd8] sm:$0x1] }
 0x143   : > { %v2412_v40 = vshll.u32 %v7004_v32, 16  ;;  %v2416_v12 = vshrl.u32 %v7004_v32, 16  ;;  %v2395_v20 = vor.u32 %v2394_v31, %v2390_v41  ;;  %v7007_v31 = vld [vmem:[%s7087_s10 + $0xc8] sm:$0x1]  ;;  %v2446_v26 = vshll.u32 %v7008_v62, 16 }
 0x144   : > { %v2422_v45 = vshll.u32 %v7007_v31, 16  ;;  %v2454_v61 = vshll.u32 %v5538_v48, 16 }
 0x145   : > { %v2414_v51 = vrot.slane %v2412_v40, 5  ;;  %v2396_v27 = vrot.slane %v2395_v20, 4  ;;  %v2433_v40 = vor.u32 %v2432_v28, %v2429_v23  ;;  %v2448_v28 = vrot.slane %v2446_v26, 5 }
 0x146   : > { %6520 = vmatmul.mubr.bf16.gmra.mrb[8].mxu0 %v5872_v34  ;;  %v2385_v34 = vor.u32 %v2384_v63, %v2381_v39  ;;  %v2400_v39 = vrot.slane %v2398_v43, 5  ;;  %v2460_v43 = vshll.u32 %v7009_v8, 16  ;;  %v2424_v20 = vrot.slane %v2422_v45, 5  ;;  %v5544_v45 = vld [vmem:[%s7087_s10 + $0x100] sm:$0xf] }
 0x147   : > { %6523 = vmatprep.mubr.bf16.mxu0 %v5873_v4  ;;  %v2418_v4 = vrot.slane %v2416_v12, 4  ;;  %v2499_v62 = vshrl.u32 %v5544_v45, 16  ;;  %v2502_v26 = vshll.u32 %v5544_v45, 16 }
 0x148   : > { %v2386_v63 = vrot.slane %v2385_v34, 4  ;;  %v2464_v34 = vshrl.u32 %v7009_v8, 16  ;;  %v8826_v55 = vsel %vm7119_vm2, %v2396_v27, %v2400_v39  ;;  %v7013_v8 = vld [vmem:[%s7087_s10 + $0xf8] sm:$0x1] }
 0x149   : > { %6296 = vmatmul.mubr.bf16.gmra.mrb[24].mxu1 %v6941_v10  ;;  %v2438_v10 = vrot.slane %v2436_v42, 5  ;;  %v2419_v32 = vor.u32 %v2418_v4, %v2414_v51  ;;  %v2451_v42 = vshrl.u32 %v5538_v48, 16  ;;  %v2434_v4 = vrot.slane %v2433_v40, 4 }
 0x14a   : > { %6299 = vmatprep.mubr.bf16.mxu1 %v6942_v14  ;;  %v2409_v14 = vor.u32 %v2408_v37, %v2405_v2  ;;  %v8822_v56 = vsel %vm7119_vm2, %v2386_v63, %v2390_v41  ;;  %v2475_v2 = vshrl.u32 %v5541_v35, 16  ;;  %v2478_v37 = vshll.u32 %v5541_v35, 16  ;;  %v7012_v35 = vld [vmem:[%s7087_s10 + $0x104] sm:$0xf] }
 0x14b   : > { %v2443_v12 = vor.u32 %v2442_v17, %v2438_v10  ;;  %v2420_v58 = vrot.slane %v2419_v32, 4  ;;  %v2453_v17 = vrot.slane %v2451_v42, 4  ;;  %v2462_v41 = vrot.slane %v2460_v43, 5 }
 0x14c   : > { %v5573_v39 = vcombine.low %v8822_v56, %v8826_v55  ;;  %v2477_v63 = vrot.slane %v2475_v2, 4  ;;  %v2480_v27 = vrot.slane %v2478_v37, 5  ;;  %v8845_v40 = vsel %vm7119_vm2, %v2434_v4, %v2438_v10 }
 0x14d   : > { %v2444_v23 = vrot.slane %v2443_v12, 4  ;;  %v8841_v32 = vsel %vm7119_vm2, %v2420_v58, %v2424_v20  ;;  %v2508_v10 = vshll.u32 %v7012_v35, 16  ;;  %v2512_v42 = vshrl.u32 %v7012_v35, 16 }
 0x14e   : > { %6524 = vmatmul.mubr.bf16.gmra.mrb[12].mxu0 %v5874_v50  ;;  %v2410_v50 = vrot.slane %v2409_v14, 4  ;;  %v2486_v14 = vrot.slane %v2484_v11, 5  ;;  %v2494_v43 = vshll.u32 %v7013_v8, 16  ;;  %v2501_v20 = vrot.slane %v2499_v62, 4 }
 0x14f   : > { %6527 = vmatprep.mubr.bf16.mxu0 %v5875_v60  ;;  %v2488_v60 = vshrl.u32 %v7010_v46, 16  ;;  %v8852_v19 = vsel %vm7119_vm2, %v2444_v23, %v2448_v28  ;;  %v2504_v2 = vrot.slane %v2502_v26, 5  ;;  %v2510_v37 = vrot.slane %v2508_v10, 5 }
 0x150   : > { %v8837_v48 = vsel %vm7119_vm2, %v2410_v50, %v2414_v51  ;;  %v7011_v51 = vld [vmem:[%s7087_s10 + $0xe8] sm:$0x1]  ;;  %v5575_v38 = vcombine.low %v8845_v40, %v8852_v19  ;;  %v2514_v46 = vrot.slane %v2512_v42, 4  ;;  %v2496_v58 = vrot.slane %v2494_v43, 5  ;;  %v8930_v43 = vld [vmem:[%s9047_s2] ss:$0 sm:$0xff] }
 0x151   : > { %6300 = vmatmul.mubr.bf16.gmra.mrb[28].mxu1 %v6943_v30  ;;  %v2456_v30 = vrot.slane %v2454_v61, 5  ;;  %v2490_v31 = vrot.slane %v2488_v60, 4  ;;  %v2470_v12 = vshll.u32 %v7011_v51, 16  ;;  %v2481_v61 = vor.u32 %v2480_v27, %v2477_v63 }
 0x152   : > { %6335 = vmatprep.mubr.bf16.mxu1 %v5571_v18  ;;  %v2466_v18 = vrot.slane %v2464_v34, 4  ;;  %v5574_v9 = vcombine.low %v8837_v48, %v8841_v32  ;;  %v4686_v23 = vrot.slane %v8588_v33, 5 }
 0x153   : > { %v2457_v22 = vor.u32 %v2456_v30, %v2453_v17  ;;  %v2472_v50 = vrot.slane %v2470_v12, 5  ;;  %v2482_v11 = vrot.slane %v2481_v61, 4  ;;  %v2505_v17 = vor.u32 %v2504_v2, %v2501_v20 }
 0x154   : > { %v2515_v30 = vor.u32 %v2514_v46, %v2510_v37 }
 0x155   : > { %v8880_v52 = vsel %vm7119_vm2, %v2482_v11, %v2486_v14  ;;  %v2506_v63 = vrot.slane %v2505_v17, 4 }
 0x156   : > { %6528 = vmatmul.mubr.bf16.gmra.mrb[16].mxu0 %v5876_v57  ;;  %v2467_v57 = vor.u32 %v2466_v18, %v2462_v41  ;;  %v4689_v18 = vrot.slane %v8633_v7, 5  ;;  %v2516_v27 = vrot.slane %v2515_v30, 4 }
 0x157   : > { %6531 = vmatprep.mubr.bf16.mxu0 %v5877_v21  ;;  %v2458_v21 = vrot.slane %v2457_v22, 4  ;;  %v8903_v45 = vsel %vm7119_vm2, %v2506_v63, %v2510_v37  ;;  %v9150_v37 = vld [vmem:[#allocation4_spill] sm:$0xff] }
 0x158   : > { %v2468_v34 = vrot.slane %v2467_v57, 4  ;;  %v5150_v46 = vunpack.c.l.bf16 %v9150_v37 }
 0x159   : > { %6336 = vmatmul.mubr.bf16.vlgmr.msra.gmra.mrb[16].mxu1 %v5572_v6  ;;  %v2491_v6 = vor.u32 %v2490_v31, %v2486_v14  ;;  %v8869_v4 = vsel %vm7119_vm2, %v2458_v21, %v2462_v41  ;;  %v4688_v41 = vrot.slane %v4686_v23, 4  ;;  %v2520_v31 = vrot.slane %v2518_v1, 5 }
 0x15a   : > { %6339 = vmatprep.mubr.bf16.mxu1 %v5573_v39  ;;  %v8874_v28 = vsel %vm7119_vm2, %v2468_v34, %v2472_v50  ;;  %v5151_v1 = vunpack.c.l.bf16 %v9152_v16 }
 0x15b   : > { %v2492_v60 = vrot.slane %v2491_v6, 4  ;;  %v5576_v33 = vcombine.low %v8869_v4, %v8874_v28  ;;  %v4690_v7 = vsel %vm7400_vm5, %v4688_v41, %v4689_v18  ;;  %v8907_v13 = vsel %vm7119_vm2, %v2516_v27, %v2520_v31 }
 0x15d   : > { %v8884_v3 = vsel %vm7119_vm2, %v2492_v60, %v2496_v58  ;;  %v9151_v58 = vld [vmem:[#allocation2_spill] sm:$0xff] }
 0x15e   : > { %6532 = vmatmul.mubr.bf16.gmra.mrb[20].mxu0 %v5878_v25  ;;  %v5834_v25 = vld [vmem:[%s7087_s10 + $0x110] sm:$0xe]  ;;  %v5577_v39 = vcombine.low %v8880_v52, %v8884_v3 }
 0x15f   : > { %6535 = vmatprep.mubr.bf16.mxu0 %v5879_v0  ;;  %v5850_v0 = vrot.slane %v5834_v25, 9 }
 0x161   : > { %6340 = vmatmul.mubr.bf16.gmra.mrb[20].mxu1 %v5574_v9  ;;  %v4687_v14 = vsel %vm7400_vm5, %v5850_v0, %v4686_v23  ;;  %v5148_v23 = vunpack.c.l.bf16 %v9151_v58  ;;  %v9153_v0 = vld [vmem:[#allocation3_spill] sm:$0xff] }
 0x162   : > { %6343 = vmatprep.mubr.bf16.mxu1 %v5575_v38  ;;  %v5882_v47 = vcombine.low %v4687_v14, %v4690_v7  ;;  %v5149_v41 = vunpack.c.l.bf16 %v9153_v0 }
 0x166   : > { %6536 = vmatmul.mubr.bf16.gmra.mrb[24].mxu0 %v5880_v15  ;;  %v5578_v15 = vcombine.low %v8903_v45, %v8907_v13 }
 0x167   : > { %6539 = vmatprep.mubr.bf16.mxu0 %v5881_v54 }
 0x169   : > { %6344 = vmatmul.mubr.bf16.gmra.mrb[24].mxu1 %v5576_v33 }
 0x16a   : > { %6347 = vmatprep.mubr.bf16.mxu1 %v5577_v39 }
 0x16e   : > { %6540 = vmatmul.mubr.bf16.gmra.mrb[28].mxu0 %v5882_v47 }
 0x171   : > { %6348 = vmatmul.mubr.bf16.gmra.mrb[28].mxu1 %v5578_v15 }
 0x1ec   : > { %v6273_v53 = vpop.f32.mrb[0].mxu1 }
 0x1ed   : > { %v1931_v44 = vpop.f32.mrb[1].mxu1 }
 0x1ee   : > { %v6274_v54 = vpop.f32.mrb[2].mxu1 }
 0x1ef   : > { %v1934_v59 = vpop.f32.mrb[3].mxu1 }
 0x1f4   : > { %v6277_v22 = vpop.f32.mrb[4].mxu1 }
 0x1f5   : > { %v1947_v57 = vpop.f32.mrb[5].mxu1 }
 0x1f6   : > { %v6278_v51 = vpop.f32.mrb[6].mxu1 }
 0x1f7   : > { %v1950_v12 = vpop.f32.mrb[7].mxu1 }
 0x1fc   : > { %v8911_v62 = vpop.f32.mrb[8].mxu1 }
 0x1fd   : > { %v8913_v26 = vpop.f32.mrb[9].mxu1 }
 0x1fe   : > { %v8915_v36 = vpop.f32.mrb[10].mxu1 }
 0x1ff   : > { %v8917_v35 = vpop.f32.mrb[11].mxu1 }
 0x204   : > { %v8919_v10 = vpop.f32.mrb[12].mxu1 }
 0x205   : > { %v8921_v42 = vpop.f32.mrb[13].mxu1 }
 0x206   : > { %v8923_v61 = vpop.f32.mrb[14].mxu1 }
 0x207   : > { %v8925_v6 = vpop.f32.mrb[15].mxu1 }
 0x209   : > { %v6513_v8 = vpop.f32.mrb[0].mxu0 }
 0x20a   : > { %v6559_v9 = vadd.f32 %v6513_v8, %v6273_v53  ;;  %v4854_v38 = vpop.f32.mrb[1].mxu0 }
 0x20b   : > { %v6560_v21 = vadd.f32 %v4854_v38, %v1931_v44  ;;  %v6514_v34 = vpop.f32.mrb[2].mxu0 }
 0x20c   : > { %v5022_v50 = vadd.f32 %v6559_v9, %v8930_v43  ;;  %v6561_v20 = vadd.f32 %v6514_v34, %v6274_v54  ;;  %v4857_v2 = vpop.f32.mrb[3].mxu0 }
 0x20d   : > { %v5020_v11 = vadd.f32 %v6560_v21, %v8930_v43  ;;  %v6562_v60 = vadd.f32 %v4857_v2, %v1934_v59 }
 0x20e   : > { %vm5054_vm6 = vcmp.ge.f32.partialorder %v5022_v50, 0.0  ;;  %v5086_v17 = vmul.f32 0.1, %v5022_v50  ;;  %v5023_v30 = vadd.f32 %v6561_v20, %v8930_v43 }
 0x20f   : > { %vm5052_vm7 = vcmp.ge.f32.partialorder %v5020_v11, 0.0  ;;  %v5084_v25 = vmul.f32 0.1, %v5020_v11  ;;  %v5021_v33 = vadd.f32 %v6562_v60, %v8930_v43  ;;  %v9156_v60 = vld [vmem:[#allocation9_spill] sm:$0xff] }
 0x210   : > { %v5118_v18 = vsel %vm5054_vm6, %v5022_v50, %v5086_v17  ;;  %vm5055_vm8 = vcmp.ge.f32.partialorder %v5023_v30, 0.0  ;;  %v5087_v39 = vmul.f32 0.1, %v5023_v30  ;;  %v9154_v50 = vld [vmem:[#allocation8_spill] sm:$0xff]  ;;  %v5155_v58 = vunpack.c.l.bf16 %v9156_v60  ;;  %v9157_v17 = vld [vmem:[#allocation7_spill] sm:$0xff] }
 0x211   : > { %v5182_v63 = vadd.f32 %v5150_v46, %v5118_v18  ;;  %v5116_v27 = vsel %vm5052_vm7, %v5020_v11, %v5084_v25  ;;  %vm5053_vm9 = vcmp.ge.f32.partialorder %v5021_v33, 0.0  ;;  %v5085_v31 = vmul.f32 0.1, %v5021_v33  ;;  %v6517_v14 = vpop.f32.mrb[4].mxu0 }
 0x212   : > { %v5180_v7 = vadd.f32 %v5148_v23, %v5116_v27  ;;  %v5119_v47 = vsel %vm5055_vm8, %v5023_v30, %v5087_v39  ;;  %v6563_v15 = vadd.f32 %v6517_v14, %v6277_v22  ;;  %v4870_v53 = vpop.f32.mrb[5].mxu0  ;;  %v5154_v20 = vunpack.c.l.bf16 %v9154_v50  ;;  %v9155_v22 = vld [vmem:[#allocation6_spill] sm:$0xff] }
 0x213   : > { %5214 = vst [vmem:[%s8944_s13 + $0x10] sm:$0xff] %v5182_v63  ;;  %v5183_v44 = vadd.f32 %v5151_v1, %v5119_v47  ;;  %v5117_v54 = vsel %vm5053_vm9, %v5021_v33, %v5085_v31  ;;  %v6564_v59 = vadd.f32 %v4870_v53, %v1947_v57  ;;  %v6518_v8 = vpop.f32.mrb[6].mxu0  ;;  %v5152_v46 = vunpack.c.l.bf16 %v9155_v22 }
 0x214   : > { %5212 = vst [vmem:[%s8944_s13] sm:$0xff] %v5180_v7  ;;  %v5181_v9 = vadd.f32 %v5149_v41, %v5117_v54  ;;  %v5026_v38 = vadd.f32 %v6563_v15, %v8930_v43  ;;  %v6565_v21 = vadd.f32 %v6518_v8, %v6278_v51  ;;  %v4873_v34 = vpop.f32.mrb[7].mxu0  ;;  %v5153_v30 = vunpack.c.l.bf16 %v9157_v17  ;;  %v9158_v54 = vld [vmem:[#allocation12_spill] sm:$0xff] }
 0x215   : > { %5215 = vst [vmem:[%s8944_s13 + $0x18] sm:$0xff] %v5183_v44  ;;  %v5024_v2 = vadd.f32 %v6564_v59, %v8930_v43  ;;  %v6566_v37 = vadd.f32 %v4873_v34, %v1950_v12  ;;  %v5158_v59 = vunpack.c.l.bf16 %v9158_v54  ;;  %v9160_v34 = vld [vmem:[#allocation13_spill] sm:$0xff] }
 0x216   : > { %5213 = vst [vmem:[%s8944_s13 + $0x8] sm:$0xff] %v5181_v9  ;;  %vm5058_vm10 = vcmp.ge.f32.partialorder %v5026_v38, 0.0  ;;  %v5090_v11 = vmul.f32 0.1, %v5026_v38  ;;  %v5027_v57 = vadd.f32 %v6565_v21, %v8930_v43  ;;  %v9159_v9 = vld [vmem:[#allocation10_spill] sm:$0xff]  ;;  %v5159_v50 = vunpack.c.l.bf16 %v9160_v34 }
 0x217   : > { %vm5056_vm11 = vcmp.ge.f32.partialorder %v5024_v2, 0.0  ;;  %v5088_v23 = vmul.f32 0.1, %v5024_v2  ;;  %v5025_v51 = vadd.f32 %v6566_v37, %v8930_v43 }
 0x218   : > { %v5122_v16 = vsel %vm5058_vm10, %v5026_v38, %v5090_v11  ;;  %vm5059_vm12 = vcmp.ge.f32.partialorder %v5027_v57, 0.0  ;;  %v5091_v12 = vmul.f32 0.1, %v5027_v57  ;;  %v5156_v38 = vunpack.c.l.bf16 %v9159_v9 }
 0x219   : > { %v5186_v1 = vadd.f32 %v5154_v20, %v5122_v16  ;;  %v5120_v25 = vsel %vm5056_vm11, %v5024_v2, %v5088_v23  ;;  %vm5057_vm13 = vcmp.ge.f32.partialorder %v5025_v51, 0.0  ;;  %v5089_v33 = vmul.f32 0.1, %v5025_v51  ;;  %v6521_v0 = vpop.f32.mrb[8].mxu0  ;;  %v9161_v2 = vld [vmem:[#allocation11_spill] sm:$0xff] }
 0x21a   : > { %v5184_v41 = vadd.f32 %v5152_v46, %v5120_v25  ;;  %v5123_v18 = vsel %vm5059_vm12, %v5027_v57, %v5091_v12  ;;  %v6567_v39 = vadd.f32 %v6521_v0, %v8911_v62  ;;  %v4886_v63 = vpop.f32.mrb[9].mxu0  ;;  %v5157_v37 = vunpack.c.l.bf16 %v9161_v2 }
 0x21b   : > { %5218 = vst [vmem:[%s8944_s13 + $0x30] sm:$0xff] %v5186_v1  ;;  %v5187_v27 = vadd.f32 %v5155_v58, %v5123_v18  ;;  %v5121_v31 = vsel %vm5057_vm13, %v5025_v51, %v5089_v33  ;;  %v6568_v14 = vadd.f32 %v4886_v63, %v8913_v26  ;;  %v6522_v7 = vpop.f32.mrb[10].mxu0  ;;  %v9162_v18 = vld [vmem:[#allocation16_spill] sm:$0xff] }
 0x21c   : > { %5216 = vst [vmem:[%s8944_s13 + $0x20] sm:$0xff] %v5184_v41  ;;  %v5185_v47 = vadd.f32 %v5153_v30, %v5121_v31  ;;  %v5030_v15 = vadd.f32 %v6567_v39, %v8930_v43  ;;  %v6569_v53 = vadd.f32 %v6522_v7, %v8915_v36  ;;  %v4889_v44 = vpop.f32.mrb[11].mxu0  ;;  %v5162_v39 = vunpack.c.l.bf16 %v9162_v18  ;;  %v9164_v7 = vld [vmem:[#allocation17_spill] sm:$0xff] }
 0x21d   : > { %5219 = vst [vmem:[%s8944_s13 + $0x38] sm:$0xff] %v5187_v27  ;;  %v5028_v62 = vadd.f32 %v6568_v14, %v8930_v43  ;;  %v6570_v8 = vadd.f32 %v4889_v44, %v8917_v35  ;;  %v9163_v27 = vld [vmem:[#allocation14_spill] sm:$0xff] }
 0x21e   : > { %5217 = vst [vmem:[%s8944_s13 + $0x28] sm:$0xff] %v5185_v47  ;;  %vm5062_vm14 = vcmp.ge.f32.partialorder %v5030_v15, 0.0  ;;  %v5094_v26 = vmul.f32 0.1, %v5030_v15  ;;  %v5031_v21 = vadd.f32 %v6569_v53, %v8930_v43  ;;  %v5160_v31 = vunpack.c.l.bf16 %v9163_v27  ;;  %v9165_v53 = vld [vmem:[#allocation15_spill] sm:$0xff] }
 0x21f   : > { %vm5060_vm15 = vcmp.ge.f32.partialorder %v5028_v62, 0.0  ;;  %v5092_v36 = vmul.f32 0.1, %v5028_v62  ;;  %v5029_v20 = vadd.f32 %v6570_v8, %v8930_v43  ;;  %v5163_v47 = vunpack.c.l.bf16 %v9164_v7 }
 0x220   : > { %v5126_v22 = vsel %vm5062_vm14, %v5030_v15, %v5094_v26  ;;  %vm5063_vm0 = vcmp.ge.f32.partialorder %v5031_v21, 0.0  ;;  %v5095_v35 = vmul.f32 0.1, %v5031_v21  ;;  %v5161_v44 = vunpack.c.l.bf16 %v9165_v53 }
 0x221   : > { %v5190_v46 = vadd.f32 %v5158_v59, %v5126_v22  ;;  %v5124_v11 = vsel %vm5060_vm15, %v5028_v62, %v5092_v36  ;;  %vm5061_vm1 = vcmp.ge.f32.partialorder %v5029_v20, 0.0  ;;  %v5093_v57 = vmul.f32 0.1, %v5029_v20  ;;  %v6525_v60 = vpop.f32.mrb[12].mxu0 }
 0x222   : > { %v5188_v58 = vadd.f32 %v5156_v38, %v5124_v11  ;;  %v5127_v23 = vsel %vm5063_vm0, %v5031_v21, %v5095_v35  ;;  %v6571_v51 = vadd.f32 %v6525_v60, %v8919_v10  ;;  %v4902_v17 = vpop.f32.mrb[13].mxu0 }
 0x223   : > { %5222 = vst [vmem:[%s8944_s13 + $0x50] sm:$0xff] %v5190_v46  ;;  %v5191_v30 = vadd.f32 %v5159_v50, %v5127_v23  ;;  %v5125_v16 = vsel %vm5061_vm1, %v5029_v20, %v5093_v57  ;;  %v6572_v12 = vadd.f32 %v4902_v17, %v8921_v42  ;;  %v6526_v1 = vpop.f32.mrb[14].mxu0  ;;  %v5166_v23 = vunpack.c.l.bf16 %v8802_v29 }
 0x224   : > { %5220 = vst [vmem:[%s8944_s13 + $0x40] sm:$0xff] %v5188_v58  ;;  %v5189_v25 = vadd.f32 %v5157_v37, %v5125_v16  ;;  %v5034_v33 = vadd.f32 %v6571_v51, %v8930_v43  ;;  %v6573_v0 = vadd.f32 %v6526_v1, %v8923_v61  ;;  %v4905_v41 = vpop.f32.mrb[15].mxu0 }
 0x225   : > { %5223 = vst [vmem:[%s8944_s13 + $0x58] sm:$0xff] %v5191_v30  ;;  %v5032_v10 = vadd.f32 %v6572_v12, %v8930_v43  ;;  %v6574_v63 = vadd.f32 %v4905_v41, %v8925_v6  ;;  %v5164_v30 = vunpack.c.l.bf16 %v8792_v24 }
 0x226   : > { %5221 = vst [vmem:[%s8944_s13 + $0x48] sm:$0xff] %v5189_v25  ;;  %vm5066_vm2 = vcmp.ge.f32.partialorder %v5034_v33, 0.0  ;;  %v5098_v42 = vmul.f32 0.1, %v5034_v33  ;;  %v5035_v14 = vadd.f32 %v6573_v0, %v8930_v43  ;;  %v5167_v25 = vunpack.c.l.bf16 %v8566_v5 }
 0x227   : > { %vm5064_vm3 = vcmp.ge.f32.partialorder %v5032_v10, 0.0  ;;  %v5096_v61 = vmul.f32 0.1, %v5032_v10  ;;  %v5033_v15 = vadd.f32 %v6574_v63, %v8930_v43  ;;  %v5165_v0 = vunpack.c.l.bf16 %v8796_v49 }
 0x228   : > { %v5130_v54 = vsel %vm5066_vm2, %v5034_v33, %v5098_v42  ;;  %vm5067_vm4 = vcmp.ge.f32.partialorder %v5035_v14, 0.0  ;;  %v5099_v59 = vmul.f32 0.1, %v5035_v14 }
 0x229   : > { %v5194_v6 = vadd.f32 %v5162_v39, %v5130_v54  ;;  %v5128_v62 = vsel %vm5064_vm3, %v5032_v10, %v5096_v61  ;;  %vm5065_vm5 = vcmp.ge.f32.partialorder %v5033_v15, 0.0  ;;  %v5097_v8 = vmul.f32 0.1, %v5033_v15  ;;  %v6529_v9 = vpop.f32.mrb[16].mxu0 }
 0x22a   : > { %v5192_v38 = vadd.f32 %v5160_v31, %v5128_v62  ;;  %v5131_v26 = vsel %vm5067_vm4, %v5035_v14, %v5099_v59  ;;  %v4918_v34 = vpop.f32.mrb[17].mxu0  ;;  %v5170_v62 = vunpack.c.l.bf16 %v8837_v48 }
 0x22b   : > { %5226 = vst [vmem:[%s8944_s13 + $0x70] sm:$0xff] %v5194_v6  ;;  %v5195_v50 = vadd.f32 %v5163_v47, %v5131_v26  ;;  %v5129_v36 = vsel %vm5065_vm5, %v5033_v15, %v5097_v8  ;;  %v6530_v37 = vpop.f32.mrb[18].mxu0 }
 0x22c   : > { %v6337_v21 = vpop.f32.mrb[16].mxu1  ;;  %5224 = vst [vmem:[%s8944_s13 + $0x60] sm:$0xff] %v5192_v38  ;;  %v5193_v22 = vadd.f32 %v5161_v44, %v5129_v36  ;;  %v4921_v11 = vpop.f32.mrb[19].mxu0  ;;  %v5168_v38 = vunpack.c.l.bf16 %v8822_v56 }
 0x22d   : > { %v6575_v20 = vadd.f32 %v6529_v9, %v6337_v21  ;;  %v2781_v2 = vpop.f32.mrb[17].mxu1  ;;  %5227 = vst [vmem:[%s8944_s13 + $0x78] sm:$0xff] %v5195_v50 }
 0x22e   : > { %v6576_v35 = vadd.f32 %v4918_v34, %v2781_v2  ;;  %v6338_v46 = vpop.f32.mrb[18].mxu1  ;;  %5225 = vst [vmem:[%s8944_s13 + $0x68] sm:$0xff] %v5193_v22  ;;  %v5171_v34 = vunpack.c.l.bf16 %v8841_v32 }
 0x22f   : > { %v5038_v57 = vadd.f32 %v6575_v20, %v8930_v43  ;;  %v6577_v60 = vadd.f32 %v6530_v37, %v6338_v46  ;;  %v2784_v58 = vpop.f32.mrb[19].mxu1  ;;  %v5169_v20 = vunpack.c.l.bf16 %v8826_v55 }
 0x230   : > { %v5036_v51 = vadd.f32 %v6576_v35, %v8930_v43  ;;  %v6578_v17 = vadd.f32 %v4921_v11, %v2784_v58 }
 0x231   : > { %vm5070_vm6 = vcmp.ge.f32.partialorder %v5038_v57, 0.0  ;;  %v5102_v16 = vmul.f32 0.1, %v5038_v57  ;;  %v5039_v12 = vadd.f32 %v6577_v60, %v8930_v43  ;;  %v6533_v18 = vpop.f32.mrb[20].mxu0 }
 0x232   : > { %vm5068_vm7 = vcmp.ge.f32.partialorder %v5036_v51, 0.0  ;;  %v5100_v1 = vmul.f32 0.1, %v5036_v51  ;;  %v5037_v33 = vadd.f32 %v6578_v17, %v8930_v43  ;;  %v4934_v27 = vpop.f32.mrb[21].mxu0 }
 0x233   : > { %v5134_v41 = vsel %vm5070_vm6, %v5038_v57, %v5102_v16  ;;  %vm5071_vm8 = vcmp.ge.f32.partialorder %v5039_v12, 0.0  ;;  %v5103_v29 = vmul.f32 0.1, %v5039_v12  ;;  %v6534_v7 = vpop.f32.mrb[22].mxu0 }
 0x234   : > { %v5198_v39 = vadd.f32 %v5166_v23, %v5134_v41  ;;  %v5132_v10 = vsel %vm5068_vm7, %v5036_v51, %v5100_v1  ;;  %vm5069_vm9 = vcmp.ge.f32.partialorder %v5037_v33, 0.0  ;;  %v5101_v24 = vmul.f32 0.1, %v5037_v33  ;;  %v6341_v63 = vpop.f32.mrb[20].mxu1  ;;  %v4937_v53 = vpop.f32.mrb[23].mxu0 }
 0x235   : > { %v5196_v31 = vadd.f32 %v5164_v30, %v5132_v10  ;;  %v5135_v42 = vsel %vm5071_vm8, %v5039_v12, %v5103_v29  ;;  %v6579_v5 = vadd.f32 %v6533_v18, %v6341_v63  ;;  %v2797_v14 = vpop.f32.mrb[21].mxu1  ;;  %v5172_v18 = vunpack.c.l.bf16 %v8845_v40 }
 0x236   : > { %5230 = vst [vmem:[%s8944_s13 + $0x90] sm:$0xff] %v5198_v39  ;;  %v5199_v49 = vadd.f32 %v5167_v25, %v5135_v42  ;;  %v5133_v47 = vsel %vm5069_vm9, %v5037_v33, %v5101_v24  ;;  %v6580_v61 = vadd.f32 %v4934_v27, %v2797_v14  ;;  %v6342_v15 = vpop.f32.mrb[22].mxu1  ;;  %v5175_v24 = vunpack.c.l.bf16 %v8874_v28 }
 0x237   : > { %5228 = vst [vmem:[%s8944_s13 + $0x80] sm:$0xff] %v5196_v31  ;;  %v5197_v44 = vadd.f32 %v5165_v0, %v5133_v47  ;;  %v5042_v54 = vadd.f32 %v6579_v5, %v8930_v43  ;;  %v6581_v59 = vadd.f32 %v6534_v7, %v6342_v15  ;;  %v2800_v6 = vpop.f32.mrb[23].mxu1  ;;  %v5174_v0 = vunpack.c.l.bf16 %v8869_v4 }
 0x238   : > { %5231 = vst [vmem:[%s8944_s13 + $0x98] sm:$0xff] %v5199_v49  ;;  %v5040_v8 = vadd.f32 %v6580_v61, %v8930_v43  ;;  %v6582_v9 = vadd.f32 %v4937_v53, %v2800_v6  ;;  %v5173_v31 = vunpack.c.l.bf16 %v8852_v19 }
 0x239   : > { %5229 = vst [vmem:[%s8944_s13 + $0x88] sm:$0xff] %v5197_v44  ;;  %vm5074_vm10 = vcmp.ge.f32.partialorder %v5042_v54, 0.0  ;;  %v5106_v26 = vmul.f32 0.1, %v5042_v54  ;;  %v5043_v21 = vadd.f32 %v6581_v59, %v8930_v43  ;;  %v6537_v37 = vpop.f32.mrb[24].mxu0 }
 0x23a   : > { %vm5072_vm11 = vcmp.ge.f32.partialorder %v5040_v8, 0.0  ;;  %v5104_v50 = vmul.f32 0.1, %v5040_v8  ;;  %v5041_v36 = vadd.f32 %v6582_v9, %v8930_v43  ;;  %v4950_v11 = vpop.f32.mrb[25].mxu0 }
 0x23b   : > { %v5138_v48 = vsel %vm5074_vm10, %v5042_v54, %v5106_v26  ;;  %vm5075_vm12 = vcmp.ge.f32.partialorder %v5043_v21, 0.0  ;;  %v5107_v2 = vmul.f32 0.1, %v5043_v21  ;;  %v6538_v23 = vpop.f32.mrb[26].mxu0 }
 0x23c   : > { %v5202_v22 = vadd.f32 %v5170_v62, %v5138_v48  ;;  %v5136_v56 = vsel %vm5072_vm11, %v5040_v8, %v5104_v50  ;;  %vm5073_vm13 = vcmp.ge.f32.partialorder %v5041_v36, 0.0  ;;  %v5105_v35 = vmul.f32 0.1, %v5041_v36  ;;  %v6345_v46 = vpop.f32.mrb[24].mxu1  ;;  %v4953_v16 = vpop.f32.mrb[27].mxu0 }
 0x23d   : > { %v5200_v57 = vadd.f32 %v5168_v38, %v5136_v56  ;;  %v5139_v32 = vsel %vm5075_vm12, %v5043_v21, %v5107_v2  ;;  %v6583_v60 = vadd.f32 %v6537_v37, %v6345_v46  ;;  %v2813_v58 = vpop.f32.mrb[25].mxu1  ;;  %v5178_v21 = vunpack.c.l.bf16 %v8903_v45 }
 0x23e   : > { %5234 = vst [vmem:[%s8944_s13 + $0xb0] sm:$0xff] %v5202_v22  ;;  %v5203_v55 = vadd.f32 %v5171_v34, %v5139_v32  ;;  %v5137_v51 = vsel %vm5073_vm13, %v5041_v36, %v5105_v35  ;;  %v6584_v17 = vadd.f32 %v4950_v11, %v2813_v58  ;;  %v6346_v30 = vpop.f32.mrb[26].mxu1  ;;  %v5176_v36 = vunpack.c.l.bf16 %v8880_v52 }
 0x23f   : > { %5232 = vst [vmem:[%s8944_s13 + $0xa0] sm:$0xff] %v5200_v57  ;;  %v5201_v12 = vadd.f32 %v5169_v20, %v5137_v51  ;;  %v5046_v1 = vadd.f32 %v6583_v60, %v8930_v43  ;;  %v6585_v25 = vadd.f32 %v6538_v23, %v6346_v30  ;;  %v2816_v33 = vpop.f32.mrb[27].mxu1  ;;  %v5179_v2 = vunpack.c.l.bf16 %v8907_v13 }
 0x240   : > { %5235 = vst [vmem:[%s8944_s13 + $0xb8] sm:$0xff] %v5203_v55  ;;  %v5044_v41 = vadd.f32 %v6584_v17, %v8930_v43  ;;  %v6586_v29 = vadd.f32 %v4953_v16, %v2816_v33  ;;  %v5177_v45 = vunpack.c.l.bf16 %v8884_v3 }
 0x241   : > { %5233 = vst [vmem:[%s8944_s13 + $0xa8] sm:$0xff] %v5201_v12  ;;  %vm5078_vm14 = vcmp.ge.f32.partialorder %v5046_v1, 0.0  ;;  %v5110_v39 = vmul.f32 0.1, %v5046_v1  ;;  %v5047_v10 = vadd.f32 %v6585_v25, %v8930_v43  ;;  %v6541_v5 = vpop.f32.mrb[28].mxu0 }
 0x242   : > { %vm5076_vm15 = vcmp.ge.f32.partialorder %v5044_v41, 0.0  ;;  %v5108_v63 = vmul.f32 0.1, %v5044_v41  ;;  %v5045_v27 = vadd.f32 %v6586_v29, %v8930_v43  ;;  %v4966_v47 = vpop.f32.mrb[29].mxu0 }
 0x243   : > { %v5142_v4 = vsel %vm5078_vm14, %v5046_v1, %v5110_v39  ;;  %vm5079_vm0 = vcmp.ge.f32.partialorder %v5047_v10, 0.0  ;;  %v5111_v42 = vmul.f32 0.1, %v5047_v10  ;;  %v6542_v44 = vpop.f32.mrb[30].mxu0 }
 0x244   : > { %v5206_v14 = vadd.f32 %v5174_v0, %v5142_v4  ;;  %v5140_v40 = vsel %vm5076_vm15, %v5044_v41, %v5108_v63  ;;  %vm5077_vm1 = vcmp.ge.f32.partialorder %v5045_v27, 0.0  ;;  %v5109_v7 = vmul.f32 0.1, %v5045_v27  ;;  %v6349_v49 = vpop.f32.mrb[28].mxu1  ;;  %v4969_v62 = vpop.f32.mrb[31].mxu0 }
 0x245   : > { %v5204_v61 = vadd.f32 %v5172_v18, %v5140_v40  ;;  %v5143_v28 = vsel %vm5079_vm0, %v5047_v10, %v5111_v42  ;;  %v6587_v15 = vadd.f32 %v6541_v5, %v6349_v49  ;;  %v2829_v53 = vpop.f32.mrb[29].mxu1 }
 0x246   : > { %5238 = vst [vmem:[%s8944_s13 + $0xd0] sm:$0xff] %v5206_v14  ;;  %v5207_v19 = vadd.f32 %v5175_v24, %v5143_v28  ;;  %v5141_v54 = vsel %vm5077_vm1, %v5045_v27, %v5109_v7  ;;  %v6588_v59 = vadd.f32 %v4966_v47, %v2829_v53  ;;  %v6350_v6 = vpop.f32.mrb[30].mxu1 }
 0x247   : > { %5236 = vst [vmem:[%s8944_s13 + $0xc0] sm:$0xff] %v5204_v61  ;;  %v5205_v8 = vadd.f32 %v5173_v31, %v5141_v54  ;;  %v5050_v9 = vadd.f32 %v6587_v15, %v8930_v43  ;;  %v6589_v38 = vadd.f32 %v6542_v44, %v6350_v6  ;;  %v2832_v26 = vpop.f32.mrb[31].mxu1 }
 0x248   : > { %5239 = vst [vmem:[%s8944_s13 + $0xd8] sm:$0xff] %v5207_v19  ;;  %v5048_v34 = vadd.f32 %v6588_v59, %v8930_v43  ;;  %v6590_v50 = vadd.f32 %v4969_v62, %v2832_v26 }
 0x249   : > { %5237 = vst [vmem:[%s8944_s13 + $0xc8] sm:$0xff] %v5205_v8  ;;  %vm5082_vm2 = vcmp.ge.f32.partialorder %v5050_v9, 0.0  ;;  %v5114_v20 = vmul.f32 0.1, %v5050_v9  ;;  %v5051_v48 = vadd.f32 %v6589_v38, %v8930_v43 }
 0x24a   : > { %vm5080_vm3 = vcmp.ge.f32.partialorder %v5048_v34, 0.0  ;;  %v5112_v37 = vmul.f32 0.1, %v5048_v34  ;;  %v5049_v22 = vadd.f32 %v6590_v50, %v8930_v43 }
 0x24b   : > { %v5146_v56 = vsel %vm5082_vm2, %v5050_v9, %v5114_v20  ;;  %vm5083_vm4 = vcmp.ge.f32.partialorder %v5051_v48, 0.0  ;;  %v5115_v52 = vmul.f32 0.1, %v5051_v48 }
 0x24c   : > { %v5210_v35 = vadd.f32 %v5178_v21, %v5146_v56  ;;  %v5144_v46 = vsel %vm5080_vm3, %v5048_v34, %v5112_v37  ;;  %vm5081_vm5 = vcmp.ge.f32.partialorder %v5049_v22, 0.0  ;;  %v5113_v11 = vmul.f32 0.1, %v5049_v22 }
 0x24d   : > { %v5208_v57 = vadd.f32 %v5176_v36, %v5144_v46  ;;  %v5147_v32 = vsel %vm5083_vm4, %v5051_v48, %v5115_v52 }
 0x24e   : > { %5242 = vst [vmem:[%s8944_s13 + $0xf0] sm:$0xff] %v5210_v35  ;;  %v5211_v13 = vadd.f32 %v5179_v2, %v5147_v32  ;;  %v5145_v60 = vsel %vm5081_vm5, %v5049_v22, %v5113_v11 }
 0x24f   : > { %5240 = vst [vmem:[%s8944_s13 + $0xe0] sm:$0xff] %v5208_v57  ;;  %v5209_v58 = vadd.f32 %v5177_v45, %v5145_v60 }
 0x250   : > { %5243 = vst [vmem:[%s8944_s13 + $0xf8] sm:$0xff] %v5211_v13 }
 0x251   : > { %5241 = vst [vmem:[%s8944_s13 + $0xe8] sm:$0xff] %v5209_v58 }
 0x252 PF: > { %s13_s12 = sadd.s32 1, %s7021_s12  }
 0x253   : > { %p10_p4 = scmp.ge.s32.totalorder %s13_s12, 4  }
 0x255   :  { %12 = sbr.rel (!%p10_p4) target bundleno = 1 (0x1), region = 72 }

</bundles_post_ra>
